<compile_context>
chip_gen: v6e
topology: v6e:2x2x1
jax: 0.10.0
libtpu: 0.0.40
codegen_flags: <defaults>
</compile_context>

<pallas_src>
import functools

import jax
import jax.numpy as jnp
from jax.experimental import pallas as pl
from jax.experimental.pallas import tpu as pltpu


# ----------------------------- in-kernel helpers -----------------------------

def _conv_bn_relu(x, w_flat, *, lv):
    """'same' Conv1d (odd K) + folded BatchNorm(eval) + ReLU on a lane-padded tile.

    x:      (Cin, Lp) float32, columns >= lv are zero (and stay zero in the output).
    w_flat: (Cout, K*Cin) with column index k*Cin + ci and the BN scale folded in.
    """
    cin, lp = x.shape
    cout, kcin = w_flat.shape
    k_taps = kcin // cin
    pad = k_taps // 2

    if k_taps == 1:                       # 1x1 conv: plain channel-mixing matmul
        y = jnp.dot(w_flat, x, preferred_element_type=jnp.float32)
        return jnp.maximum(y, 0.0)

    lane = jax.lax.broadcasted_iota(jnp.int32, (cin, lp), 1)
    cols = []
    for k in range(k_taps):
        s = k - pad                       # output[l] gets x[l + s] for this tap
        if s == 0:
            cols.append(x)                # already zero beyond lv
        else:
            xs = pltpu.roll(x, (-s) % lp, axis=1)          # XLU lane rotation
            ok = (lane < lv) & (lane + s >= 0) & (lane + s < lv)
            cols.append(jnp.where(ok, xs, 0.0))

    if cin == 1:
        # Contraction depth 1 -> keep it on the VPU (broadcast MAC), not the MXU.
        y = w_flat[:, 0:1] * cols[0]
        for k in range(1, k_taps):
            y = y + w_flat[:, k:k + 1] * cols[k]
    else:
        xk = jnp.concatenate(cols, axis=0)                 # (K*Cin, Lp) im2col stack
        y = jnp.dot(w_flat, xk, preferred_element_type=jnp.float32)
    return jnp.maximum(y, 0.0)


def _eca_residual(xv, w3, *, lv):
    """ECA attention gate + residual:  xv * sigmoid(k3-channel-conv(mean_L(xv))) + xv.

    xv: (C, Lp) with columns >= lv zero;  w3: (C, 3) ECA taps broadcast over rows.
    The size-3 channel conv is done with sublane rolls (XLU) + VPU FMAs.
    """
    c, _ = xv.shape
    inv = 1.0 / lv
    row = jax.lax.broadcasted_iota(jnp.int32, (c, 1), 0)
    m = jnp.sum(xv, axis=-1, keepdims=True) * inv                       # mean over valid L
    m_up = jnp.sum(pltpu.roll(xv, 1, axis=0), axis=-1, keepdims=True) * inv       # m[c-1]
    m_dn = jnp.sum(pltpu.roll(xv, c - 1, axis=0), axis=-1, keepdims=True) * inv   # m[c+1]
    m_up = jnp.where(row > 0, m_up, 0.0)        # zero padding at the channel edges
    m_dn = jnp.where(row < c - 1, m_dn, 0.0)
    a = w3[:, 0:1] * m_up + w3[:, 1:2] * m + w3[:, 2:3] * m_dn
    g = jax.nn.sigmoid(a)
    return xv * g + xv


def _maxpool(y, k, sel):
    """MaxPool1d(kernel=k, stride=k) on a lane-padded tile.

    Running-window max via lane rolls, then a one-hot (Lp, Lp) selection matmul picks
    columns {0, k, 2k, ...} (columns beyond the valid length are zeroed by `sel`).
    """
    _, lp = y.shape
    t = jnp.maximum(y, pltpu.roll(y, lp - 1, axis=1))      # max(y[l], y[l+1])
    if k == 4:
        t = jnp.maximum(t, pltpu.roll(t, lp - 2, axis=1))  # max over 4-wide window
    return jnp.dot(t, sel, preferred_element_type=jnp.float32)


# --------------------------------- the kernel --------------------------------

def _mtagn_kernel(x_ref,
                  w_e10, w_e20, w_e11, w_e21, w_e12, w_e22,
                  w_ac0, w_ac1, w_ac2,
                  eca0, eca1, eca2,
                  sel0, sel1, sel2,
                  fc_w, fc_b,
                  o_ref, *, L):
    lv0, lv1, lv2, lv3 = L, L // 4, L // 16, L // 32
    x = x_ref[...]                                        # (Cin, L)

    # ----- shared encoder -----
    e00 = _conv_bn_relu(x,   w_e10[...], lv=lv0)          # (16, L)
    e01 = _conv_bn_relu(e00, w_e20[...], lv=lv0)          # (16, L)
    mp0 = _maxpool(e01, 4, sel0[...])                     # (16, ·) valid L/4
    e10 = _conv_bn_relu(mp0, w_e11[...], lv=lv1)          # (32, ·)
    e11 = _conv_bn_relu(e10, w_e21[...], lv=lv1)          # (32, ·)
    mp1 = _maxpool(e11, 4, sel1[...])                     # (32, ·) valid L/16
    e20 = _conv_bn_relu(mp1, w_e12[...], lv=lv2)          # (64, ·)
    e21 = _conv_bn_relu(e20, w_e22[...], lv=lv2)          # (64, ·)

    # ----- task-1 attention branch (i == 0); i == 1 never reaches the returned head -----
    a00 = _eca_residual(e01, eca0[...], lv=lv0)
    a01 = _conv_bn_relu(a00, w_ac0[...], lv=lv0)          # (32, L)
    a02 = _maxpool(a01, 4, sel0[...])                     # (32, ·) valid L/4
    a10 = _eca_residual(e11 + a02, eca1[...], lv=lv1)
    a11 = _conv_bn_relu(a10, w_ac1[...], lv=lv1)          # (64, ·)
    a12 = _maxpool(a11, 4, sel1[...])                     # (64, ·) valid L/16
    a20 = _eca_residual(e21 + a12, eca2[...], lv=lv2)
    a21 = _conv_bn_relu(a20, w_ac2[...], lv=lv2)          # (128, ·)
    a22 = _maxpool(a21, 2, sel2[...])                     # (128, ·) valid L/32

    # ----- task-1 head: AdaptiveAvgPool1d(1) + Flatten + Linear(128, ncls) -----
    s = jnp.dot(fc_w[...], a22, preferred_element_type=jnp.float32)   # (ncls, L)
    o_ref[...] = jnp.sum(s, axis=-1, keepdims=True) * (1.0 / lv3) + fc_b[...]


# --------------------------------- wrapper ------------------------------------

def mtagn_forward(x, params):
    N, Cin, L = x.shape
    assert L % 32 == 0, "sequence length must be divisible by 32 (two /4 pools + one /2 pool)"
    ncls = params['fc_w'].shape[0]

    weights = [params['w_e10'], params['w_e20'], params['w_e11'], params['w_e21'],
               params['w_e12'], params['w_e22'], params['w_ac0'], params['w_ac1'],
               params['w_ac2'], params['eca0'], params['eca1'], params['eca2'],
               params['sel0'], params['sel1'], params['sel2'],
               params['fc_w'], params['fc_b']]

    def wspec(w):
        # full-array (resident) weight block; same block every grid step -> loaded once
        return pl.BlockSpec(w.shape, lambda n: (0, 0))

    out = pl.pallas_call(
        functools.partial(_mtagn_kernel, L=L),
        out_shape=jax.ShapeDtypeStruct((N, ncls, 1), jnp.float32),
        grid=(N,),
        in_specs=[pl.BlockSpec((None, Cin, L), lambda n: (n, 0, 0))]
                 + [wspec(w) for w in weights],
        out_specs=pl.BlockSpec((None, ncls, 1), lambda n: (n, 0, 0)),
        compiler_params=pltpu.CompilerParams(dimension_semantics=("parallel",)),
    )(x, *weights)
    return out.reshape(N, ncls)


# ------------------------------ parameter init --------------------------------

def init_params(key, in_channels=1, num_classes=5, L=128):
    keys = jax.random.split(key, 13)
    bn_scale = 1.0 / (1.0 + 1e-5) ** 0.5      # eval-mode BN (mean=0, var=1, gamma=1, beta=0)

    def conv(k, cout, cin, ksize):
        # kaiming_normal_(mode='fan_out', nonlinearity='relu'), conv bias = 0.
        std = (2.0 / (cout * ksize)) ** 0.5
        w = jax.random.normal(k, (cout, cin, ksize), jnp.float32) * std   # torch (Cout,Cin,K)
        # im2col layout: column index = k*Cin + ci ; BN scale folded into the weight.
        return jnp.transpose(w, (0, 2, 1)).reshape(cout, ksize * cin) * bn_scale

    def eca(k, c):
        # ECA channel conv: Conv1d(1, 1, kernel_size=3, padding=1, bias=False), kaiming init.
        w3 = jax.random.normal(k, (3,), jnp.float32) * (2.0 / 3.0) ** 0.5
        return jnp.tile(w3[None, :], (c, 1))              # (C, 3) broadcast tap weights

    def pool_sel(kpool, lv):
        # one-hot selector: column j picks window-max at position j*kpool (j < lv//kpool)
        r = jnp.arange(L)[:, None]
        c = jnp.arange(L)[None, :]
        return ((r == c * kpool) & (c < lv // kpool)).astype(jnp.float32)

    p = {
        'w_e10': conv(keys[0], 16, in_channels, 7),
        'w_e20': conv(keys[1], 16, 16, 7),
        'w_e11': conv(keys[2], 32, 16, 5),
        'w_e21': conv(keys[3], 32, 32, 5),
        'w_e12': conv(keys[4], 64, 32, 3),
        'w_e22': conv(keys[5], 64, 64, 3),
        'w_ac0': conv(keys[6], 32, 16, 1),
        'w_ac1': conv(keys[7], 64, 32, 1),
        'w_ac2': conv(keys[8], 128, 64, 1),
        'eca0': eca(keys[9], 16),
        'eca1': eca(keys[10], 32),
        'eca2': eca(keys[11], 64),
        'sel0': pool_sel(4, L),
        'sel1': pool_sel(4, L // 4),
        'sel2': pool_sel(2, L // 16),
        # Linear(128, num_classes): xavier_normal_, bias = 0.
        'fc_w': jax.random.normal(keys[12], (num_classes, 128), jnp.float32)
                * (2.0 / (128 + num_classes)) ** 0.5,
        'fc_b': jnp.zeros((num_classes, 1), jnp.float32),
    }
    return p


# ----------------------------------- main --------------------------------------

if __name__ == "__main__":
    key = jax.random.PRNGKey(0)
    k_x, k_p = jax.random.split(key)

    N, C_IN, L = 2, 1, 128            # L divisible by 32; lane-dense (multiple of 128)
    x = jax.random.normal(k_x, (N, C_IN, L), jnp.float32)
    params = init_params(k_p, in_channels=C_IN, num_classes=5, L=L)

    fwd = jax.jit(mtagn_forward)
    out = jax.block_until_ready(fwd(x, params))

    assert out.shape == (N, 5), out.shape
    assert bool(jnp.all(jnp.isfinite(out)))
    print("KERNEL_OK")
</pallas_src>

<mosaic_0001>
module attributes {stable_mosaic.version = 11 : i64} {
  func.func @_mtagn_kernel(%arg0: i32, %arg1: memref<1x1x128xf32, #tpu.memory_space<vmem>>, %arg2: memref<16x7xf32, #tpu.memory_space<vmem>>, %arg3: memref<16x112xf32, #tpu.memory_space<vmem>>, %arg4: memref<32x80xf32, #tpu.memory_space<vmem>>, %arg5: memref<32x160xf32, #tpu.memory_space<vmem>>, %arg6: memref<64x96xf32, #tpu.memory_space<vmem>>, %arg7: memref<64x192xf32, #tpu.memory_space<vmem>>, %arg8: memref<32x16xf32, #tpu.memory_space<vmem>>, %arg9: memref<64x32xf32, #tpu.memory_space<vmem>>, %arg10: memref<128x64xf32, #tpu.memory_space<vmem>>, %arg11: memref<16x3xf32, #tpu.memory_space<vmem>>, %arg12: memref<32x3xf32, #tpu.memory_space<vmem>>, %arg13: memref<64x3xf32, #tpu.memory_space<vmem>>, %arg14: memref<128x128xf32, #tpu.memory_space<vmem>>, %arg15: memref<128x128xf32, #tpu.memory_space<vmem>>, %arg16: memref<128x128xf32, #tpu.memory_space<vmem>>, %arg17: memref<5x128xf32, #tpu.memory_space<vmem>>, %arg18: memref<5x1xf32, #tpu.memory_space<vmem>>, %arg19: memref<1x5x1xf32, #tpu.memory_space<vmem>>) attributes {dimension_semantics = [#tpu.dimension_semantics<parallel>], iteration_bounds = array<i64: 2>, scalar_prefetch = 0 : i64, scratch_operands = 0 : i64, tpu.core_type = #tpu.core_type<tc>, window_params = [{transform_indices = @transform_0, window_bounds = array<i64: 1, 1, 128>}, {pipeline_mode = #tpu.pipeline_mode<synchronous>, transform_indices = @transform_1, window_bounds = array<i64: 16, 7>}, {pipeline_mode = #tpu.pipeline_mode<synchronous>, transform_indices = @transform_2, window_bounds = array<i64: 16, 112>}, {pipeline_mode = #tpu.pipeline_mode<synchronous>, transform_indices = @transform_3, window_bounds = array<i64: 32, 80>}, {pipeline_mode = #tpu.pipeline_mode<synchronous>, transform_indices = @transform_4, window_bounds = array<i64: 32, 160>}, {pipeline_mode = #tpu.pipeline_mode<synchronous>, transform_indices = @transform_5, window_bounds = array<i64: 64, 96>}, {pipeline_mode = #tpu.pipeline_mode<synchronous>, transform_indices = @transform_6, window_bounds = array<i64: 64, 192>}, {pipeline_mode = #tpu.pipeline_mode<synchronous>, transform_indices = @transform_7, window_bounds = array<i64: 32, 16>}, {pipeline_mode = #tpu.pipeline_mode<synchronous>, transform_indices = @transform_8, window_bounds = array<i64: 64, 32>}, {pipeline_mode = #tpu.pipeline_mode<synchronous>, transform_indices = @transform_9, window_bounds = array<i64: 128, 64>}, {pipeline_mode = #tpu.pipeline_mode<synchronous>, transform_indices = @transform_10, window_bounds = array<i64: 16, 3>}, {pipeline_mode = #tpu.pipeline_mode<synchronous>, transform_indices = @transform_11, window_bounds = array<i64: 32, 3>}, {pipeline_mode = #tpu.pipeline_mode<synchronous>, transform_indices = @transform_12, window_bounds = array<i64: 64, 3>}, {pipeline_mode = #tpu.pipeline_mode<synchronous>, transform_indices = @transform_13, window_bounds = array<i64: 128, 128>}, {pipeline_mode = #tpu.pipeline_mode<synchronous>, transform_indices = @transform_14, window_bounds = array<i64: 128, 128>}, {pipeline_mode = #tpu.pipeline_mode<synchronous>, transform_indices = @transform_15, window_bounds = array<i64: 128, 128>}, {pipeline_mode = #tpu.pipeline_mode<synchronous>, transform_indices = @transform_16, window_bounds = array<i64: 5, 128>}, {pipeline_mode = #tpu.pipeline_mode<synchronous>, transform_indices = @transform_17, window_bounds = array<i64: 5, 1>}, {transform_indices = @transform_18, window_bounds = array<i64: 1, 5, 1>}]} {
    %c0 = arith.constant 0 : index
    %c0_0 = arith.constant 0 : index
    %c0_1 = arith.constant 0 : index
    %0 = vector.load %arg1[%c0, %c0_0, %c0_1] : memref<1x1x128xf32, #tpu.memory_space<vmem>>, vector<1x1x128xf32>
    %1 = vector.shape_cast %0 : vector<1x1x128xf32> to vector<1x128xf32>
    %c0_2 = arith.constant 0 : index
    %c0_3 = arith.constant 0 : index
    %2 = vector.load %arg2[%c0_2, %c0_3] : memref<16x7xf32, #tpu.memory_space<vmem>>, vector<16x7xf32>
    %3 = tpu.iota {dimensions = array<i32: 1>} : vector<1x128xi32>
    %c3_i32 = arith.constant 3 : i32
    %4 = tpu.dynamic_rotate %1 by %c3_i32 dim 1 : vector<1x128xf32>, i32 -> vector<1x128xf32>
    %c128_i32 = arith.constant 128 : i32
    %5 = vector.broadcast %c128_i32 : i32 to vector<1x128xi32>
    %6 = arith.cmpi slt, %3, %5 : vector<1x128xi32>
    %c-3_i32 = arith.constant -3 : i32
    %7 = vector.broadcast %c-3_i32 : i32 to vector<1x128xi32>
    %8 = arith.addi %3, %7 : vector<1x128xi32>
    %c0_i32 = arith.constant 0 : i32
    %9 = vector.broadcast %c0_i32 : i32 to vector<1x128xi32>
    %10 = arith.cmpi sge, %8, %9 : vector<1x128xi32>
    %11 = arith.andi %6, %10 : vector<1x128xi1>
    %c-3_i32_4 = arith.constant -3 : i32
    %12 = vector.broadcast %c-3_i32_4 : i32 to vector<1x128xi32>
    %13 = arith.addi %3, %12 : vector<1x128xi32>
    %c128_i32_5 = arith.constant 128 : i32
    %14 = vector.broadcast %c128_i32_5 : i32 to vector<1x128xi32>
    %15 = arith.cmpi slt, %13, %14 : vector<1x128xi32>
    %16 = arith.andi %11, %15 : vector<1x128xi1>
    %cst = arith.constant 0.000000e+00 : f32
    %17 = vector.broadcast %cst : f32 to vector<1x128xf32>
    %18 = arith.select %16, %4, %17 : vector<1x128xi1>, vector<1x128xf32>
    %c2_i32 = arith.constant 2 : i32
    %19 = tpu.dynamic_rotate %1 by %c2_i32 dim 1 : vector<1x128xf32>, i32 -> vector<1x128xf32>
    %c128_i32_6 = arith.constant 128 : i32
    %20 = vector.broadcast %c128_i32_6 : i32 to vector<1x128xi32>
    %21 = arith.cmpi slt, %3, %20 : vector<1x128xi32>
    %c-2_i32 = arith.constant -2 : i32
    %22 = vector.broadcast %c-2_i32 : i32 to vector<1x128xi32>
    %23 = arith.addi %3, %22 : vector<1x128xi32>
    %c0_i32_7 = arith.constant 0 : i32
    %24 = vector.broadcast %c0_i32_7 : i32 to vector<1x128xi32>
    %25 = arith.cmpi sge, %23, %24 : vector<1x128xi32>
    %26 = arith.andi %21, %25 : vector<1x128xi1>
    %c-2_i32_8 = arith.constant -2 : i32
    %27 = vector.broadcast %c-2_i32_8 : i32 to vector<1x128xi32>
    %28 = arith.addi %3, %27 : vector<1x128xi32>
    %c128_i32_9 = arith.constant 128 : i32
    %29 = vector.broadcast %c128_i32_9 : i32 to vector<1x128xi32>
    %30 = arith.cmpi slt, %28, %29 : vector<1x128xi32>
    %31 = arith.andi %26, %30 : vector<1x128xi1>
    %cst_10 = arith.constant 0.000000e+00 : f32
    %32 = vector.broadcast %cst_10 : f32 to vector<1x128xf32>
    %33 = arith.select %31, %19, %32 : vector<1x128xi1>, vector<1x128xf32>
    %c1_i32 = arith.constant 1 : i32
    %34 = tpu.dynamic_rotate %1 by %c1_i32 dim 1 : vector<1x128xf32>, i32 -> vector<1x128xf32>
    %c128_i32_11 = arith.constant 128 : i32
    %35 = vector.broadcast %c128_i32_11 : i32 to vector<1x128xi32>
    %36 = arith.cmpi slt, %3, %35 : vector<1x128xi32>
    %c-1_i32 = arith.constant -1 : i32
    %37 = vector.broadcast %c-1_i32 : i32 to vector<1x128xi32>
    %38 = arith.addi %3, %37 : vector<1x128xi32>
    %c0_i32_12 = arith.constant 0 : i32
    %39 = vector.broadcast %c0_i32_12 : i32 to vector<1x128xi32>
    %40 = arith.cmpi sge, %38, %39 : vector<1x128xi32>
    %41 = arith.andi %36, %40 : vector<1x128xi1>
    %c-1_i32_13 = arith.constant -1 : i32
    %42 = vector.broadcast %c-1_i32_13 : i32 to vector<1x128xi32>
    %43 = arith.addi %3, %42 : vector<1x128xi32>
    %c128_i32_14 = arith.constant 128 : i32
    %44 = vector.broadcast %c128_i32_14 : i32 to vector<1x128xi32>
    %45 = arith.cmpi slt, %43, %44 : vector<1x128xi32>
    %46 = arith.andi %41, %45 : vector<1x128xi1>
    %cst_15 = arith.constant 0.000000e+00 : f32
    %47 = vector.broadcast %cst_15 : f32 to vector<1x128xf32>
    %48 = arith.select %46, %34, %47 : vector<1x128xi1>, vector<1x128xf32>
    %c127_i32 = arith.constant 127 : i32
    %49 = tpu.dynamic_rotate %1 by %c127_i32 dim 1 : vector<1x128xf32>, i32 -> vector<1x128xf32>
    %c128_i32_16 = arith.constant 128 : i32
    %50 = vector.broadcast %c128_i32_16 : i32 to vector<1x128xi32>
    %51 = arith.cmpi slt, %3, %50 : vector<1x128xi32>
    %c1_i32_17 = arith.constant 1 : i32
    %52 = vector.broadcast %c1_i32_17 : i32 to vector<1x128xi32>
    %53 = arith.addi %3, %52 : vector<1x128xi32>
    %c0_i32_18 = arith.constant 0 : i32
    %54 = vector.broadcast %c0_i32_18 : i32 to vector<1x128xi32>
    %55 = arith.cmpi sge, %53, %54 : vector<1x128xi32>
    %56 = arith.andi %51, %55 : vector<1x128xi1>
    %c1_i32_19 = arith.constant 1 : i32
    %57 = vector.broadcast %c1_i32_19 : i32 to vector<1x128xi32>
    %58 = arith.addi %3, %57 : vector<1x128xi32>
    %c128_i32_20 = arith.constant 128 : i32
    %59 = vector.broadcast %c128_i32_20 : i32 to vector<1x128xi32>
    %60 = arith.cmpi slt, %58, %59 : vector<1x128xi32>
    %61 = arith.andi %56, %60 : vector<1x128xi1>
    %cst_21 = arith.constant 0.000000e+00 : f32
    %62 = vector.broadcast %cst_21 : f32 to vector<1x128xf32>
    %63 = arith.select %61, %49, %62 : vector<1x128xi1>, vector<1x128xf32>
    %c126_i32 = arith.constant 126 : i32
    %64 = tpu.dynamic_rotate %1 by %c126_i32 dim 1 : vector<1x128xf32>, i32 -> vector<1x128xf32>
    %c128_i32_22 = arith.constant 128 : i32
    %65 = vector.broadcast %c128_i32_22 : i32 to vector<1x128xi32>
    %66 = arith.cmpi slt, %3, %65 : vector<1x128xi32>
    %c2_i32_23 = arith.constant 2 : i32
    %67 = vector.broadcast %c2_i32_23 : i32 to vector<1x128xi32>
    %68 = arith.addi %3, %67 : vector<1x128xi32>
    %c0_i32_24 = arith.constant 0 : i32
    %69 = vector.broadcast %c0_i32_24 : i32 to vector<1x128xi32>
    %70 = arith.cmpi sge, %68, %69 : vector<1x128xi32>
    %71 = arith.andi %66, %70 : vector<1x128xi1>
    %c2_i32_25 = arith.constant 2 : i32
    %72 = vector.broadcast %c2_i32_25 : i32 to vector<1x128xi32>
    %73 = arith.addi %3, %72 : vector<1x128xi32>
    %c128_i32_26 = arith.constant 128 : i32
    %74 = vector.broadcast %c128_i32_26 : i32 to vector<1x128xi32>
    %75 = arith.cmpi slt, %73, %74 : vector<1x128xi32>
    %76 = arith.andi %71, %75 : vector<1x128xi1>
    %cst_27 = arith.constant 0.000000e+00 : f32
    %77 = vector.broadcast %cst_27 : f32 to vector<1x128xf32>
    %78 = arith.select %76, %64, %77 : vector<1x128xi1>, vector<1x128xf32>
    %c125_i32 = arith.constant 125 : i32
    %79 = tpu.dynamic_rotate %1 by %c125_i32 dim 1 : vector<1x128xf32>, i32 -> vector<1x128xf32>
    %c128_i32_28 = arith.constant 128 : i32
    %80 = vector.broadcast %c128_i32_28 : i32 to vector<1x128xi32>
    %81 = arith.cmpi slt, %3, %80 : vector<1x128xi32>
    %c3_i32_29 = arith.constant 3 : i32
    %82 = vector.broadcast %c3_i32_29 : i32 to vector<1x128xi32>
    %83 = arith.addi %3, %82 : vector<1x128xi32>
    %c0_i32_30 = arith.constant 0 : i32
    %84 = vector.broadcast %c0_i32_30 : i32 to vector<1x128xi32>
    %85 = arith.cmpi sge, %83, %84 : vector<1x128xi32>
    %86 = arith.andi %81, %85 : vector<1x128xi1>
    %c3_i32_31 = arith.constant 3 : i32
    %87 = vector.broadcast %c3_i32_31 : i32 to vector<1x128xi32>
    %88 = arith.addi %3, %87 : vector<1x128xi32>
    %c128_i32_32 = arith.constant 128 : i32
    %89 = vector.broadcast %c128_i32_32 : i32 to vector<1x128xi32>
    %90 = arith.cmpi slt, %88, %89 : vector<1x128xi32>
    %91 = arith.andi %86, %90 : vector<1x128xi1>
    %cst_33 = arith.constant 0.000000e+00 : f32
    %92 = vector.broadcast %cst_33 : f32 to vector<1x128xf32>
    %93 = arith.select %91, %79, %92 : vector<1x128xi1>, vector<1x128xf32>
    %94 = vector.extract_strided_slice %2 {offsets = [0, 0], sizes = [16, 1], strides = [1, 1]} : vector<16x7xf32> to vector<16x1xf32>
    %95 = vector.broadcast %94 : vector<16x1xf32> to vector<16x128xf32>
    %96 = vector.broadcast %18 : vector<1x128xf32> to vector<16x128xf32>
    %97 = arith.mulf %95, %96 : vector<16x128xf32>
    %98 = vector.extract_strided_slice %2 {offsets = [0, 1], sizes = [16, 1], strides = [1, 1]} : vector<16x7xf32> to vector<16x1xf32>
    %99 = vector.broadcast %98 : vector<16x1xf32> to vector<16x128xf32>
    %100 = vector.broadcast %33 : vector<1x128xf32> to vector<16x128xf32>
    %101 = arith.mulf %99, %100 : vector<16x128xf32>
    %102 = arith.addf %97, %101 : vector<16x128xf32>
    %103 = vector.extract_strided_slice %2 {offsets = [0, 2], sizes = [16, 1], strides = [1, 1]} : vector<16x7xf32> to vector<16x1xf32>
    %104 = vector.broadcast %103 : vector<16x1xf32> to vector<16x128xf32>
    %105 = vector.broadcast %48 : vector<1x128xf32> to vector<16x128xf32>
    %106 = arith.mulf %104, %105 : vector<16x128xf32>
    %107 = arith.addf %102, %106 : vector<16x128xf32>
    %108 = vector.extract_strided_slice %2 {offsets = [0, 3], sizes = [16, 1], strides = [1, 1]} : vector<16x7xf32> to vector<16x1xf32>
    %109 = vector.broadcast %108 : vector<16x1xf32> to vector<16x128xf32>
    %110 = vector.broadcast %1 : vector<1x128xf32> to vector<16x128xf32>
    %111 = arith.mulf %109, %110 : vector<16x128xf32>
    %112 = arith.addf %107, %111 : vector<16x128xf32>
    %113 = vector.extract_strided_slice %2 {offsets = [0, 4], sizes = [16, 1], strides = [1, 1]} : vector<16x7xf32> to vector<16x1xf32>
    %114 = vector.broadcast %113 : vector<16x1xf32> to vector<16x128xf32>
    %115 = vector.broadcast %63 : vector<1x128xf32> to vector<16x128xf32>
    %116 = arith.mulf %114, %115 : vector<16x128xf32>
    %117 = arith.addf %112, %116 : vector<16x128xf32>
    %118 = vector.extract_strided_slice %2 {offsets = [0, 5], sizes = [16, 1], strides = [1, 1]} : vector<16x7xf32> to vector<16x1xf32>
    %119 = vector.broadcast %118 : vector<16x1xf32> to vector<16x128xf32>
    %120 = vector.broadcast %78 : vector<1x128xf32> to vector<16x128xf32>
    %121 = arith.mulf %119, %120 : vector<16x128xf32>
    %122 = arith.addf %117, %121 : vector<16x128xf32>
    %123 = vector.extract_strided_slice %2 {offsets = [0, 6], sizes = [16, 1], strides = [1, 1]} : vector<16x7xf32> to vector<16x1xf32>
    %124 = vector.broadcast %123 : vector<16x1xf32> to vector<16x128xf32>
    %125 = vector.broadcast %93 : vector<1x128xf32> to vector<16x128xf32>
    %126 = arith.mulf %124, %125 : vector<16x128xf32>
    %127 = arith.addf %122, %126 : vector<16x128xf32>
    %cst_34 = arith.constant 0.000000e+00 : f32
    %128 = vector.broadcast %cst_34 : f32 to vector<16x128xf32>
    %129 = arith.maximumf %127, %128 : vector<16x128xf32>
    %c0_35 = arith.constant 0 : index
    %c0_36 = arith.constant 0 : index
    %130 = vector.load %arg3[%c0_35, %c0_36] : memref<16x112xf32, #tpu.memory_space<vmem>>, vector<16x112xf32>
    %131 = tpu.iota {dimensions = array<i32: 1>} : vector<16x128xi32>
    %c3_i32_37 = arith.constant 3 : i32
    %132 = tpu.dynamic_rotate %129 by %c3_i32_37 dim 1 : vector<16x128xf32>, i32 -> vector<16x128xf32>
    %c128_i32_38 = arith.constant 128 : i32
    %133 = vector.broadcast %c128_i32_38 : i32 to vector<16x128xi32>
    %134 = arith.cmpi slt, %131, %133 : vector<16x128xi32>
    %c-3_i32_39 = arith.constant -3 : i32
    %135 = vector.broadcast %c-3_i32_39 : i32 to vector<16x128xi32>
    %136 = arith.addi %131, %135 : vector<16x128xi32>
    %c0_i32_40 = arith.constant 0 : i32
    %137 = vector.broadcast %c0_i32_40 : i32 to vector<16x128xi32>
    %138 = arith.cmpi sge, %136, %137 : vector<16x128xi32>
    %139 = arith.andi %134, %138 : vector<16x128xi1>
    %c-3_i32_41 = arith.constant -3 : i32
    %140 = vector.broadcast %c-3_i32_41 : i32 to vector<16x128xi32>
    %141 = arith.addi %131, %140 : vector<16x128xi32>
    %c128_i32_42 = arith.constant 128 : i32
    %142 = vector.broadcast %c128_i32_42 : i32 to vector<16x128xi32>
    %143 = arith.cmpi slt, %141, %142 : vector<16x128xi32>
    %144 = arith.andi %139, %143 : vector<16x128xi1>
    %cst_43 = arith.constant 0.000000e+00 : f32
    %145 = vector.broadcast %cst_43 : f32 to vector<16x128xf32>
    %146 = arith.select %144, %132, %145 : vector<16x128xi1>, vector<16x128xf32>
    %c2_i32_44 = arith.constant 2 : i32
    %147 = tpu.dynamic_rotate %129 by %c2_i32_44 dim 1 : vector<16x128xf32>, i32 -> vector<16x128xf32>
    %c128_i32_45 = arith.constant 128 : i32
    %148 = vector.broadcast %c128_i32_45 : i32 to vector<16x128xi32>
    %149 = arith.cmpi slt, %131, %148 : vector<16x128xi32>
    %c-2_i32_46 = arith.constant -2 : i32
    %150 = vector.broadcast %c-2_i32_46 : i32 to vector<16x128xi32>
    %151 = arith.addi %131, %150 : vector<16x128xi32>
    %c0_i32_47 = arith.constant 0 : i32
    %152 = vector.broadcast %c0_i32_47 : i32 to vector<16x128xi32>
    %153 = arith.cmpi sge, %151, %152 : vector<16x128xi32>
    %154 = arith.andi %149, %153 : vector<16x128xi1>
    %c-2_i32_48 = arith.constant -2 : i32
    %155 = vector.broadcast %c-2_i32_48 : i32 to vector<16x128xi32>
    %156 = arith.addi %131, %155 : vector<16x128xi32>
    %c128_i32_49 = arith.constant 128 : i32
    %157 = vector.broadcast %c128_i32_49 : i32 to vector<16x128xi32>
    %158 = arith.cmpi slt, %156, %157 : vector<16x128xi32>
    %159 = arith.andi %154, %158 : vector<16x128xi1>
    %cst_50 = arith.constant 0.000000e+00 : f32
    %160 = vector.broadcast %cst_50 : f32 to vector<16x128xf32>
    %161 = arith.select %159, %147, %160 : vector<16x128xi1>, vector<16x128xf32>
    %c1_i32_51 = arith.constant 1 : i32
    %162 = tpu.dynamic_rotate %129 by %c1_i32_51 dim 1 : vector<16x128xf32>, i32 -> vector<16x128xf32>
    %c128_i32_52 = arith.constant 128 : i32
    %163 = vector.broadcast %c128_i32_52 : i32 to vector<16x128xi32>
    %164 = arith.cmpi slt, %131, %163 : vector<16x128xi32>
    %c-1_i32_53 = arith.constant -1 : i32
    %165 = vector.broadcast %c-1_i32_53 : i32 to vector<16x128xi32>
    %166 = arith.addi %131, %165 : vector<16x128xi32>
    %c0_i32_54 = arith.constant 0 : i32
    %167 = vector.broadcast %c0_i32_54 : i32 to vector<16x128xi32>
    %168 = arith.cmpi sge, %166, %167 : vector<16x128xi32>
    %169 = arith.andi %164, %168 : vector<16x128xi1>
    %c-1_i32_55 = arith.constant -1 : i32
    %170 = vector.broadcast %c-1_i32_55 : i32 to vector<16x128xi32>
    %171 = arith.addi %131, %170 : vector<16x128xi32>
    %c128_i32_56 = arith.constant 128 : i32
    %172 = vector.broadcast %c128_i32_56 : i32 to vector<16x128xi32>
    %173 = arith.cmpi slt, %171, %172 : vector<16x128xi32>
    %174 = arith.andi %169, %173 : vector<16x128xi1>
    %cst_57 = arith.constant 0.000000e+00 : f32
    %175 = vector.broadcast %cst_57 : f32 to vector<16x128xf32>
    %176 = arith.select %174, %162, %175 : vector<16x128xi1>, vector<16x128xf32>
    %c127_i32_58 = arith.constant 127 : i32
    %177 = tpu.dynamic_rotate %129 by %c127_i32_58 dim 1 : vector<16x128xf32>, i32 -> vector<16x128xf32>
    %c128_i32_59 = arith.constant 128 : i32
    %178 = vector.broadcast %c128_i32_59 : i32 to vector<16x128xi32>
    %179 = arith.cmpi slt, %131, %178 : vector<16x128xi32>
    %c1_i32_60 = arith.constant 1 : i32
    %180 = vector.broadcast %c1_i32_60 : i32 to vector<16x128xi32>
    %181 = arith.addi %131, %180 : vector<16x128xi32>
    %c0_i32_61 = arith.constant 0 : i32
    %182 = vector.broadcast %c0_i32_61 : i32 to vector<16x128xi32>
    %183 = arith.cmpi sge, %181, %182 : vector<16x128xi32>
    %184 = arith.andi %179, %183 : vector<16x128xi1>
    %c1_i32_62 = arith.constant 1 : i32
    %185 = vector.broadcast %c1_i32_62 : i32 to vector<16x128xi32>
    %186 = arith.addi %131, %185 : vector<16x128xi32>
    %c128_i32_63 = arith.constant 128 : i32
    %187 = vector.broadcast %c128_i32_63 : i32 to vector<16x128xi32>
    %188 = arith.cmpi slt, %186, %187 : vector<16x128xi32>
    %189 = arith.andi %184, %188 : vector<16x128xi1>
    %cst_64 = arith.constant 0.000000e+00 : f32
    %190 = vector.broadcast %cst_64 : f32 to vector<16x128xf32>
    %191 = arith.select %189, %177, %190 : vector<16x128xi1>, vector<16x128xf32>
    %c126_i32_65 = arith.constant 126 : i32
    %192 = tpu.dynamic_rotate %129 by %c126_i32_65 dim 1 : vector<16x128xf32>, i32 -> vector<16x128xf32>
    %c128_i32_66 = arith.constant 128 : i32
    %193 = vector.broadcast %c128_i32_66 : i32 to vector<16x128xi32>
    %194 = arith.cmpi slt, %131, %193 : vector<16x128xi32>
    %c2_i32_67 = arith.constant 2 : i32
    %195 = vector.broadcast %c2_i32_67 : i32 to vector<16x128xi32>
    %196 = arith.addi %131, %195 : vector<16x128xi32>
    %c0_i32_68 = arith.constant 0 : i32
    %197 = vector.broadcast %c0_i32_68 : i32 to vector<16x128xi32>
    %198 = arith.cmpi sge, %196, %197 : vector<16x128xi32>
    %199 = arith.andi %194, %198 : vector<16x128xi1>
    %c2_i32_69 = arith.constant 2 : i32
    %200 = vector.broadcast %c2_i32_69 : i32 to vector<16x128xi32>
    %201 = arith.addi %131, %200 : vector<16x128xi32>
    %c128_i32_70 = arith.constant 128 : i32
    %202 = vector.broadcast %c128_i32_70 : i32 to vector<16x128xi32>
    %203 = arith.cmpi slt, %201, %202 : vector<16x128xi32>
    %204 = arith.andi %199, %203 : vector<16x128xi1>
    %cst_71 = arith.constant 0.000000e+00 : f32
    %205 = vector.broadcast %cst_71 : f32 to vector<16x128xf32>
    %206 = arith.select %204, %192, %205 : vector<16x128xi1>, vector<16x128xf32>
    %c125_i32_72 = arith.constant 125 : i32
    %207 = tpu.dynamic_rotate %129 by %c125_i32_72 dim 1 : vector<16x128xf32>, i32 -> vector<16x128xf32>
    %c128_i32_73 = arith.constant 128 : i32
    %208 = vector.broadcast %c128_i32_73 : i32 to vector<16x128xi32>
    %209 = arith.cmpi slt, %131, %208 : vector<16x128xi32>
    %c3_i32_74 = arith.constant 3 : i32
    %210 = vector.broadcast %c3_i32_74 : i32 to vector<16x128xi32>
    %211 = arith.addi %131, %210 : vector<16x128xi32>
    %c0_i32_75 = arith.constant 0 : i32
    %212 = vector.broadcast %c0_i32_75 : i32 to vector<16x128xi32>
    %213 = arith.cmpi sge, %211, %212 : vector<16x128xi32>
    %214 = arith.andi %209, %213 : vector<16x128xi1>
    %c3_i32_76 = arith.constant 3 : i32
    %215 = vector.broadcast %c3_i32_76 : i32 to vector<16x128xi32>
    %216 = arith.addi %131, %215 : vector<16x128xi32>
    %c128_i32_77 = arith.constant 128 : i32
    %217 = vector.broadcast %c128_i32_77 : i32 to vector<16x128xi32>
    %218 = arith.cmpi slt, %216, %217 : vector<16x128xi32>
    %219 = arith.andi %214, %218 : vector<16x128xi1>
    %cst_78 = arith.constant 0.000000e+00 : f32
    %220 = vector.broadcast %cst_78 : f32 to vector<16x128xf32>
    %221 = arith.select %219, %207, %220 : vector<16x128xi1>, vector<16x128xf32>
    %222 = tpu.concatenate %146, %161, %176, %129, %191, %206, %221 in 0 : vector<16x128xf32>, vector<16x128xf32>, vector<16x128xf32>, vector<16x128xf32>, vector<16x128xf32>, vector<16x128xf32>, vector<16x128xf32> -> vector<112x128xf32>
    %cst_79 = arith.constant dense<0.000000e+00> : vector<16x128xf32>
    %223 = tpu.matmul %130, %222, %cst_79 {dimension_numbers = #tpu.dot_dimension_numbers<[1], [0], [0], [1], [0, 0, 1, 1], [], []>} : vector<16x112xf32>, vector<112x128xf32>, vector<16x128xf32> -> vector<16x128xf32>
    %cst_80 = arith.constant 0.000000e+00 : f32
    %224 = vector.broadcast %cst_80 : f32 to vector<16x128xf32>
    %225 = arith.maximumf %223, %224 : vector<16x128xf32>
    %c0_81 = arith.constant 0 : index
    %c0_82 = arith.constant 0 : index
    %226 = vector.load %arg14[%c0_81, %c0_82] : memref<128x128xf32, #tpu.memory_space<vmem>>, vector<128x128xf32>
    %c127_i32_83 = arith.constant 127 : i32
    %227 = tpu.dynamic_rotate %225 by %c127_i32_83 dim 1 : vector<16x128xf32>, i32 -> vector<16x128xf32>
    %228 = arith.maximumf %225, %227 : vector<16x128xf32>
    %c126_i32_84 = arith.constant 126 : i32
    %229 = tpu.dynamic_rotate %228 by %c126_i32_84 dim 1 : vector<16x128xf32>, i32 -> vector<16x128xf32>
    %230 = arith.maximumf %228, %229 : vector<16x128xf32>
    %cst_85 = arith.constant dense<0.000000e+00> : vector<16x128xf32>
    %231 = tpu.matmul %230, %226, %cst_85 {dimension_numbers = #tpu.dot_dimension_numbers<[1], [0], [0], [1], [0, 0, 1, 1], [], []>} : vector<16x128xf32>, vector<128x128xf32>, vector<16x128xf32> -> vector<16x128xf32>
    %c0_86 = arith.constant 0 : index
    %c0_87 = arith.constant 0 : index
    %232 = vector.load %arg4[%c0_86, %c0_87] : memref<32x80xf32, #tpu.memory_space<vmem>>, vector<32x80xf32>
    %233 = tpu.iota {dimensions = array<i32: 1>} : vector<16x128xi32>
    %c2_i32_88 = arith.constant 2 : i32
    %234 = tpu.dynamic_rotate %231 by %c2_i32_88 dim 1 : vector<16x128xf32>, i32 -> vector<16x128xf32>
    %c32_i32 = arith.constant 32 : i32
    %235 = vector.broadcast %c32_i32 : i32 to vector<16x128xi32>
    %236 = arith.cmpi slt, %233, %235 : vector<16x128xi32>
    %c-2_i32_89 = arith.constant -2 : i32
    %237 = vector.broadcast %c-2_i32_89 : i32 to vector<16x128xi32>
    %238 = arith.addi %233, %237 : vector<16x128xi32>
    %c0_i32_90 = arith.constant 0 : i32
    %239 = vector.broadcast %c0_i32_90 : i32 to vector<16x128xi32>
    %240 = arith.cmpi sge, %238, %239 : vector<16x128xi32>
    %241 = arith.andi %236, %240 : vector<16x128xi1>
    %c-2_i32_91 = arith.constant -2 : i32
    %242 = vector.broadcast %c-2_i32_91 : i32 to vector<16x128xi32>
    %243 = arith.addi %233, %242 : vector<16x128xi32>
    %c32_i32_92 = arith.constant 32 : i32
    %244 = vector.broadcast %c32_i32_92 : i32 to vector<16x128xi32>
    %245 = arith.cmpi slt, %243, %244 : vector<16x128xi32>
    %246 = arith.andi %241, %245 : vector<16x128xi1>
    %cst_93 = arith.constant 0.000000e+00 : f32
    %247 = vector.broadcast %cst_93 : f32 to vector<16x128xf32>
    %248 = arith.select %246, %234, %247 : vector<16x128xi1>, vector<16x128xf32>
    %c1_i32_94 = arith.constant 1 : i32
    %249 = tpu.dynamic_rotate %231 by %c1_i32_94 dim 1 : vector<16x128xf32>, i32 -> vector<16x128xf32>
    %c32_i32_95 = arith.constant 32 : i32
    %250 = vector.broadcast %c32_i32_95 : i32 to vector<16x128xi32>
    %251 = arith.cmpi slt, %233, %250 : vector<16x128xi32>
    %c-1_i32_96 = arith.constant -1 : i32
    %252 = vector.broadcast %c-1_i32_96 : i32 to vector<16x128xi32>
    %253 = arith.addi %233, %252 : vector<16x128xi32>
    %c0_i32_97 = arith.constant 0 : i32
    %254 = vector.broadcast %c0_i32_97 : i32 to vector<16x128xi32>
    %255 = arith.cmpi sge, %253, %254 : vector<16x128xi32>
    %256 = arith.andi %251, %255 : vector<16x128xi1>
    %c-1_i32_98 = arith.constant -1 : i32
    %257 = vector.broadcast %c-1_i32_98 : i32 to vector<16x128xi32>
    %258 = arith.addi %233, %257 : vector<16x128xi32>
    %c32_i32_99 = arith.constant 32 : i32
    %259 = vector.broadcast %c32_i32_99 : i32 to vector<16x128xi32>
    %260 = arith.cmpi slt, %258, %259 : vector<16x128xi32>
    %261 = arith.andi %256, %260 : vector<16x128xi1>
    %cst_100 = arith.constant 0.000000e+00 : f32
    %262 = vector.broadcast %cst_100 : f32 to vector<16x128xf32>
    %263 = arith.select %261, %249, %262 : vector<16x128xi1>, vector<16x128xf32>
    %c127_i32_101 = arith.constant 127 : i32
    %264 = tpu.dynamic_rotate %231 by %c127_i32_101 dim 1 : vector<16x128xf32>, i32 -> vector<16x128xf32>
    %c32_i32_102 = arith.constant 32 : i32
    %265 = vector.broadcast %c32_i32_102 : i32 to vector<16x128xi32>
    %266 = arith.cmpi slt, %233, %265 : vector<16x128xi32>
    %c1_i32_103 = arith.constant 1 : i32
    %267 = vector.broadcast %c1_i32_103 : i32 to vector<16x128xi32>
    %268 = arith.addi %233, %267 : vector<16x128xi32>
    %c0_i32_104 = arith.constant 0 : i32
    %269 = vector.broadcast %c0_i32_104 : i32 to vector<16x128xi32>
    %270 = arith.cmpi sge, %268, %269 : vector<16x128xi32>
    %271 = arith.andi %266, %270 : vector<16x128xi1>
    %c1_i32_105 = arith.constant 1 : i32
    %272 = vector.broadcast %c1_i32_105 : i32 to vector<16x128xi32>
    %273 = arith.addi %233, %272 : vector<16x128xi32>
    %c32_i32_106 = arith.constant 32 : i32
    %274 = vector.broadcast %c32_i32_106 : i32 to vector<16x128xi32>
    %275 = arith.cmpi slt, %273, %274 : vector<16x128xi32>
    %276 = arith.andi %271, %275 : vector<16x128xi1>
    %cst_107 = arith.constant 0.000000e+00 : f32
    %277 = vector.broadcast %cst_107 : f32 to vector<16x128xf32>
    %278 = arith.select %276, %264, %277 : vector<16x128xi1>, vector<16x128xf32>
    %c126_i32_108 = arith.constant 126 : i32
    %279 = tpu.dynamic_rotate %231 by %c126_i32_108 dim 1 : vector<16x128xf32>, i32 -> vector<16x128xf32>
    %c32_i32_109 = arith.constant 32 : i32
    %280 = vector.broadcast %c32_i32_109 : i32 to vector<16x128xi32>
    %281 = arith.cmpi slt, %233, %280 : vector<16x128xi32>
    %c2_i32_110 = arith.constant 2 : i32
    %282 = vector.broadcast %c2_i32_110 : i32 to vector<16x128xi32>
    %283 = arith.addi %233, %282 : vector<16x128xi32>
    %c0_i32_111 = arith.constant 0 : i32
    %284 = vector.broadcast %c0_i32_111 : i32 to vector<16x128xi32>
    %285 = arith.cmpi sge, %283, %284 : vector<16x128xi32>
    %286 = arith.andi %281, %285 : vector<16x128xi1>
    %c2_i32_112 = arith.constant 2 : i32
    %287 = vector.broadcast %c2_i32_112 : i32 to vector<16x128xi32>
    %288 = arith.addi %233, %287 : vector<16x128xi32>
    %c32_i32_113 = arith.constant 32 : i32
    %289 = vector.broadcast %c32_i32_113 : i32 to vector<16x128xi32>
    %290 = arith.cmpi slt, %288, %289 : vector<16x128xi32>
    %291 = arith.andi %286, %290 : vector<16x128xi1>
    %cst_114 = arith.constant 0.000000e+00 : f32
    %292 = vector.broadcast %cst_114 : f32 to vector<16x128xf32>
    %293 = arith.select %291, %279, %292 : vector<16x128xi1>, vector<16x128xf32>
    %294 = tpu.concatenate %248, %263, %231, %278, %293 in 0 : vector<16x128xf32>, vector<16x128xf32>, vector<16x128xf32>, vector<16x128xf32>, vector<16x128xf32> -> vector<80x128xf32>
    %cst_115 = arith.constant dense<0.000000e+00> : vector<32x128xf32>
    %295 = tpu.matmul %232, %294, %cst_115 {dimension_numbers = #tpu.dot_dimension_numbers<[1], [0], [0], [1], [0, 0, 1, 1], [], []>} : vector<32x80xf32>, vector<80x128xf32>, vector<32x128xf32> -> vector<32x128xf32>
    %cst_116 = arith.constant 0.000000e+00 : f32
    %296 = vector.broadcast %cst_116 : f32 to vector<32x128xf32>
    %297 = arith.maximumf %295, %296 : vector<32x128xf32>
    %c0_117 = arith.constant 0 : index
    %c0_118 = arith.constant 0 : index
    %298 = vector.load %arg5[%c0_117, %c0_118] : memref<32x160xf32, #tpu.memory_space<vmem>>, vector<32x160xf32>
    %299 = tpu.iota {dimensions = array<i32: 1>} : vector<32x128xi32>
    %c2_i32_119 = arith.constant 2 : i32
    %300 = tpu.dynamic_rotate %297 by %c2_i32_119 dim 1 : vector<32x128xf32>, i32 -> vector<32x128xf32>
    %c32_i32_120 = arith.constant 32 : i32
    %301 = vector.broadcast %c32_i32_120 : i32 to vector<32x128xi32>
    %302 = arith.cmpi slt, %299, %301 : vector<32x128xi32>
    %c-2_i32_121 = arith.constant -2 : i32
    %303 = vector.broadcast %c-2_i32_121 : i32 to vector<32x128xi32>
    %304 = arith.addi %299, %303 : vector<32x128xi32>
    %c0_i32_122 = arith.constant 0 : i32
    %305 = vector.broadcast %c0_i32_122 : i32 to vector<32x128xi32>
    %306 = arith.cmpi sge, %304, %305 : vector<32x128xi32>
    %307 = arith.andi %302, %306 : vector<32x128xi1>
    %c-2_i32_123 = arith.constant -2 : i32
    %308 = vector.broadcast %c-2_i32_123 : i32 to vector<32x128xi32>
    %309 = arith.addi %299, %308 : vector<32x128xi32>
    %c32_i32_124 = arith.constant 32 : i32
    %310 = vector.broadcast %c32_i32_124 : i32 to vector<32x128xi32>
    %311 = arith.cmpi slt, %309, %310 : vector<32x128xi32>
    %312 = arith.andi %307, %311 : vector<32x128xi1>
    %cst_125 = arith.constant 0.000000e+00 : f32
    %313 = vector.broadcast %cst_125 : f32 to vector<32x128xf32>
    %314 = arith.select %312, %300, %313 : vector<32x128xi1>, vector<32x128xf32>
    %c1_i32_126 = arith.constant 1 : i32
    %315 = tpu.dynamic_rotate %297 by %c1_i32_126 dim 1 : vector<32x128xf32>, i32 -> vector<32x128xf32>
    %c32_i32_127 = arith.constant 32 : i32
    %316 = vector.broadcast %c32_i32_127 : i32 to vector<32x128xi32>
    %317 = arith.cmpi slt, %299, %316 : vector<32x128xi32>
    %c-1_i32_128 = arith.constant -1 : i32
    %318 = vector.broadcast %c-1_i32_128 : i32 to vector<32x128xi32>
    %319 = arith.addi %299, %318 : vector<32x128xi32>
    %c0_i32_129 = arith.constant 0 : i32
    %320 = vector.broadcast %c0_i32_129 : i32 to vector<32x128xi32>
    %321 = arith.cmpi sge, %319, %320 : vector<32x128xi32>
    %322 = arith.andi %317, %321 : vector<32x128xi1>
    %c-1_i32_130 = arith.constant -1 : i32
    %323 = vector.broadcast %c-1_i32_130 : i32 to vector<32x128xi32>
    %324 = arith.addi %299, %323 : vector<32x128xi32>
    %c32_i32_131 = arith.constant 32 : i32
    %325 = vector.broadcast %c32_i32_131 : i32 to vector<32x128xi32>
    %326 = arith.cmpi slt, %324, %325 : vector<32x128xi32>
    %327 = arith.andi %322, %326 : vector<32x128xi1>
    %cst_132 = arith.constant 0.000000e+00 : f32
    %328 = vector.broadcast %cst_132 : f32 to vector<32x128xf32>
    %329 = arith.select %327, %315, %328 : vector<32x128xi1>, vector<32x128xf32>
    %c127_i32_133 = arith.constant 127 : i32
    %330 = tpu.dynamic_rotate %297 by %c127_i32_133 dim 1 : vector<32x128xf32>, i32 -> vector<32x128xf32>
    %c32_i32_134 = arith.constant 32 : i32
    %331 = vector.broadcast %c32_i32_134 : i32 to vector<32x128xi32>
    %332 = arith.cmpi slt, %299, %331 : vector<32x128xi32>
    %c1_i32_135 = arith.constant 1 : i32
    %333 = vector.broadcast %c1_i32_135 : i32 to vector<32x128xi32>
    %334 = arith.addi %299, %333 : vector<32x128xi32>
    %c0_i32_136 = arith.constant 0 : i32
    %335 = vector.broadcast %c0_i32_136 : i32 to vector<32x128xi32>
    %336 = arith.cmpi sge, %334, %335 : vector<32x128xi32>
    %337 = arith.andi %332, %336 : vector<32x128xi1>
    %c1_i32_137 = arith.constant 1 : i32
    %338 = vector.broadcast %c1_i32_137 : i32 to vector<32x128xi32>
    %339 = arith.addi %299, %338 : vector<32x128xi32>
    %c32_i32_138 = arith.constant 32 : i32
    %340 = vector.broadcast %c32_i32_138 : i32 to vector<32x128xi32>
    %341 = arith.cmpi slt, %339, %340 : vector<32x128xi32>
    %342 = arith.andi %337, %341 : vector<32x128xi1>
    %cst_139 = arith.constant 0.000000e+00 : f32
    %343 = vector.broadcast %cst_139 : f32 to vector<32x128xf32>
    %344 = arith.select %342, %330, %343 : vector<32x128xi1>, vector<32x128xf32>
    %c126_i32_140 = arith.constant 126 : i32
    %345 = tpu.dynamic_rotate %297 by %c126_i32_140 dim 1 : vector<32x128xf32>, i32 -> vector<32x128xf32>
    %c32_i32_141 = arith.constant 32 : i32
    %346 = vector.broadcast %c32_i32_141 : i32 to vector<32x128xi32>
    %347 = arith.cmpi slt, %299, %346 : vector<32x128xi32>
    %c2_i32_142 = arith.constant 2 : i32
    %348 = vector.broadcast %c2_i32_142 : i32 to vector<32x128xi32>
    %349 = arith.addi %299, %348 : vector<32x128xi32>
    %c0_i32_143 = arith.constant 0 : i32
    %350 = vector.broadcast %c0_i32_143 : i32 to vector<32x128xi32>
    %351 = arith.cmpi sge, %349, %350 : vector<32x128xi32>
    %352 = arith.andi %347, %351 : vector<32x128xi1>
    %c2_i32_144 = arith.constant 2 : i32
    %353 = vector.broadcast %c2_i32_144 : i32 to vector<32x128xi32>
    %354 = arith.addi %299, %353 : vector<32x128xi32>
    %c32_i32_145 = arith.constant 32 : i32
    %355 = vector.broadcast %c32_i32_145 : i32 to vector<32x128xi32>
    %356 = arith.cmpi slt, %354, %355 : vector<32x128xi32>
    %357 = arith.andi %352, %356 : vector<32x128xi1>
    %cst_146 = arith.constant 0.000000e+00 : f32
    %358 = vector.broadcast %cst_146 : f32 to vector<32x128xf32>
    %359 = arith.select %357, %345, %358 : vector<32x128xi1>, vector<32x128xf32>
    %360 = tpu.concatenate %314, %329, %297, %344, %359 in 0 : vector<32x128xf32>, vector<32x128xf32>, vector<32x128xf32>, vector<32x128xf32>, vector<32x128xf32> -> vector<160x128xf32>
    %cst_147 = arith.constant dense<0.000000e+00> : vector<32x128xf32>
    %361 = tpu.matmul %298, %360, %cst_147 {dimension_numbers = #tpu.dot_dimension_numbers<[1], [0], [0], [1], [0, 0, 1, 1], [], []>} : vector<32x160xf32>, vector<160x128xf32>, vector<32x128xf32> -> vector<32x128xf32>
    %cst_148 = arith.constant 0.000000e+00 : f32
    %362 = vector.broadcast %cst_148 : f32 to vector<32x128xf32>
    %363 = arith.maximumf %361, %362 : vector<32x128xf32>
    %c0_149 = arith.constant 0 : index
    %c0_150 = arith.constant 0 : index
    %364 = vector.load %arg15[%c0_149, %c0_150] : memref<128x128xf32, #tpu.memory_space<vmem>>, vector<128x128xf32>
    %c127_i32_151 = arith.constant 127 : i32
    %365 = tpu.dynamic_rotate %363 by %c127_i32_151 dim 1 : vector<32x128xf32>, i32 -> vector<32x128xf32>
    %366 = arith.maximumf %363, %365 : vector<32x128xf32>
    %c126_i32_152 = arith.constant 126 : i32
    %367 = tpu.dynamic_rotate %366 by %c126_i32_152 dim 1 : vector<32x128xf32>, i32 -> vector<32x128xf32>
    %368 = arith.maximumf %366, %367 : vector<32x128xf32>
    %cst_153 = arith.constant dense<0.000000e+00> : vector<32x128xf32>
    %369 = tpu.matmul %368, %364, %cst_153 {dimension_numbers = #tpu.dot_dimension_numbers<[1], [0], [0], [1], [0, 0, 1, 1], [], []>} : vector<32x128xf32>, vector<128x128xf32>, vector<32x128xf32> -> vector<32x128xf32>
    %c0_154 = arith.constant 0 : index
    %c0_155 = arith.constant 0 : index
    %370 = vector.load %arg6[%c0_154, %c0_155] : memref<64x96xf32, #tpu.memory_space<vmem>>, vector<64x96xf32>
    %371 = tpu.iota {dimensions = array<i32: 1>} : vector<32x128xi32>
    %c1_i32_156 = arith.constant 1 : i32
    %372 = tpu.dynamic_rotate %369 by %c1_i32_156 dim 1 : vector<32x128xf32>, i32 -> vector<32x128xf32>
    %c8_i32 = arith.constant 8 : i32
    %373 = vector.broadcast %c8_i32 : i32 to vector<32x128xi32>
    %374 = arith.cmpi slt, %371, %373 : vector<32x128xi32>
    %c-1_i32_157 = arith.constant -1 : i32
    %375 = vector.broadcast %c-1_i32_157 : i32 to vector<32x128xi32>
    %376 = arith.addi %371, %375 : vector<32x128xi32>
    %c0_i32_158 = arith.constant 0 : i32
    %377 = vector.broadcast %c0_i32_158 : i32 to vector<32x128xi32>
    %378 = arith.cmpi sge, %376, %377 : vector<32x128xi32>
    %379 = arith.andi %374, %378 : vector<32x128xi1>
    %c-1_i32_159 = arith.constant -1 : i32
    %380 = vector.broadcast %c-1_i32_159 : i32 to vector<32x128xi32>
    %381 = arith.addi %371, %380 : vector<32x128xi32>
    %c8_i32_160 = arith.constant 8 : i32
    %382 = vector.broadcast %c8_i32_160 : i32 to vector<32x128xi32>
    %383 = arith.cmpi slt, %381, %382 : vector<32x128xi32>
    %384 = arith.andi %379, %383 : vector<32x128xi1>
    %cst_161 = arith.constant 0.000000e+00 : f32
    %385 = vector.broadcast %cst_161 : f32 to vector<32x128xf32>
    %386 = arith.select %384, %372, %385 : vector<32x128xi1>, vector<32x128xf32>
    %c127_i32_162 = arith.constant 127 : i32
    %387 = tpu.dynamic_rotate %369 by %c127_i32_162 dim 1 : vector<32x128xf32>, i32 -> vector<32x128xf32>
    %c8_i32_163 = arith.constant 8 : i32
    %388 = vector.broadcast %c8_i32_163 : i32 to vector<32x128xi32>
    %389 = arith.cmpi slt, %371, %388 : vector<32x128xi32>
    %c1_i32_164 = arith.constant 1 : i32
    %390 = vector.broadcast %c1_i32_164 : i32 to vector<32x128xi32>
    %391 = arith.addi %371, %390 : vector<32x128xi32>
    %c0_i32_165 = arith.constant 0 : i32
    %392 = vector.broadcast %c0_i32_165 : i32 to vector<32x128xi32>
    %393 = arith.cmpi sge, %391, %392 : vector<32x128xi32>
    %394 = arith.andi %389, %393 : vector<32x128xi1>
    %c1_i32_166 = arith.constant 1 : i32
    %395 = vector.broadcast %c1_i32_166 : i32 to vector<32x128xi32>
    %396 = arith.addi %371, %395 : vector<32x128xi32>
    %c8_i32_167 = arith.constant 8 : i32
    %397 = vector.broadcast %c8_i32_167 : i32 to vector<32x128xi32>
    %398 = arith.cmpi slt, %396, %397 : vector<32x128xi32>
    %399 = arith.andi %394, %398 : vector<32x128xi1>
    %cst_168 = arith.constant 0.000000e+00 : f32
    %400 = vector.broadcast %cst_168 : f32 to vector<32x128xf32>
    %401 = arith.select %399, %387, %400 : vector<32x128xi1>, vector<32x128xf32>
    %402 = tpu.concatenate %386, %369, %401 in 0 : vector<32x128xf32>, vector<32x128xf32>, vector<32x128xf32> -> vector<96x128xf32>
    %cst_169 = arith.constant dense<0.000000e+00> : vector<64x128xf32>
    %403 = tpu.matmul %370, %402, %cst_169 {dimension_numbers = #tpu.dot_dimension_numbers<[1], [0], [0], [1], [0, 0, 1, 1], [], []>} : vector<64x96xf32>, vector<96x128xf32>, vector<64x128xf32> -> vector<64x128xf32>
    %cst_170 = arith.constant 0.000000e+00 : f32
    %404 = vector.broadcast %cst_170 : f32 to vector<64x128xf32>
    %405 = arith.maximumf %403, %404 : vector<64x128xf32>
    %c0_171 = arith.constant 0 : index
    %c0_172 = arith.constant 0 : index
    %406 = vector.load %arg7[%c0_171, %c0_172] : memref<64x192xf32, #tpu.memory_space<vmem>>, vector<64x192xf32>
    %407 = tpu.iota {dimensions = array<i32: 1>} : vector<64x128xi32>
    %c1_i32_173 = arith.constant 1 : i32
    %408 = tpu.dynamic_rotate %405 by %c1_i32_173 dim 1 : vector<64x128xf32>, i32 -> vector<64x128xf32>
    %c8_i32_174 = arith.constant 8 : i32
    %409 = vector.broadcast %c8_i32_174 : i32 to vector<64x128xi32>
    %410 = arith.cmpi slt, %407, %409 : vector<64x128xi32>
    %c-1_i32_175 = arith.constant -1 : i32
    %411 = vector.broadcast %c-1_i32_175 : i32 to vector<64x128xi32>
    %412 = arith.addi %407, %411 : vector<64x128xi32>
    %c0_i32_176 = arith.constant 0 : i32
    %413 = vector.broadcast %c0_i32_176 : i32 to vector<64x128xi32>
    %414 = arith.cmpi sge, %412, %413 : vector<64x128xi32>
    %415 = arith.andi %410, %414 : vector<64x128xi1>
    %c-1_i32_177 = arith.constant -1 : i32
    %416 = vector.broadcast %c-1_i32_177 : i32 to vector<64x128xi32>
    %417 = arith.addi %407, %416 : vector<64x128xi32>
    %c8_i32_178 = arith.constant 8 : i32
    %418 = vector.broadcast %c8_i32_178 : i32 to vector<64x128xi32>
    %419 = arith.cmpi slt, %417, %418 : vector<64x128xi32>
    %420 = arith.andi %415, %419 : vector<64x128xi1>
    %cst_179 = arith.constant 0.000000e+00 : f32
    %421 = vector.broadcast %cst_179 : f32 to vector<64x128xf32>
    %422 = arith.select %420, %408, %421 : vector<64x128xi1>, vector<64x128xf32>
    %c127_i32_180 = arith.constant 127 : i32
    %423 = tpu.dynamic_rotate %405 by %c127_i32_180 dim 1 : vector<64x128xf32>, i32 -> vector<64x128xf32>
    %c8_i32_181 = arith.constant 8 : i32
    %424 = vector.broadcast %c8_i32_181 : i32 to vector<64x128xi32>
    %425 = arith.cmpi slt, %407, %424 : vector<64x128xi32>
    %c1_i32_182 = arith.constant 1 : i32
    %426 = vector.broadcast %c1_i32_182 : i32 to vector<64x128xi32>
    %427 = arith.addi %407, %426 : vector<64x128xi32>
    %c0_i32_183 = arith.constant 0 : i32
    %428 = vector.broadcast %c0_i32_183 : i32 to vector<64x128xi32>
    %429 = arith.cmpi sge, %427, %428 : vector<64x128xi32>
    %430 = arith.andi %425, %429 : vector<64x128xi1>
    %c1_i32_184 = arith.constant 1 : i32
    %431 = vector.broadcast %c1_i32_184 : i32 to vector<64x128xi32>
    %432 = arith.addi %407, %431 : vector<64x128xi32>
    %c8_i32_185 = arith.constant 8 : i32
    %433 = vector.broadcast %c8_i32_185 : i32 to vector<64x128xi32>
    %434 = arith.cmpi slt, %432, %433 : vector<64x128xi32>
    %435 = arith.andi %430, %434 : vector<64x128xi1>
    %cst_186 = arith.constant 0.000000e+00 : f32
    %436 = vector.broadcast %cst_186 : f32 to vector<64x128xf32>
    %437 = arith.select %435, %423, %436 : vector<64x128xi1>, vector<64x128xf32>
    %438 = tpu.concatenate %422, %405, %437 in 0 : vector<64x128xf32>, vector<64x128xf32>, vector<64x128xf32> -> vector<192x128xf32>
    %cst_187 = arith.constant dense<0.000000e+00> : vector<64x128xf32>
    %439 = tpu.matmul %406, %438, %cst_187 {dimension_numbers = #tpu.dot_dimension_numbers<[1], [0], [0], [1], [0, 0, 1, 1], [], []>} : vector<64x192xf32>, vector<192x128xf32>, vector<64x128xf32> -> vector<64x128xf32>
    %cst_188 = arith.constant 0.000000e+00 : f32
    %440 = vector.broadcast %cst_188 : f32 to vector<64x128xf32>
    %441 = arith.maximumf %439, %440 : vector<64x128xf32>
    %c0_189 = arith.constant 0 : index
    %c0_190 = arith.constant 0 : index
    %442 = vector.load %arg11[%c0_189, %c0_190] : memref<16x3xf32, #tpu.memory_space<vmem>>, vector<16x3xf32>
    %443 = tpu.iota {dimensions = array<i32: 0>} : vector<16x1xi32>
    %cst_191 = arith.constant dense<0.000000e+00> : vector<16xf32>
    %444 = vector.multi_reduction <add>, %225, %cst_191 [1] : vector<16x128xf32> to vector<16xf32>
    %445 = vector.shape_cast %444 : vector<16xf32> to vector<16x1xf32>
    %cst_192 = arith.constant 7.812500e-03 : f32
    %446 = vector.broadcast %cst_192 : f32 to vector<16x1xf32>
    %447 = arith.mulf %445, %446 : vector<16x1xf32>
    %c1_i32_193 = arith.constant 1 : i32
    %448 = tpu.dynamic_rotate %225 by %c1_i32_193 dim 0 : vector<16x128xf32>, i32 -> vector<16x128xf32>
    %cst_194 = arith.constant dense<0.000000e+00> : vector<16xf32>
    %449 = vector.multi_reduction <add>, %448, %cst_194 [1] : vector<16x128xf32> to vector<16xf32>
    %450 = vector.shape_cast %449 : vector<16xf32> to vector<16x1xf32>
    %cst_195 = arith.constant 7.812500e-03 : f32
    %451 = vector.broadcast %cst_195 : f32 to vector<16x1xf32>
    %452 = arith.mulf %450, %451 : vector<16x1xf32>
    %c15_i32 = arith.constant 15 : i32
    %453 = tpu.dynamic_rotate %225 by %c15_i32 dim 0 : vector<16x128xf32>, i32 -> vector<16x128xf32>
    %cst_196 = arith.constant dense<0.000000e+00> : vector<16xf32>
    %454 = vector.multi_reduction <add>, %453, %cst_196 [1] : vector<16x128xf32> to vector<16xf32>
    %455 = vector.shape_cast %454 : vector<16xf32> to vector<16x1xf32>
    %cst_197 = arith.constant 7.812500e-03 : f32
    %456 = vector.broadcast %cst_197 : f32 to vector<16x1xf32>
    %457 = arith.mulf %455, %456 : vector<16x1xf32>
    %c0_i32_198 = arith.constant 0 : i32
    %458 = vector.broadcast %c0_i32_198 : i32 to vector<16x1xi32>
    %459 = arith.cmpi sgt, %443, %458 : vector<16x1xi32>
    %cst_199 = arith.constant 0.000000e+00 : f32
    %460 = vector.broadcast %cst_199 : f32 to vector<16x1xf32>
    %461 = arith.select %459, %452, %460 : vector<16x1xi1>, vector<16x1xf32>
    %c15_i32_200 = arith.constant 15 : i32
    %462 = vector.broadcast %c15_i32_200 : i32 to vector<16x1xi32>
    %463 = arith.cmpi slt, %443, %462 : vector<16x1xi32>
    %cst_201 = arith.constant 0.000000e+00 : f32
    %464 = vector.broadcast %cst_201 : f32 to vector<16x1xf32>
    %465 = arith.select %463, %457, %464 : vector<16x1xi1>, vector<16x1xf32>
    %466 = vector.extract_strided_slice %442 {offsets = [0, 0], sizes = [16, 1], strides = [1, 1]} : vector<16x3xf32> to vector<16x1xf32>
    %467 = arith.mulf %466, %461 : vector<16x1xf32>
    %468 = vector.extract_strided_slice %442 {offsets = [0, 1], sizes = [16, 1], strides = [1, 1]} : vector<16x3xf32> to vector<16x1xf32>
    %469 = arith.mulf %468, %447 : vector<16x1xf32>
    %470 = arith.addf %467, %469 : vector<16x1xf32>
    %471 = vector.extract_strided_slice %442 {offsets = [0, 2], sizes = [16, 1], strides = [1, 1]} : vector<16x3xf32> to vector<16x1xf32>
    %472 = arith.mulf %471, %465 : vector<16x1xf32>
    %473 = arith.addf %470, %472 : vector<16x1xf32>
    %474 = arith.negf %473 : vector<16x1xf32>
    %475 = math.exp %474 : vector<16x1xf32>
    %cst_202 = arith.constant 1.000000e+00 : f32
    %476 = vector.broadcast %cst_202 : f32 to vector<16x1xf32>
    %477 = arith.addf %476, %475 : vector<16x1xf32>
    %478 = arith.divf %476, %477 : vector<16x1xf32>
    %479 = vector.broadcast %478 : vector<16x1xf32> to vector<16x128xf32>
    %480 = arith.mulf %225, %479 : vector<16x128xf32>
    %481 = arith.addf %480, %225 : vector<16x128xf32>
    %c0_203 = arith.constant 0 : index
    %c0_204 = arith.constant 0 : index
    %482 = vector.load %arg8[%c0_203, %c0_204] : memref<32x16xf32, #tpu.memory_space<vmem>>, vector<32x16xf32>
    %cst_205 = arith.constant dense<0.000000e+00> : vector<32x128xf32>
    %483 = tpu.matmul %482, %481, %cst_205 {dimension_numbers = #tpu.dot_dimension_numbers<[1], [0], [0], [1], [0, 0, 1, 1], [], []>} : vector<32x16xf32>, vector<16x128xf32>, vector<32x128xf32> -> vector<32x128xf32>
    %cst_206 = arith.constant 0.000000e+00 : f32
    %484 = vector.broadcast %cst_206 : f32 to vector<32x128xf32>
    %485 = arith.maximumf %483, %484 : vector<32x128xf32>
    %c0_207 = arith.constant 0 : index
    %c0_208 = arith.constant 0 : index
    %486 = vector.load %arg14[%c0_207, %c0_208] : memref<128x128xf32, #tpu.memory_space<vmem>>, vector<128x128xf32>
    %c127_i32_209 = arith.constant 127 : i32
    %487 = tpu.dynamic_rotate %485 by %c127_i32_209 dim 1 : vector<32x128xf32>, i32 -> vector<32x128xf32>
    %488 = arith.maximumf %485, %487 : vector<32x128xf32>
    %c126_i32_210 = arith.constant 126 : i32
    %489 = tpu.dynamic_rotate %488 by %c126_i32_210 dim 1 : vector<32x128xf32>, i32 -> vector<32x128xf32>
    %490 = arith.maximumf %488, %489 : vector<32x128xf32>
    %cst_211 = arith.constant dense<0.000000e+00> : vector<32x128xf32>
    %491 = tpu.matmul %490, %486, %cst_211 {dimension_numbers = #tpu.dot_dimension_numbers<[1], [0], [0], [1], [0, 0, 1, 1], [], []>} : vector<32x128xf32>, vector<128x128xf32>, vector<32x128xf32> -> vector<32x128xf32>
    %492 = arith.addf %363, %491 : vector<32x128xf32>
    %c0_212 = arith.constant 0 : index
    %c0_213 = arith.constant 0 : index
    %493 = vector.load %arg12[%c0_212, %c0_213] : memref<32x3xf32, #tpu.memory_space<vmem>>, vector<32x3xf32>
    %494 = tpu.iota {dimensions = array<i32: 0>} : vector<32x1xi32>
    %cst_214 = arith.constant dense<0.000000e+00> : vector<32xf32>
    %495 = vector.multi_reduction <add>, %492, %cst_214 [1] : vector<32x128xf32> to vector<32xf32>
    %496 = vector.shape_cast %495 : vector<32xf32> to vector<32x1xf32>
    %cst_215 = arith.constant 3.125000e-02 : f32
    %497 = vector.broadcast %cst_215 : f32 to vector<32x1xf32>
    %498 = arith.mulf %496, %497 : vector<32x1xf32>
    %c1_i32_216 = arith.constant 1 : i32
    %499 = tpu.dynamic_rotate %492 by %c1_i32_216 dim 0 : vector<32x128xf32>, i32 -> vector<32x128xf32>
    %cst_217 = arith.constant dense<0.000000e+00> : vector<32xf32>
    %500 = vector.multi_reduction <add>, %499, %cst_217 [1] : vector<32x128xf32> to vector<32xf32>
    %501 = vector.shape_cast %500 : vector<32xf32> to vector<32x1xf32>
    %cst_218 = arith.constant 3.125000e-02 : f32
    %502 = vector.broadcast %cst_218 : f32 to vector<32x1xf32>
    %503 = arith.mulf %501, %502 : vector<32x1xf32>
    %c31_i32 = arith.constant 31 : i32
    %504 = tpu.dynamic_rotate %492 by %c31_i32 dim 0 : vector<32x128xf32>, i32 -> vector<32x128xf32>
    %cst_219 = arith.constant dense<0.000000e+00> : vector<32xf32>
    %505 = vector.multi_reduction <add>, %504, %cst_219 [1] : vector<32x128xf32> to vector<32xf32>
    %506 = vector.shape_cast %505 : vector<32xf32> to vector<32x1xf32>
    %cst_220 = arith.constant 3.125000e-02 : f32
    %507 = vector.broadcast %cst_220 : f32 to vector<32x1xf32>
    %508 = arith.mulf %506, %507 : vector<32x1xf32>
    %c0_i32_221 = arith.constant 0 : i32
    %509 = vector.broadcast %c0_i32_221 : i32 to vector<32x1xi32>
    %510 = arith.cmpi sgt, %494, %509 : vector<32x1xi32>
    %cst_222 = arith.constant 0.000000e+00 : f32
    %511 = vector.broadcast %cst_222 : f32 to vector<32x1xf32>
    %512 = arith.select %510, %503, %511 : vector<32x1xi1>, vector<32x1xf32>
    %c31_i32_223 = arith.constant 31 : i32
    %513 = vector.broadcast %c31_i32_223 : i32 to vector<32x1xi32>
    %514 = arith.cmpi slt, %494, %513 : vector<32x1xi32>
    %cst_224 = arith.constant 0.000000e+00 : f32
    %515 = vector.broadcast %cst_224 : f32 to vector<32x1xf32>
    %516 = arith.select %514, %508, %515 : vector<32x1xi1>, vector<32x1xf32>
    %517 = vector.extract_strided_slice %493 {offsets = [0, 0], sizes = [32, 1], strides = [1, 1]} : vector<32x3xf32> to vector<32x1xf32>
    %518 = arith.mulf %517, %512 : vector<32x1xf32>
    %519 = vector.extract_strided_slice %493 {offsets = [0, 1], sizes = [32, 1], strides = [1, 1]} : vector<32x3xf32> to vector<32x1xf32>
    %520 = arith.mulf %519, %498 : vector<32x1xf32>
    %521 = arith.addf %518, %520 : vector<32x1xf32>
    %522 = vector.extract_strided_slice %493 {offsets = [0, 2], sizes = [32, 1], strides = [1, 1]} : vector<32x3xf32> to vector<32x1xf32>
    %523 = arith.mulf %522, %516 : vector<32x1xf32>
    %524 = arith.addf %521, %523 : vector<32x1xf32>
    %525 = arith.negf %524 : vector<32x1xf32>
    %526 = math.exp %525 : vector<32x1xf32>
    %cst_225 = arith.constant 1.000000e+00 : f32
    %527 = vector.broadcast %cst_225 : f32 to vector<32x1xf32>
    %528 = arith.addf %527, %526 : vector<32x1xf32>
    %529 = arith.divf %527, %528 : vector<32x1xf32>
    %530 = vector.broadcast %529 : vector<32x1xf32> to vector<32x128xf32>
    %531 = arith.mulf %492, %530 : vector<32x128xf32>
    %532 = arith.addf %531, %492 : vector<32x128xf32>
    %c0_226 = arith.constant 0 : index
    %c0_227 = arith.constant 0 : index
    %533 = vector.load %arg9[%c0_226, %c0_227] : memref<64x32xf32, #tpu.memory_space<vmem>>, vector<64x32xf32>
    %cst_228 = arith.constant dense<0.000000e+00> : vector<64x128xf32>
    %534 = tpu.matmul %533, %532, %cst_228 {dimension_numbers = #tpu.dot_dimension_numbers<[1], [0], [0], [1], [0, 0, 1, 1], [], []>} : vector<64x32xf32>, vector<32x128xf32>, vector<64x128xf32> -> vector<64x128xf32>
    %cst_229 = arith.constant 0.000000e+00 : f32
    %535 = vector.broadcast %cst_229 : f32 to vector<64x128xf32>
    %536 = arith.maximumf %534, %535 : vector<64x128xf32>
    %c0_230 = arith.constant 0 : index
    %c0_231 = arith.constant 0 : index
    %537 = vector.load %arg15[%c0_230, %c0_231] : memref<128x128xf32, #tpu.memory_space<vmem>>, vector<128x128xf32>
    %c127_i32_232 = arith.constant 127 : i32
    %538 = tpu.dynamic_rotate %536 by %c127_i32_232 dim 1 : vector<64x128xf32>, i32 -> vector<64x128xf32>
    %539 = arith.maximumf %536, %538 : vector<64x128xf32>
    %c126_i32_233 = arith.constant 126 : i32
    %540 = tpu.dynamic_rotate %539 by %c126_i32_233 dim 1 : vector<64x128xf32>, i32 -> vector<64x128xf32>
    %541 = arith.maximumf %539, %540 : vector<64x128xf32>
    %cst_234 = arith.constant dense<0.000000e+00> : vector<64x128xf32>
    %542 = tpu.matmul %541, %537, %cst_234 {dimension_numbers = #tpu.dot_dimension_numbers<[1], [0], [0], [1], [0, 0, 1, 1], [], []>} : vector<64x128xf32>, vector<128x128xf32>, vector<64x128xf32> -> vector<64x128xf32>
    %543 = arith.addf %441, %542 : vector<64x128xf32>
    %c0_235 = arith.constant 0 : index
    %c0_236 = arith.constant 0 : index
    %544 = vector.load %arg13[%c0_235, %c0_236] : memref<64x3xf32, #tpu.memory_space<vmem>>, vector<64x3xf32>
    %545 = tpu.iota {dimensions = array<i32: 0>} : vector<64x1xi32>
    %cst_237 = arith.constant dense<0.000000e+00> : vector<64xf32>
    %546 = vector.multi_reduction <add>, %543, %cst_237 [1] : vector<64x128xf32> to vector<64xf32>
    %547 = vector.shape_cast %546 : vector<64xf32> to vector<64x1xf32>
    %cst_238 = arith.constant 1.250000e-01 : f32
    %548 = vector.broadcast %cst_238 : f32 to vector<64x1xf32>
    %549 = arith.mulf %547, %548 : vector<64x1xf32>
    %c1_i32_239 = arith.constant 1 : i32
    %550 = tpu.dynamic_rotate %543 by %c1_i32_239 dim 0 : vector<64x128xf32>, i32 -> vector<64x128xf32>
    %cst_240 = arith.constant dense<0.000000e+00> : vector<64xf32>
    %551 = vector.multi_reduction <add>, %550, %cst_240 [1] : vector<64x128xf32> to vector<64xf32>
    %552 = vector.shape_cast %551 : vector<64xf32> to vector<64x1xf32>
    %cst_241 = arith.constant 1.250000e-01 : f32
    %553 = vector.broadcast %cst_241 : f32 to vector<64x1xf32>
    %554 = arith.mulf %552, %553 : vector<64x1xf32>
    %c63_i32 = arith.constant 63 : i32
    %555 = tpu.dynamic_rotate %543 by %c63_i32 dim 0 : vector<64x128xf32>, i32 -> vector<64x128xf32>
    %cst_242 = arith.constant dense<0.000000e+00> : vector<64xf32>
    %556 = vector.multi_reduction <add>, %555, %cst_242 [1] : vector<64x128xf32> to vector<64xf32>
    %557 = vector.shape_cast %556 : vector<64xf32> to vector<64x1xf32>
    %cst_243 = arith.constant 1.250000e-01 : f32
    %558 = vector.broadcast %cst_243 : f32 to vector<64x1xf32>
    %559 = arith.mulf %557, %558 : vector<64x1xf32>
    %c0_i32_244 = arith.constant 0 : i32
    %560 = vector.broadcast %c0_i32_244 : i32 to vector<64x1xi32>
    %561 = arith.cmpi sgt, %545, %560 : vector<64x1xi32>
    %cst_245 = arith.constant 0.000000e+00 : f32
    %562 = vector.broadcast %cst_245 : f32 to vector<64x1xf32>
    %563 = arith.select %561, %554, %562 : vector<64x1xi1>, vector<64x1xf32>
    %c63_i32_246 = arith.constant 63 : i32
    %564 = vector.broadcast %c63_i32_246 : i32 to vector<64x1xi32>
    %565 = arith.cmpi slt, %545, %564 : vector<64x1xi32>
    %cst_247 = arith.constant 0.000000e+00 : f32
    %566 = vector.broadcast %cst_247 : f32 to vector<64x1xf32>
    %567 = arith.select %565, %559, %566 : vector<64x1xi1>, vector<64x1xf32>
    %568 = vector.extract_strided_slice %544 {offsets = [0, 0], sizes = [64, 1], strides = [1, 1]} : vector<64x3xf32> to vector<64x1xf32>
    %569 = arith.mulf %568, %563 : vector<64x1xf32>
    %570 = vector.extract_strided_slice %544 {offsets = [0, 1], sizes = [64, 1], strides = [1, 1]} : vector<64x3xf32> to vector<64x1xf32>
    %571 = arith.mulf %570, %549 : vector<64x1xf32>
    %572 = arith.addf %569, %571 : vector<64x1xf32>
    %573 = vector.extract_strided_slice %544 {offsets = [0, 2], sizes = [64, 1], strides = [1, 1]} : vector<64x3xf32> to vector<64x1xf32>
    %574 = arith.mulf %573, %567 : vector<64x1xf32>
    %575 = arith.addf %572, %574 : vector<64x1xf32>
    %576 = arith.negf %575 : vector<64x1xf32>
    %577 = math.exp %576 : vector<64x1xf32>
    %cst_248 = arith.constant 1.000000e+00 : f32
    %578 = vector.broadcast %cst_248 : f32 to vector<64x1xf32>
    %579 = arith.addf %578, %577 : vector<64x1xf32>
    %580 = arith.divf %578, %579 : vector<64x1xf32>
    %581 = vector.broadcast %580 : vector<64x1xf32> to vector<64x128xf32>
    %582 = arith.mulf %543, %581 : vector<64x128xf32>
    %583 = arith.addf %582, %543 : vector<64x128xf32>
    %c0_249 = arith.constant 0 : index
    %c0_250 = arith.constant 0 : index
    %584 = vector.load %arg10[%c0_249, %c0_250] : memref<128x64xf32, #tpu.memory_space<vmem>>, vector<128x64xf32>
    %cst_251 = arith.constant dense<0.000000e+00> : vector<128x128xf32>
    %585 = tpu.matmul %584, %583, %cst_251 {dimension_numbers = #tpu.dot_dimension_numbers<[1], [0], [0], [1], [0, 0, 1, 1], [], []>} : vector<128x64xf32>, vector<64x128xf32>, vector<128x128xf32> -> vector<128x128xf32>
    %cst_252 = arith.constant 0.000000e+00 : f32
    %586 = vector.broadcast %cst_252 : f32 to vector<128x128xf32>
    %587 = arith.maximumf %585, %586 : vector<128x128xf32>
    %c0_253 = arith.constant 0 : index
    %c0_254 = arith.constant 0 : index
    %588 = vector.load %arg16[%c0_253, %c0_254] : memref<128x128xf32, #tpu.memory_space<vmem>>, vector<128x128xf32>
    %c127_i32_255 = arith.constant 127 : i32
    %589 = tpu.dynamic_rotate %587 by %c127_i32_255 dim 1 : vector<128x128xf32>, i32 -> vector<128x128xf32>
    %590 = arith.maximumf %587, %589 : vector<128x128xf32>
    %cst_256 = arith.constant dense<0.000000e+00> : vector<128x128xf32>
    %591 = tpu.matmul %590, %588, %cst_256 {dimension_numbers = #tpu.dot_dimension_numbers<[1], [0], [0], [1], [0, 0, 1, 1], [], []>} : vector<128x128xf32>, vector<128x128xf32>, vector<128x128xf32> -> vector<128x128xf32>
    %c0_257 = arith.constant 0 : index
    %c0_258 = arith.constant 0 : index
    %592 = vector.load %arg17[%c0_257, %c0_258] : memref<5x128xf32, #tpu.memory_space<vmem>>, vector<5x128xf32>
    %cst_259 = arith.constant dense<0.000000e+00> : vector<5x128xf32>
    %593 = tpu.matmul %592, %591, %cst_259 {dimension_numbers = #tpu.dot_dimension_numbers<[1], [0], [0], [1], [0, 0, 1, 1], [], []>} : vector<5x128xf32>, vector<128x128xf32>, vector<5x128xf32> -> vector<5x128xf32>
    %cst_260 = arith.constant dense<0.000000e+00> : vector<5xf32>
    %594 = vector.multi_reduction <add>, %593, %cst_260 [1] : vector<5x128xf32> to vector<5xf32>
    %595 = vector.shape_cast %594 : vector<5xf32> to vector<5x1xf32>
    %cst_261 = arith.constant 2.500000e-01 : f32
    %596 = vector.broadcast %cst_261 : f32 to vector<5x1xf32>
    %597 = arith.mulf %595, %596 : vector<5x1xf32>
    %c0_262 = arith.constant 0 : index
    %c0_263 = arith.constant 0 : index
    %598 = vector.load %arg18[%c0_262, %c0_263] : memref<5x1xf32, #tpu.memory_space<vmem>>, vector<5x1xf32>
    %599 = arith.addf %597, %598 : vector<5x1xf32>
    %c0_264 = arith.constant 0 : index
    %c0_265 = arith.constant 0 : index
    %c0_266 = arith.constant 0 : index
    %600 = vector.load %arg19[%c0_264, %c0_265, %c0_266] : memref<1x5x1xf32, #tpu.memory_space<vmem>>, vector<1x5x1xf32>
    %601 = vector.shape_cast %600 : vector<1x5x1xf32> to vector<5x1xf32>
    %602 = vector.shape_cast %599 : vector<5x1xf32> to vector<1x5x1xf32>
    tpu.vector_store %arg19[%c0_264, %c0_265, %c0_266], %602 {strides = array<i32>} : memref<1x5x1xf32, #tpu.memory_space<vmem>>, vector<1x5x1xf32>,
    return
  }
  func.func @transform_0(%arg0: i32) -> (i32, i32, i32) {
    %c0_i32 = arith.constant 0 : i32
    %c0_i32_0 = arith.constant 0 : i32
    %c0_i32_1 = arith.constant 0 : i32
    return %arg0, %c0_i32, %c0_i32_0 : i32, i32, i32
  }
  func.func @transform_1(%arg0: i32) -> (i32, i32) {
    %c0_i32 = arith.constant 0 : i32
    %c0_i32_0 = arith.constant 0 : i32
    %c0_i32_1 = arith.constant 0 : i32
    return %c0_i32, %c0_i32_0 : i32, i32
  }
  func.func @transform_2(%arg0: i32) -> (i32, i32) {
    %c0_i32 = arith.constant 0 : i32
    %c0_i32_0 = arith.constant 0 : i32
    %c0_i32_1 = arith.constant 0 : i32
    return %c0_i32, %c0_i32_0 : i32, i32
  }
  func.func @transform_3(%arg0: i32) -> (i32, i32) {
    %c0_i32 = arith.constant 0 : i32
    %c0_i32_0 = arith.constant 0 : i32
    %c0_i32_1 = arith.constant 0 : i32
    return %c0_i32, %c0_i32_0 : i32, i32
  }
  func.func @transform_4(%arg0: i32) -> (i32, i32) {
    %c0_i32 = arith.constant 0 : i32
    %c0_i32_0 = arith.constant 0 : i32
    %c0_i32_1 = arith.constant 0 : i32
    return %c0_i32, %c0_i32_0 : i32, i32
  }
  func.func @transform_5(%arg0: i32) -> (i32, i32) {
    %c0_i32 = arith.constant 0 : i32
    %c0_i32_0 = arith.constant 0 : i32
    %c0_i32_1 = arith.constant 0 : i32
    return %c0_i32, %c0_i32_0 : i32, i32
  }
  func.func @transform_6(%arg0: i32) -> (i32, i32) {
    %c0_i32 = arith.constant 0 : i32
    %c0_i32_0 = arith.constant 0 : i32
    %c0_i32_1 = arith.constant 0 : i32
    return %c0_i32, %c0_i32_0 : i32, i32
  }
  func.func @transform_7(%arg0: i32) -> (i32, i32) {
    %c0_i32 = arith.constant 0 : i32
    %c0_i32_0 = arith.constant 0 : i32
    %c0_i32_1 = arith.constant 0 : i32
    return %c0_i32, %c0_i32_0 : i32, i32
  }
  func.func @transform_8(%arg0: i32) -> (i32, i32) {
    %c0_i32 = arith.constant 0 : i32
    %c0_i32_0 = arith.constant 0 : i32
    %c0_i32_1 = arith.constant 0 : i32
    return %c0_i32, %c0_i32_0 : i32, i32
  }
  func.func @transform_9(%arg0: i32) -> (i32, i32) {
    %c0_i32 = arith.constant 0 : i32
    %c0_i32_0 = arith.constant 0 : i32
    %c0_i32_1 = arith.constant 0 : i32
    return %c0_i32, %c0_i32_0 : i32, i32
  }
  func.func @transform_10(%arg0: i32) -> (i32, i32) {
    %c0_i32 = arith.constant 0 : i32
    %c0_i32_0 = arith.constant 0 : i32
    %c0_i32_1 = arith.constant 0 : i32
    return %c0_i32, %c0_i32_0 : i32, i32
  }
  func.func @transform_11(%arg0: i32) -> (i32, i32) {
    %c0_i32 = arith.constant 0 : i32
    %c0_i32_0 = arith.constant 0 : i32
    %c0_i32_1 = arith.constant 0 : i32
    return %c0_i32, %c0_i32_0 : i32, i32
  }
  func.func @transform_12(%arg0: i32) -> (i32, i32) {
    %c0_i32 = arith.constant 0 : i32
    %c0_i32_0 = arith.constant 0 : i32
    %c0_i32_1 = arith.constant 0 : i32
    return %c0_i32, %c0_i32_0 : i32, i32
  }
  func.func @transform_13(%arg0: i32) -> (i32, i32) {
    %c0_i32 = arith.constant 0 : i32
    %c0_i32_0 = arith.constant 0 : i32
    %c0_i32_1 = arith.constant 0 : i32
    return %c0_i32, %c0_i32_0 : i32, i32
  }
  func.func @transform_14(%arg0: i32) -> (i32, i32) {
    %c0_i32 = arith.constant 0 : i32
    %c0_i32_0 = arith.constant 0 : i32
    %c0_i32_1 = arith.constant 0 : i32
    return %c0_i32, %c0_i32_0 : i32, i32
  }
  func.func @transform_15(%arg0: i32) -> (i32, i32) {
    %c0_i32 = arith.constant 0 : i32
    %c0_i32_0 = arith.constant 0 : i32
    %c0_i32_1 = arith.constant 0 : i32
    return %c0_i32, %c0_i32_0 : i32, i32
  }
  func.func @transform_16(%arg0: i32) -> (i32, i32) {
    %c0_i32 = arith.constant 0 : i32
    %c0_i32_0 = arith.constant 0 : i32
    %c0_i32_1 = arith.constant 0 : i32
    return %c0_i32, %c0_i32_0 : i32, i32
  }
  func.func @transform_17(%arg0: i32) -> (i32, i32) {
    %c0_i32 = arith.constant 0 : i32
    %c0_i32_0 = arith.constant 0 : i32
    %c0_i32_1 = arith.constant 0 : i32
    return %c0_i32, %c0_i32_0 : i32, i32
  }
  func.func @transform_18(%arg0: i32) -> (i32, i32, i32) {
    %c0_i32 = arith.constant 0 : i32
    %c0_i32_0 = arith.constant 0 : i32
    %c0_i32_1 = arith.constant 0 : i32
    return %arg0, %c0_i32, %c0_i32_0 : i32, i32, i32
  }
}

</mosaic_0001>

<bundles_post_ra>
// kernel: mtagn_forward.1
= control target key start
LH: loop header
LB: loop body
LE: loop exit
PB: predicated region body
PF: predicated region fallthrough
CT: control target
= control target key end

     0   :  { %s6253_s0 = inlined_call_operand.vmem [shape: f32[2,1,128], index: 0, kind: input, shape index: {}]   ;;  %s6254_s1 = inlined_call_operand.vmem [shape: f32[16,7], index: 1, kind: input, shape index: {}]   ;;  %s6255_s2 = inlined_call_operand.hbm [shape: f32[16,112], index: 2, kind: input, shape index: {}]   ;;  %s6256_s3 = inlined_call_operand.hbm [shape: f32[32,80], index: 3, kind: input, shape index: {}]   ;;  %s6257_s4 = inlined_call_operand.vmem [shape: f32[32,160], index: 4, kind: input, shape index: {}]   ;;  %s6258_s5 = inlined_call_operand.vmem [shape: f32[64,96], index: 5, kind: input, shape index: {}]   ;;  %s6259_s6 = inlined_call_operand.vmem [shape: f32[64,192], index: 6, kind: input, shape index: {}]   ;;  %s6260_s7 = inlined_call_operand.vmem [shape: f32[32,16], index: 7, kind: input, shape index: {}]   ;;  %s6261_s8 = inlined_call_operand.vmem [shape: f32[64,32], index: 8, kind: input, shape index: {}]   ;;  %s6262_s9 = inlined_call_operand.vmem [shape: f32[128,64], index: 9, kind: input, shape index: {}]   ;;  %s6263_s10 = inlined_call_operand.vmem [shape: f32[16,3], index: 10, kind: input, shape index: {}]   ;;  %s6264_s11 = inlined_call_operand.vmem [shape: f32[32,3], index: 11, kind: input, shape index: {}]   ;;  %s6265_s12 = inlined_call_operand.vmem [shape: f32[64,3], index: 12, kind: input, shape index: {}]   ;;  %s6266_s13 = inlined_call_operand.vmem [shape: f32[128,128], index: 13, kind: input, shape index: {}]   ;;  %s6267_s14 = inlined_call_operand.vmem [shape: f32[128,128], index: 14, kind: input, shape index: {}]   ;;  %s6268_s15 = inlined_call_operand.hbm [shape: f32[128,128], index: 15, kind: input, shape index: {}]   ;;  %s6269_s16 = inlined_call_operand.hbm [shape: f32[5,128], index: 16, kind: input, shape index: {}]   ;;  %s6270_s17 = inlined_call_operand.vmem [shape: f32[5,1], index: 17, kind: input, shape index: {}]   ;;  %s6271_s18 = inlined_call_operand.vmem [shape: f32[2,5,1], index: 18, kind: output, shape index: {}]  }
   0x1   :  { %6274 = sst [smem:[#allocation13_spill]] %s6253_s0 }
   0x2   :  { %6275 = sst [smem:[#allocation14_spill]] %s6254_s1 }
   0x3   :  { %6276 = sst [smem:[#allocation15_spill]] %s6255_s2 }
   0x4   :  { %23 = vsyncpa [#allocation3], 0 }
   0x5   :  { %24 = vsyncpa [#allocation5], 0 }
   0x6   :  { %25 = vsyncpa [#allocation8], 0  ;;  %s4873_s27 = smov 0  }
   0x7 LB: > { %6277 = sst [smem:[#allocation12_spill]] %s4755_s27  ;;  %s4879_s28 = sadd.s32 4294967295, %s4755_s27   ;;  %s4755_s27 = sphi %s4873_s27, %s31_s27  }
   0x8   : > { %p3578_p0 = scmp.ge.s32.totalorder %s4755_s27, 1  ;;  %p445_p1 = scmp.lt.s32.totalorder %s4755_s27, 3 }
   0x9   : > { %p4381_p2 = scmp.eq.s32.totalorder %s4879_s28, 0  ;;  %s4757_s30 = smov [#allocation4]  }
   0xa   : > { %p4884_p3 = pnand %p3578_p0, %p445_p1  ;;  %s473_s0 = sshll.u32 %s4757_s30, 4  ;;  %s474_s0 = int_to_ptr.vmem [resolvable:$true] %s473_s0 }
   0xb   : > { %s4758_s19 = smov [#allocation2]   ;;  %s4759_s21 = smov [#allocation6]  }
   0xc   : > { %p4368_p4 = pneg %p4884_p3  ;;  %s460_s1 = sshll.u32 %s4758_s19, 4  ;;  %s4890_s1 = int_to_ptr.vmem [resolvable:$true] %s460_s1 }
   0xd   : > { %s519_s22 = sshll.u32 %s4759_s21, 4  ;;  %s4760_s2 = smov [#allocation7]   ;;  %s4898_s22 = int_to_ptr.vmem [resolvable:$true] %s519_s22 }
   0xe   : > { %p4894_p5 = pnand %p4381_p2, %p4368_p4  ;;  %s4900_s23 = sshll.u32 %s4760_s2, 4  ;;  %s534_s23 = int_to_ptr.vmem [resolvable:$true] %s4900_s23 }
   0xf   : > { %s4644_s24 = scalar_lea.vmem %s474_s0, 512  ;;  %p4652_p10 = scmp.lt.s32.totalorder %s474_s0, %s474_s0 }
  0x10   : > { %p4635_p6 = pneg %p4894_p5  ;;  %p4645_p7 = scmp.ne.s32.totalorder %s474_s0, %s4644_s24 }
  0x11   : > { %p4653_p11 = scmp.lt.s32.totalorder %s4644_s24, %s4644_s24 }
  0x12   : > { %p4647_p8 = pnand %p4645_p7, %p4635_p6 }
  0x13   : > { %p4654_p12 = por %p4653_p11, %p4652_p10 }
  0x14   : > { %p4648_p9 = pneg %p4647_p8 }
  0x16   : > { %p4655_p13 = pnand %p4654_p12, %p4648_p9 }
  0x18   : > { %4658 = shalt.err (!%p4655_p13)
}
  0x19   : > { %s4761_s25 = smov 128   ;;  %s4762_s26 = smov 8  }
  0x1a   : > { %4374 = dma.hbm_to_vmem [thread:$0]  (!%p4894_p5), %s6256_s3, 512, %s474_s0, [#allocation5], %s4761_s25, %s4761_s25, %s4762_s26  }
  0x1b   : > { %s4670_s21 = scalar_lea.vmem %s4890_s1, 256  ;;  %p4678_p7 = scmp.lt.s32.totalorder %s4890_s1, %s4890_s1 }
  0x1c   : > { %p4671_p0 = scmp.ne.s32.totalorder %s4890_s1, %s4670_s21  ;;  %p4679_p8 = scmp.lt.s32.totalorder %s4670_s21, %s4670_s21 }
  0x1e   : > { %p4673_p1 = pnand %p4671_p0, %p4635_p6  ;;  %p4680_p9 = por %p4679_p8, %p4678_p7 }
  0x20   : > { %p4674_p4 = pneg %p4673_p1 }
  0x22   : > { %p4681_p10 = pnand %p4680_p9, %p4674_p4 }
  0x24   : > { %4684 = shalt.err (!%p4681_p10)
}
  0x25   : > { %s6280_s27 = sld [smem:[#allocation15_spill]]  ;;  %s4696_s0 = scalar_lea.vmem %s4898_s22, 2048 }
  0x26   : > { %p4697_p11 = scmp.ne.s32.totalorder %s4898_s22, %s4696_s0  ;;  %p4704_p0 = scmp.lt.s32.totalorder %s4898_s22, %s4898_s22 }
  0x27   : > { %p4705_p1 = scmp.lt.s32.totalorder %s4696_s0, %s4696_s0 }
  0x28   : > { %p4699_p12 = pnand %p4697_p11, %p4635_p6 }
  0x29   : > { %p4706_p4 = por %p4705_p1, %p4704_p0 }
  0x2a   : > { %p4700_p13 = pneg %p4699_p12 }
  0x2b   : > { %4371 = dma.hbm_to_vmem [thread:$0]  (!%p4894_p5), %s6280_s27, 256, %s4890_s1, [#allocation3], %s4761_s25, %s4761_s25, %s4762_s26  }
  0x2c   : > { %p4707_p7 = pnand %p4706_p4, %p4700_p13 }
  0x2e   : > { %4710 = shalt.err (!%p4707_p7)
}
  0x2f   : > { %4377 = dma.hbm_to_vmem [thread:$0]  (!%p4894_p5), %s6268_s15, 2048, %s4898_s22, [#allocation5], %s4761_s25, %s4761_s25, %s4762_s26  }
  0x30   : > { %s4722_s27 = scalar_lea.vmem %s534_s23, 128  ;;  %p4730_p11 = scmp.lt.s32.totalorder %s534_s23, %s534_s23 }
  0x31   : > { %p4723_p8 = scmp.ne.s32.totalorder %s534_s23, %s4722_s27  ;;  %p4731_p12 = scmp.lt.s32.totalorder %s4722_s27, %s4722_s27 }
  0x33   : > { %p4725_p9 = pnand %p4723_p8, %p4635_p6  ;;  %p4732_p13 = por %p4731_p12, %p4730_p11 }
  0x35   : > { %p4726_p10 = pneg %p4725_p9 }
  0x37   : > { %p4733_p0 = pnand %p4732_p13, %p4726_p10 }
  0x39   : > { %4736 = shalt.err (!%p4733_p0)
}
  0x3a   : > { %4380 = dma.hbm_to_vmem [thread:$0]  (!%p4894_p5), %s6269_s16, 128, %s534_s23, [#allocation8]  }
  0x3b   : > { %555 = sbr.rel (%p4884_p3) target bundleno = 5401 (0x1519), region = 92 }
  0x40   : > { %4742 = dma.done.wait (%p4381_p2), [#allocation3], 256  }
  0x41   : > { %4744 = vsyncadd (%p4381_p2), [#allocation3], 4294967040 }
  0x42   : > { %4746 = dma.done.wait (%p4381_p2), [#allocation5], 2560  }
  0x43   : > { %4748 = vsyncadd (%p4381_p2), [#allocation5], 4294964736 }
  0x44   : > { %4750 = dma.done.wait (%p4381_p2), [#allocation8], 128  }
  0x45   : > { %4752 = vsyncadd (%p4381_p2), [#allocation8], 4294967168  ;;  %p618_p3 = scmp.lt.s32.totalorder %s4879_s28, 1  ;;  %v4763_v0 = vmov 0   ;;  %s6281_s22 = sld [smem:[#allocation13_spill]]  ;;  %v4765_v3 = vmov 1   ;;  %v628_v8 = vlaneseq }
  0x46   : > { %4418 = vset.pattern.permute.xlu0 %v4763_v0  ;;  %4420 = vset.pattern.permute.xlu1 %v4763_v0  ;;  %s6282_s2 = sld [smem:[#allocation14_spill]]  ;;  %s4764_s24 = smov 3   ;;  %v4767_v5 = vmov 2   ;;  %v4769_v6 = vmov 3   ;;  %v4771_v7 = vmov 5   ;;  %v4772_v9 = vmov 4  }
  0x47   : > { %s6297_s28 = smov (!%p618_p3, %s4879_s28), 1  ;;  %s4766_s0 = smov 2   ;;  %v4985_v10 = vand.u32 127, %v628_v8  ;;  %v4773_v12 = vmov 6   ;;  %v5011_v27 = vshrl.u32 %v628_v8, 7  ;;  %vm833_vm9 = vcmask 916480  }
  0x48   : > { %s4768_s27 = smov 1   ;;  %s4770_s1 = smov 127   ;;  %vm1061_vm13 = vcmask 654336   ;;  %v1170_v13 = vld [vmem:[%s6257_s4 + $0x38] sm:$0xff] }
  0x49   : > { %v4988_v11 = vadd.s32 2, %v4985_v10  ;;  %vm1028_vm0 = vcmp.lt.s32.totalorder %v4985_v10, 32  ;;  %s4774_s21 = smov 126   ;;  %s4775_s29 = smov 125   ;;  %v5003_v22 = vadd.s32 4294967294, %v4985_v10  ;;  %v5006_v23 = vadd.s32 4294967295, %v4985_v10 }
  0x4a   : > { %v5009_v26 = vadd.s32 4294967293, %v4985_v10  ;;  %v5017_v29 = vadd.s32 1, %v4985_v10  ;;  %v691_v33 = vsub.s32 0, %v5011_v27  ;;  %v673_v51 = vadd.s32 3, %v4985_v10 }
  0x4b   : > { %s620_s23 = scalar_lea.vmem %s6281_s22, %s6297_s28  ;;  %vm1057_vm1 = vcmp.lt.s32.totalorder %v4988_v11, 32  ;;  %vm642_vm3 = vcmp.ge.s32.totalorder %v5003_v22, 0  ;;  %vm650_vm4 = vcmp.ge.s32.totalorder %v5006_v23, 0  ;;  %vm668_vm7 = vcmp.lt.s32.totalorder %v4988_v11, 128 }
  0x4c   : > { %v627_v1 = vld [vmem:[%s6282_s2 + $0x8] sm:$0xff]  ;;  %v4972_v2 = vld [vmem:[%s620_s23] sm:$0x1]  ;;  %vm4994_vm2 = vmand %vm1028_vm0, %vm1057_vm1  ;;  %vm634_vm5 = vcmp.ge.s32.totalorder %v5009_v26, 0  ;;  %vm660_vm6 = vcmp.lt.s32.totalorder %v5017_v29, 128  ;;  %vm676_vm8 = vcmp.lt.s32.totalorder %v673_v51, 128 }
  0x4d   : > { %686 = vperm.xlu0 %4418, %v627_v1   ;;  %630 = vrot.lane.b32.xlu1 %v4972_v2, %s4764_s24  ;;  %v626_v4 = vld [vmem:[%s6282_s2] sm:$0xff]  ;;  %v739_v44 = vrot.slane %v4972_v2, %v691_v33  ;;  %v5108_v26 = vld [vmem:[%s6266_s13 + $0x68] sm:$0xff]  ;;  %v5157_v51 = vld [vmem:[%s6266_s13 + $0x38] sm:$0xff]  ;;  %vm1030_vm10 = vcmp.lt.s32.totalorder %v5003_v22, 32  ;;  %vm1048_vm14 = vcmp.lt.s32.totalorder %v5017_v29, 32 }
  0x4e   : > { %vm1029_vm11 = vmand %vm1028_vm0, %vm642_vm3 }
  0x4f   : > { %vm5222_vm12 = vmand %vm1029_vm11, %vm1030_vm10  ;;  %vm1462_vm10 = vcmp.lt.s32.totalorder %v4985_v10, 8  ;;  %vm1479_vm11 = vcmp.lt.s32.totalorder %v5017_v29, 8 }
  0x50   : > { %vm5240_vm15 = vmand %vm1028_vm0, %vm1048_vm14  ;;  %vm1464_vm14 = vcmp.lt.s32.totalorder %v5006_v23, 8 }
  0x51   : > { %4419 = vset.pattern.permute.xlu0 %v4765_v3  ;;  %639 = vrot.lane.b32.xlu1 %v4972_v2, %s4766_s0  ;;  %vm1038_vm1 = vmand %vm1028_vm0, %vm650_vm4  ;;  %vm1219_vm0 = vcmask 261120  }
  0x52   : > { %700 = vperm.xlu0 %4419, %v627_v1  }
  0x55   : > { %681 = vperm.xlu1 %4420, %v626_v4  }
  0x56   : > { %696 = vperm.xlu0 %4419, %v626_v4  }
  0x59   : > { %4421 = vset.pattern.permute.xlu1 %v4767_v5 }
  0x5a   : > { %716 = vperm.xlu1 %4421, %v627_v1   ;;  %647 = vrot.lane.b32.xlu0 %v4972_v2, %s4768_s27 }
  0x5b   : > { %4422 = vset.pattern.permute.xlu0 %v4769_v6 }
  0x5e   : > { %712 = vperm.xlu1 %4421, %v626_v4   ;;  %732 = vperm.xlu0 %4422, %v627_v1  }
  0x62   : > { %4423 = vset.pattern.permute.xlu1 %v4769_v6  ;;  %655 = vrot.lane.b32.xlu0 %v4972_v2, %s4770_s1 }
  0x63   : > { %728 = vperm.xlu1 %4423, %v626_v4   ;;  %4425 = vset.pattern.permute.xlu0 %v4771_v7 }
  0x66   : > { %766 = vperm.xlu0 %4425, %v627_v1  }
  0x67   : > { %4424 = vset.pattern.permute.xlu1 %v4772_v9 }
  0x68   : > { %750 = vperm.xlu1 %4424, %v627_v1  }
  0x6a   : > { %4427 = vset.pattern.permute.xlu0 %v4773_v12 }
  0x6b   : > { %782 = vperm.xlu0 %4427, %v627_v1  }
  0x6c   : > { %746 = vperm.xlu1 %4424, %v626_v4  }
  0x6f   : > { %4459 = vset.pattern.permute.xlu0 %v4763_v0 }
  0x70   : > { %663 = vrot.lane.b32.xlu1 %v4972_v2, %s4774_s21 }
  0x71   : > { %4426 = vset.pattern.permute.xlu1 %v4771_v7 }
  0x74   : > { %762 = vperm.xlu1 %4426, %v626_v4  }
  0x78   : > { %671 = vrot.lane.b32.xlu1 %v4972_v2, %s4775_s29 }
  0x79   : > { %4428 = vset.pattern.permute.xlu1 %v4773_v12 }
  0x7c   : > { %778 = vperm.xlu1 %4428, %v626_v4  }
  0x80   : > { %4460 = vset.pattern.permute.xlu1 %v4763_v0 }
  0xbf   : > { %v631_v14 = vpop.permute.xlu1 %630 }
  0xc0   : > { %v638_v34 = vsel %vm634_vm5, %v631_v14, 0.0 }
  0xc1   : > { %v692_v39 = vrot.slane %v638_v34, %v691_v33 }
  0xc3   : > { %v640_v16 = vpop.permute.xlu1 %639 }
  0xc4   : > { %v646_v31 = vsel %vm642_vm3, %v640_v16, 0.0 }
  0xc5   : > { %v706_v35 = vrot.slane %v646_v31, %v691_v33 }
  0xc8   : > { %v687_v15 = vpop.permute.xlu0 %686 }
  0xc9   : > { %v694_v42 = vmul.f32 %v692_v39, %v687_v15 }
  0xcd   : > { %v701_v18 = vpop.permute.xlu0 %700 }
  0xce   : > { %v708_v40 = vmul.f32 %v706_v35, %v701_v18 }
  0xd0   : > { %v682_v17 = vpop.permute.xlu1 %681  ;;  %v710_v49 = vadd.f32 %v708_v40, %v694_v42  ;;  %v5096_v40 = vld [vmem:[%s6266_s13 + $0x78] sm:$0xff] }
  0xd1   : > { %v697_v20 = vpop.permute.xlu0 %696  ;;  %v693_v46 = vmul.f32 %v692_v39, %v682_v17  ;;  %3974 = vmatprep.subr.mxu1 %v5096_v40 }
  0xd2   : > { %v707_v47 = vmul.f32 %v706_v35, %v697_v20  ;;  %3975 = vmatpush3.msra.mxu1 %v5096_v40 }
  0xd4   : > { %v709_v57 = vadd.f32 %v707_v47, %v693_v46  ;;  %v5128_v47 = vld [vmem:[%s6266_s13 + $0x58] sm:$0xff] }
  0xd5   : > { %v717_v19 = vpop.permute.xlu1 %716  ;;  %v648_v24 = vpop.permute.xlu0 %647 }
  0xd6   : > { %v654_v32 = vsel %vm650_vm4, %v648_v24, 0.0 }
  0xd7   : > { %v722_v36 = vrot.slane %v654_v32, %v691_v33 }
  0xd9   : > { %v713_v21 = vpop.permute.xlu1 %712  ;;  %v733_v28 = vpop.permute.xlu0 %732  ;;  %v724_v43 = vmul.f32 %v722_v36, %v717_v19 }
  0xda   : > { %v723_v52 = vmul.f32 %v722_v36, %v713_v21  ;;  %v742_v54 = vmul.f32 %v739_v44, %v733_v28  ;;  %v795_v21 = vld [vmem:[#allocation2] sm:$0xff] }
  0xdb   : > { %v726_v53 = vadd.f32 %v724_v43, %v710_v49  ;;  %3971 = vmatprep.mubr.msk.f32.mxu0 %vm833_vm9, %v795_v21  ;;  %v5143_v49 = vld [vmem:[%s6266_s13 + $0x48] sm:$0xff] }
  0xdc   : > { %v725_v61 = vadd.f32 %v723_v52, %v709_v57  ;;  %v5164_v52 = vld [vmem:[%s6266_s13 + $0x30] sm:$0xff]  ;;  %v5201_v57 = vld [vmem:[%s6266_s13 + $0x8] sm:$0xff] }
  0xdd   : > { %v656_v37 = vpop.permute.xlu0 %655  ;;  %v744_v63 = vadd.f32 %v742_v54, %v726_v53  ;;  %v5171_v53 = vld [vmem:[%s6266_s13 + $0x28] sm:$0xff]  ;;  %v5178_v54 = vld [vmem:[%s6266_s13 + $0x20] sm:$0xff] }
  0xde   : > { %v729_v25 = vpop.permute.xlu1 %728  ;;  %v662_v41 = vsel %vm660_vm6, %v656_v37, 0.0 }
  0xdf   : > { %v756_v50 = vrot.slane %v662_v41, %v691_v33  ;;  %v741_v58 = vmul.f32 %v739_v44, %v729_v25  ;;  %v5101_v41 = vld [vmem:[%s6266_s13 + $0x70] sm:$0xff] }
  0xe0   : > { %3976 = vmatprep.subr.mxu1 %v5101_v41 }
  0xe1   : > { %v767_v59 = vpop.permute.xlu0 %766  ;;  %v743_v2 = vadd.f32 %v741_v58, %v725_v61  ;;  %3977 = vmatpush3.msra.mxu1 %v5101_v41  ;;  %v5206_v58 = vld [vmem:[%s6266_s13] sm:$0xff] }
  0xe2   : > { %3978 = vmatprep.subr.mxu1 %v5108_v26 }
  0xe3   : > { %v751_v30 = vpop.permute.xlu1 %750  ;;  %3979 = vmatpush3.msra.mxu1 %v5108_v26 }
  0xe4   : > { %v758_v60 = vmul.f32 %v756_v50, %v751_v30 }
  0xe6   : > { %v783_v5 = vpop.permute.xlu0 %782  ;;  %v760_v6 = vadd.f32 %v758_v60, %v744_v63 }
  0xe7   : > { %v747_v38 = vpop.permute.xlu1 %746 }
  0xe8   : > { %v757_v62 = vmul.f32 %v756_v50, %v747_v38  ;;  %v796_v38 = vld [vmem:[#allocation2 + $0x8] sm:$0xff]  ;;  %v5150_v50 = vld [vmem:[%s6266_s13 + $0x40] sm:$0xff] }
  0xea   : > { %v759_v8 = vadd.f32 %v757_v62, %v743_v2 }
  0xeb   : > { %v664_v45 = vpop.permute.xlu1 %663 }
  0xec   : > { %v670_v48 = vsel %vm668_vm7, %v664_v45, 0.0  ;;  %v5119_v45 = vld [vmem:[%s6266_s13 + $0x60] sm:$0xff] }
  0xed   : > { %v772_v55 = vrot.slane %v670_v48, %v691_v33  ;;  %3980 = vmatprep.subr.mxu1 %v5119_v45  ;;  %v5136_v48 = vld [vmem:[%s6266_s13 + $0x50] sm:$0xff] }
  0xee   : > { %3981 = vmatpush3.msra.mxu1 %v5119_v45 }
  0xef   : > { %v763_v56 = vpop.permute.xlu1 %762  ;;  %v774_v0 = vmul.f32 %v772_v55, %v767_v59  ;;  %3982 = vmatprep.subr.mxu1 %v5128_v47 }
  0xf0   : > { %v773_v3 = vmul.f32 %v772_v55, %v763_v56  ;;  %3983 = vmatpush3.msra.mxu1 %v5128_v47  ;;  %v5185_v55 = vld [vmem:[%s6266_s13 + $0x18] sm:$0xff]  ;;  %v5192_v56 = vld [vmem:[%s6266_s13 + $0x10] sm:$0xff] }
  0xf1   : > { %v776_v9 = vadd.f32 %v774_v0, %v760_v6  ;;  %3984 = vmatprep.subr.mxu1 %v5136_v48 }
  0xf2   : > { %v775_v15 = vadd.f32 %v773_v3, %v759_v8  ;;  %3985 = vmatpush3.msra.mxu1 %v5136_v48 }
  0xf3   : > { %v672_v1 = vpop.permute.xlu1 %671  ;;  %3986 = vmatprep.subr.mxu1 %v5143_v49 }
  0xf4   : > { %v678_v4 = vsel %vm676_vm8, %v672_v1, 0.0  ;;  %3987 = vmatpush3.msra.mxu1 %v5143_v49 }
  0xf5   : > { %v788_v7 = vrot.slane %v678_v4, %v691_v33  ;;  %3988 = vmatprep.subr.mxu1 %v5150_v50 }
  0xf6   : > { %3989 = vmatpush3.msra.mxu1 %v5150_v50 }
  0xf7   : > { %v790_v12 = vmul.f32 %v788_v7, %v783_v5  ;;  %v779_v14 = vpop.permute.xlu1 %778  ;;  %3990 = vmatprep.subr.mxu1 %v5157_v51 }
  0xf8   : > { %v789_v16 = vmul.f32 %v788_v7, %v779_v14  ;;  %3991 = vmatpush3.msra.mxu1 %v5157_v51  ;;  %v1167_v14 = vld [vmem:[%s6257_s4 + $0x20] sm:$0xff] }
  0xf9   : > { %v792_v17 = vadd.f32 %v790_v12, %v776_v9  ;;  %3992 = vmatprep.subr.mxu1 %v5164_v52  ;;  %v1020_v9 = vld [vmem:[#allocation4] sm:$0xff] }
  0xfa   : > { %v791_v18 = vadd.f32 %v789_v16, %v775_v15  ;;  %3993 = vmatpush3.msra.mxu1 %v5164_v52 }
  0xfb   : > { %v794_v19 = vmax.f32 %v792_v17, 0.0  ;;  %3994 = vmatprep.subr.mxu1 %v5171_v53 }
  0xfc   : > { %v793_v20 = vmax.f32 %v791_v18, 0.0  ;;  %3995 = vmatpush3.msra.mxu1 %v5171_v53 }
  0xfd   : > { %829 = vrot.lane.b32.xlu0 %v794_v19, %s4775_s29  ;;  %3996 = vmatprep.subr.mxu1 %v5178_v54 }
  0xfe   : > { %827 = vrot.lane.b32.xlu1 %v793_v20, %s4775_s29  ;;  %3997 = vmatpush3.msra.mxu1 %v5178_v54 }
  0xff   : > { %3998 = vmatprep.subr.mxu1 %v5185_v55 }
 0x100   : > { %3999 = vmatpush3.msra.mxu1 %v5185_v55 }
 0x101   : > { %823 = vrot.lane.b32.xlu0 %v794_v19, %s4774_s21  ;;  %4000 = vmatprep.subr.mxu1 %v5192_v56 }
 0x102   : > { %821 = vrot.lane.b32.xlu1 %v793_v20, %s4774_s21  ;;  %4001 = vmatpush3.msra.mxu1 %v5192_v56 }
 0x103   : > { %4002 = vmatprep.subr.mxu1 %v5201_v57 }
 0x104   : > { %4003 = vmatpush3.msra.mxu1 %v5201_v57 }
 0x105   : > { %817 = vrot.lane.b32.xlu0 %v794_v19, %s4770_s1  ;;  %4004 = vmatprep.subr.mxu1 %v5206_v58 }
 0x106   : > { %815 = vrot.lane.b32.xlu1 %v793_v20, %s4770_s1  ;;  %4005 = vmatpush3.msra.mxu1 %v5206_v58 }
 0x109   : > { %811 = vrot.lane.b32.xlu0 %v794_v19, %s4768_s27 }
 0x10a   : > { %809 = vrot.lane.b32.xlu1 %v793_v20, %s4768_s27 }
 0x10d   : > { %805 = vrot.lane.b32.xlu0 %v794_v19, %s4766_s0 }
 0x10e   : > { %803 = vrot.lane.b32.xlu1 %v793_v20, %s4766_s0 }
 0x111   : > { %799 = vrot.lane.b32.xlu0 %v794_v19, %s4764_s24 }
 0x112   : > { %797 = vrot.lane.b32.xlu1 %v793_v20, %s4764_s24 }
 0x16f   : > { %v830_v24 = vpop.permute.xlu0 %829 }
 0x170   : > { %3943 = vmatprep.subr.msk.mxu0 %vm676_vm8, %v830_v24  ;;  %v828_v25 = vpop.permute.xlu1 %827 }
 0x171   : > { %3944 = vmatpush3.msk.msra.mxu0 %vm676_vm8, %v830_v24  ;;  %v1021_v24 = vld [vmem:[#allocation4 + $0x8] sm:$0xff] }
 0x172   : > { %3945 = vmatprep.subr.msk.mxu0 %vm676_vm8, %v828_v25 }
 0x173   : > { %v824_v28 = vpop.permute.xlu0 %823  ;;  %3946 = vmatpush3.msk.msra.mxu0 %vm676_vm8, %v828_v25  ;;  %v1022_v25 = vld [vmem:[#allocation4 + $0x10] sm:$0xff]  ;;  %vm1858_vm8 = vcmp.gt.s32.totalorder %v5011_v27, 0 }
 0x174   : > { %3947 = vmatprep.subr.msk.mxu0 %vm668_vm7, %v824_v28  ;;  %v822_v30 = vpop.permute.xlu1 %821 }
 0x175   : > { %3948 = vmatpush3.msk.msra.mxu0 %vm668_vm7, %v824_v28  ;;  %v1023_v28 = vld [vmem:[#allocation4 + $0x18] sm:$0xff] }
 0x176   : > { %3949 = vmatprep.subr.msk.mxu0 %vm668_vm7, %v822_v30 }
 0x177   : > { %v818_v31 = vpop.permute.xlu0 %817  ;;  %3950 = vmatpush3.msk.msra.mxu0 %vm668_vm7, %v822_v30  ;;  %v4776_v30 = vmov 0.0  }
 0x178   : > { %3951 = vmatprep.subr.msk.mxu0 %vm660_vm6, %v818_v31  ;;  %v816_v32 = vpop.permute.xlu1 %815  ;;  %1232 = vmatprep.subr.mxu1 %v4776_v30 }
 0x179   : > { %3952 = vmatpush3.msk.msra.mxu0 %vm660_vm6, %v818_v31 }
 0x17a   : > { %3953 = vmatprep.subr.msk.mxu0 %vm660_vm6, %v816_v32 }
 0x17b   : > { %v812_v33 = vpop.permute.xlu0 %811  ;;  %3954 = vmatpush3.msk.msra.mxu0 %vm660_vm6, %v816_v32  ;;  %vm1838_vm6 = vcmp.lt.s32.totalorder %v5011_v27, 1 }
 0x17c   : > { %3955 = vmatprep.subr.mxu0 %v794_v19  ;;  %v810_v34 = vpop.permute.xlu1 %809 }
 0x17d   : > { %3956 = vmatpush3.msra.mxu0 %v794_v19 }
 0x17e   : > { %3957 = vmatprep.subr.mxu0 %v793_v20 }
 0x17f   : > { %3958 = vmatpush3.msra.mxu0 %v793_v20  ;;  %v806_v11 = vpop.permute.xlu0 %805 }
 0x180   : > { %3959 = vmatprep.subr.msk.mxu0 %vm650_vm4, %v812_v33  ;;  %v804_v35 = vpop.permute.xlu1 %803 }
 0x181   : > { %3960 = vmatpush3.msk.msra.mxu0 %vm650_vm4, %v812_v33 }
 0x182   : > { %3961 = vmatprep.subr.msk.mxu0 %vm650_vm4, %v810_v34 }
 0x183   : > { %3962 = vmatpush3.msk.msra.mxu0 %vm650_vm4, %v810_v34  ;;  %v800_v36 = vpop.permute.xlu0 %799 }
 0x184   : > { %3963 = vmatprep.subr.msk.mxu0 %vm642_vm3, %v806_v11  ;;  %v798_v37 = vpop.permute.xlu1 %797 }
 0x185   : > { %3964 = vmatpush3.msk.msra.mxu0 %vm642_vm3, %v806_v11 }
 0x186   : > { %3965 = vmatprep.subr.msk.mxu0 %vm642_vm3, %v804_v35 }
 0x187   : > { %3966 = vmatpush3.msk.msra.mxu0 %vm642_vm3, %v804_v35  ;;  %vm1039_vm3 = vcmp.lt.s32.totalorder %v5006_v23, 32 }
 0x188   : > { %3967 = vmatprep.subr.msk.mxu0 %vm634_vm5, %v800_v36 }
 0x189   : > { %3968 = vmatpush3.msk.msra.mxu0 %vm634_vm5, %v800_v36 }
 0x18a   : > { %3969 = vmatprep.subr.msk.mxu0 %vm634_vm5, %v798_v37 }
 0x18b   : > { %3970 = vmatpush3.msk.msra.mxu0 %vm634_vm5, %v798_v37  ;;  %vm5261_vm5 = vmand %vm1038_vm1, %vm1039_vm3  ;;  %vm1687_vm3 = vcmask 523264  }
 0x18c   : > { %3972 = vmatmul.mubr.msk.f32.vlgmr.msra.gmra.mxu0 %vm833_vm9, %v796_v38  ;;  %v1164_v38 = vld [vmem:[%s6257_s4 + $0x8] sm:$0xff]  ;;  %vm1485_vm9 = vcmask 785408  }
 0x18d   : > { %4029 = vmatprep.mubr.msk.f32.mxu0 %vm1061_vm13, %v1020_v9  ;;  %v1166_v9 = vld [vmem:[%s6257_s4 + $0x18] sm:$0xff] }
 0x24c   : > { %v3973_v39 = vpop.f32.mrf.mxu0 }
 0x24d   : > { %v5110_v43 = vmax.f32 %v3973_v39, 0.0 }
 0x24e   : > { %v906_v42 = vpop.f32.mrf.mxu0 }
 0x24f   : > { %v5112_v44 = vmax.f32 %v906_v42, 0.0 }
 0x251   : > { %v4429_v46 = vpack.i.bf16 %v5110_v43, %v5112_v44 }
 0x253   : > { %4430 = vrot.lane.b32.xlu0 %v4429_v46, %s4770_s1 }
 0x2c5   : > { %v4431_v59 = vpop.permute.xlu0 %4430 }
 0x2c6   : > { %v4433_v60 = vunpack.i.h.bf16 %v4431_v59  ;;  %v4432_v61 = vunpack.i.l.bf16 %v4431_v59 }
 0x2c8   : > { %v938_v62 = vmax.f32 %v5110_v43, %v4433_v60  ;;  %v937_v63 = vmax.f32 %v5112_v44, %v4432_v61 }
 0x2ca   : > { %v4434_v0 = vpack.i.bf16 %v938_v62, %v937_v63 }
 0x2cc   : > { %4435 = vrot.lane.b32.xlu1 %v4434_v0, %s4774_s21 }
 0x33e   : > { %v4436_v1 = vpop.permute.xlu1 %4435 }
 0x33f   : > { %v4438_v2 = vunpack.i.h.bf16 %v4436_v1  ;;  %v4437_v3 = vunpack.i.l.bf16 %v4436_v1 }
 0x341   : > { %v943_v4 = vmax.f32 %v937_v63, %v4437_v3  ;;  %v944_v5 = vmax.f32 %v938_v62, %v4438_v2 }
 0x343   : > { %4006 = vmatprep.mubr.f32.mxu1 %v943_v4 }
 0x344   : > { %4007 = vmatmul.mubr.f32.vlgmr.msra.gmra.mxu1 %v944_v5 }
 0x345   : > { %3632 = vmatprep.mubr.msk.f32.mxu1 %vm1219_vm0, %v1164_v38  ;;  %v1333_v38 = vld [vmem:[%s6267_s14 + $0x60] sm:$0xff] }
 0x404   : > { %v4008_v6 = vpop.f32.mrf.mxu1 }
 0x405   : > { %1054 = vrot.lane.b32.xlu0 %v4008_v6, %s4774_s21 }
 0x406   : > { %v1011_v7 = vpop.f32.mrf.mxu1 }
 0x407   : > { %1052 = vrot.lane.b32.xlu1 %v1011_v7, %s4774_s21 }
 0x409   : > { %1045 = vrot.lane.b32.xlu0 %v4008_v6, %s4770_s1 }
 0x40b   : > { %1043 = vrot.lane.b32.xlu1 %v1011_v7, %s4770_s1 }
 0x40d   : > { %1036 = vrot.lane.b32.xlu0 %v4008_v6, %s4768_s27 }
 0x40f   : > { %1034 = vrot.lane.b32.xlu1 %v1011_v7, %s4768_s27 }
 0x411   : > { %1026 = vrot.lane.b32.xlu0 %v4008_v6, %s4766_s0 }
 0x413   : > { %1024 = vrot.lane.b32.xlu1 %v1011_v7, %s4766_s0 }
 0x477   : > { %v1055_v22 = vpop.permute.xlu0 %1054 }
 0x478   : > { %4009 = vmatprep.subr.msk.mxu0 %vm4994_vm2, %v1055_v22 }
 0x479   : > { %4010 = vmatpush3.msk.msra.mxu0 %vm4994_vm2, %v1055_v22  ;;  %v1053_v12 = vpop.permute.xlu1 %1052  ;;  %v1165_v22 = vld [vmem:[%s6257_s4 + $0x10] sm:$0xff] }
 0x47a   : > { %4011 = vmatprep.subr.msk.mxu0 %vm4994_vm2, %v1053_v12 }
 0x47b   : > { %v1046_v15 = vpop.permute.xlu0 %1045  ;;  %4012 = vmatpush3.msk.msra.mxu0 %vm4994_vm2, %v1053_v12  ;;  %v1168_v12 = vld [vmem:[%s6257_s4 + $0x28] sm:$0xff] }
 0x47c   : > { %4013 = vmatprep.subr.msk.mxu0 %vm5240_vm15, %v1046_v15 }
 0x47d   : > { %4014 = vmatpush3.msk.msra.mxu0 %vm5240_vm15, %v1046_v15  ;;  %v1044_v16 = vpop.permute.xlu1 %1043  ;;  %v1169_v15 = vld [vmem:[%s6257_s4 + $0x30] sm:$0xff] }
 0x47e   : > { %4015 = vmatprep.subr.msk.mxu0 %vm5240_vm15, %v1044_v16 }
 0x47f   : > { %4016 = vmatpush3.msk.msra.mxu0 %vm5240_vm15, %v1044_v16  ;;  %v1037_v17 = vpop.permute.xlu0 %1036 }
 0x480   : > { %4017 = vmatprep.subr.mxu0 %v4008_v6 }
 0x481   : > { %4018 = vmatpush3.msra.mxu0 %v4008_v6  ;;  %v1035_v19 = vpop.permute.xlu1 %1034 }
 0x482   : > { %4019 = vmatprep.subr.mxu0 %v1011_v7 }
 0x483   : > { %4020 = vmatpush3.msra.mxu0 %v1011_v7  ;;  %v1027_v20 = vpop.permute.xlu0 %1026  ;;  %v1163_v7 = vld [vmem:[%s6257_s4] sm:$0xff] }
 0x484   : > { %4021 = vmatprep.subr.msk.mxu0 %vm5261_vm5, %v1037_v17 }
 0x485   : > { %4022 = vmatpush3.msk.msra.mxu0 %vm5261_vm5, %v1037_v17  ;;  %v1025_v21 = vpop.permute.xlu1 %1024 }
 0x486   : > { %4023 = vmatprep.subr.msk.mxu0 %vm5261_vm5, %v1035_v19 }
 0x487   : > { %4024 = vmatpush3.msk.msra.mxu0 %vm5261_vm5, %v1035_v19 }
 0x488   : > { %4025 = vmatprep.subr.msk.mxu0 %vm5222_vm12, %v1027_v20 }
 0x489   : > { %4026 = vmatpush3.msk.msra.mxu0 %vm5222_vm12, %v1027_v20 }
 0x48a   : > { %4027 = vmatprep.subr.msk.mxu0 %vm5222_vm12, %v1025_v21 }
 0x48b   : > { %4028 = vmatpush3.msk.msra.mxu0 %vm5222_vm12, %v1025_v21 }
 0x48c   : > { %4030 = vmatmul.mubr.msk.f32.vlgmr.msra.gmra.mxu0 %vm1061_vm13, %v1021_v24 }
 0x48d   : > { %4032 = vmatprep.mubr.msk.f32.mxu0 %vm1061_vm13, %v1022_v25 }
 0x490   : > { %4033 = vmatmul.mubr.msk.f32.gmra.mxu0 %vm1061_vm13, %v1023_v28  ;;  %vm1463_vm13 = vmand %vm1462_vm10, %vm650_vm4  ;;  %vm1922_vm4 = vcmask 130048  }
 0x54c   : > { %v4031_v31 = vpop.f32.mrf.mxu0 }
 0x54d   : > { %v1160_v36 = vmax.f32 %v4031_v31, 0.0 }
 0x54e   : > { %v1140_v32 = vpop.f32.mrf.mxu0 }
 0x54f   : > { %v1159_v37 = vmax.f32 %v1140_v32, 0.0 }
 0x550   : > { %v4034_v33 = vpop.f32.mrf.mxu0 }
 0x551   : > { %v1162_v34 = vmax.f32 %v4034_v33, 0.0 }
 0x552   : > { %v1150_v11 = vpop.f32.mrf.mxu0 }
 0x553   : > { %v1161_v35 = vmax.f32 %v1150_v11, 0.0  ;;  %1201 = vrot.lane.b32.xlu0 %v1162_v34, %s4770_s1 }
 0x555   : > { %1199 = vrot.lane.b32.xlu1 %v1161_v35, %s4770_s1 }
 0x557   : > { %1197 = vrot.lane.b32.xlu0 %v1160_v36, %s4770_s1 }
 0x559   : > { %1195 = vrot.lane.b32.xlu1 %v1159_v37, %s4770_s1 }
 0x55b   : > { %1189 = vrot.lane.b32.xlu0 %v1162_v34, %s4768_s27 }
 0x55d   : > { %1187 = vrot.lane.b32.xlu1 %v1161_v35, %s4768_s27 }
 0x55f   : > { %1185 = vrot.lane.b32.xlu0 %v1160_v36, %s4768_s27 }
 0x561   : > { %1183 = vrot.lane.b32.xlu1 %v1159_v37, %s4768_s27 }
 0x563   : > { %1177 = vrot.lane.b32.xlu0 %v1162_v34, %s4766_s0 }
 0x565   : > { %1175 = vrot.lane.b32.xlu1 %v1161_v35, %s4766_s0 }
 0x567   : > { %1173 = vrot.lane.b32.xlu0 %v1160_v36, %s4766_s0 }
 0x569   : > { %1171 = vrot.lane.b32.xlu1 %v1159_v37, %s4766_s0 }
 0x56b   : > { %1213 = vrot.lane.b32.xlu0 %v1162_v34, %s4774_s21 }
 0x56d   : > { %1211 = vrot.lane.b32.xlu1 %v1161_v35, %s4774_s21 }
 0x56f   : > { %1209 = vrot.lane.b32.xlu0 %v1160_v36, %s4774_s21 }
 0x571   : > { %1207 = vrot.lane.b32.xlu1 %v1159_v37, %s4774_s21 }
 0x5c5   : > { %v1202_v39 = vpop.permute.xlu0 %1201 }
 0x5c6   : > { %3616 = vmatpush1.msk.msra.mxu1 %vm5240_vm15, %v1202_v39  ;;  %v1332_v39 = vld [vmem:[%s6267_s14 + $0x58] sm:$0xff] }
 0x5c7   : > { %1234 = vmatprep.subr.mxu1 %v4776_v30  ;;  %v1200_v42 = vpop.permute.xlu1 %1199 }
 0x5c8   : > { %3617 = vmatpush1.msk.msra.mxu1 %vm5240_vm15, %v1200_v42  ;;  %v1331_v42 = vld [vmem:[%s6267_s14 + $0x50] sm:$0xff] }
 0x5c9   : > { %v1198_v46 = vpop.permute.xlu0 %1197  ;;  %1236 = vmatprep.subr.mxu1 %v4776_v30 }
 0x5ca   : > { %3618 = vmatpush1.msk.msra.mxu1 %vm5240_vm15, %v1198_v46  ;;  %v1330_v46 = vld [vmem:[%s6267_s14 + $0x48] sm:$0xff] }
 0x5cb   : > { %1238 = vmatprep.subr.mxu1 %v4776_v30  ;;  %v1196_v59 = vpop.permute.xlu1 %1195 }
 0x5cc   : > { %3619 = vmatpush1.msk.msra.mxu1 %vm5240_vm15, %v1196_v59  ;;  %v1329_v59 = vld [vmem:[%s6267_s14 + $0x40] sm:$0xff]  ;;  %vm5520_vm15 = vmand %vm1463_vm13, %vm1464_vm14 }
 0x5cd   : > { %v1190_v60 = vpop.permute.xlu0 %1189  ;;  %1240 = vmatprep.subr.mxu1 %v4776_v30 }
 0x5ce   : > { %1241 = vmatpush1.msra.mxu1 %v1162_v34 }
 0x5cf   : > { %1242 = vmatprep.subr.mxu1 %v4776_v30  ;;  %v1188_v61 = vpop.permute.xlu1 %1187 }
 0x5d0   : > { %1243 = vmatpush1.msra.mxu1 %v1161_v35  ;;  %v1336_v35 = vld [vmem:[%s6267_s14 + $0x78] sm:$0xff] }
 0x5d1   : > { %v1186_v62 = vpop.permute.xlu0 %1185  ;;  %1244 = vmatprep.subr.mxu1 %v4776_v30  ;;  %4035 = vmatprep.subr.mxu0 %v1336_v35 }
 0x5d2   : > { %1245 = vmatpush1.msra.mxu1 %v1160_v36  ;;  %v1335_v36 = vld [vmem:[%s6267_s14 + $0x70] sm:$0xff]  ;;  %4036 = vmatpush3.msra.mxu0 %v1336_v35 }
 0x5d3   : > { %1246 = vmatprep.subr.mxu1 %v4776_v30  ;;  %v1184_v63 = vpop.permute.xlu1 %1183  ;;  %4037 = vmatprep.subr.mxu0 %v1335_v36 }
 0x5d4   : > { %1247 = vmatpush1.msra.mxu1 %v1159_v37  ;;  %v1334_v37 = vld [vmem:[%s6267_s14 + $0x68] sm:$0xff]  ;;  %4038 = vmatpush3.msra.mxu0 %v1335_v36 }
 0x5d5   : > { %1248 = vmatprep.subr.mxu1 %v4776_v30  ;;  %v1178_v0 = vpop.permute.xlu0 %1177  ;;  %4039 = vmatprep.subr.mxu0 %v1334_v37 }
 0x5d6   : > { %3620 = vmatpush1.msk.msra.mxu1 %vm5261_vm5, %v1190_v60  ;;  %4040 = vmatpush3.msra.mxu0 %v1334_v37  ;;  %v1328_v60 = vld [vmem:[%s6267_s14 + $0x38] sm:$0xff] }
 0x5d7   : > { %1250 = vmatprep.subr.mxu1 %v4776_v30  ;;  %v1176_v1 = vpop.permute.xlu1 %1175  ;;  %4041 = vmatprep.subr.mxu0 %v1333_v38 }
 0x5d8   : > { %3621 = vmatpush1.msk.msra.mxu1 %vm5261_vm5, %v1188_v61  ;;  %4042 = vmatpush3.msra.mxu0 %v1333_v38  ;;  %v1327_v61 = vld [vmem:[%s6267_s14 + $0x30] sm:$0xff] }
 0x5d9   : > { %1252 = vmatprep.subr.mxu1 %v4776_v30  ;;  %v1174_v2 = vpop.permute.xlu0 %1173  ;;  %4043 = vmatprep.subr.mxu0 %v1332_v39 }
 0x5da   : > { %3622 = vmatpush1.msk.msra.mxu1 %vm5261_vm5, %v1186_v62  ;;  %4044 = vmatpush3.msra.mxu0 %v1332_v39  ;;  %v1326_v62 = vld [vmem:[%s6267_s14 + $0x28] sm:$0xff] }
 0x5db   : > { %1254 = vmatprep.subr.mxu1 %v4776_v30  ;;  %v1172_v3 = vpop.permute.xlu1 %1171  ;;  %4045 = vmatprep.subr.mxu0 %v1331_v42 }
 0x5dc   : > { %3623 = vmatpush1.msk.msra.mxu1 %vm5261_vm5, %v1184_v63  ;;  %4046 = vmatpush3.msra.mxu0 %v1331_v42  ;;  %v1325_v63 = vld [vmem:[%s6267_s14 + $0x20] sm:$0xff] }
 0x5dd   : > { %1256 = vmatprep.subr.mxu1 %v4776_v30  ;;  %v1214_v4 = vpop.permute.xlu0 %1213  ;;  %4047 = vmatprep.subr.mxu0 %v1330_v46 }
 0x5de   : > { %3624 = vmatpush1.msk.msra.mxu1 %vm5222_vm12, %v1178_v0  ;;  %4048 = vmatpush3.msra.mxu0 %v1330_v46  ;;  %v1324_v0 = vld [vmem:[%s6267_s14 + $0x18] sm:$0xff] }
 0x5df   : > { %1258 = vmatprep.subr.mxu1 %v4776_v30  ;;  %v1212_v5 = vpop.permute.xlu1 %1211  ;;  %4049 = vmatprep.subr.mxu0 %v1329_v59 }
 0x5e0   : > { %3625 = vmatpush1.msk.msra.mxu1 %vm5222_vm12, %v1176_v1  ;;  %4050 = vmatpush3.msra.mxu0 %v1329_v59  ;;  %v1323_v1 = vld [vmem:[%s6267_s14 + $0x10] sm:$0xff] }
 0x5e1   : > { %1260 = vmatprep.subr.mxu1 %v4776_v30  ;;  %v1210_v6 = vpop.permute.xlu0 %1209  ;;  %4051 = vmatprep.subr.mxu0 %v1328_v60 }
 0x5e2   : > { %3626 = vmatpush1.msk.msra.mxu1 %vm5222_vm12, %v1174_v2  ;;  %4052 = vmatpush3.msra.mxu0 %v1328_v60  ;;  %v1322_v2 = vld [vmem:[%s6267_s14 + $0x8] sm:$0xff] }
 0x5e3   : > { %1262 = vmatprep.subr.mxu1 %v4776_v30  ;;  %v1208_v8 = vpop.permute.xlu1 %1207  ;;  %4053 = vmatprep.subr.mxu0 %v1327_v61 }
 0x5e4   : > { %3627 = vmatpush1.msk.msra.mxu1 %vm5222_vm12, %v1172_v3  ;;  %4054 = vmatpush3.msra.mxu0 %v1327_v61  ;;  %v1321_v3 = vld [vmem:[%s6267_s14] sm:$0xff]  ;;  %v1826_v61 = vld [vmem:[%s6263_s10 + $0x8] sm:$0xff]  ;;  %vm5495_vm12 = vmand %vm1462_vm10, %vm1479_vm11 }
 0x5e5   : > { %1288 = vmatprep.subr.mxu1 %v4776_v30  ;;  %4055 = vmatprep.subr.mxu0 %v1326_v62 }
 0x5e6   : > { %3628 = vmatpush2.msk.msra.mxu1 %vm4994_vm2, %v1214_v4  ;;  %4056 = vmatpush3.msra.mxu0 %v1326_v62 }
 0x5e7   : > { %1290 = vmatprep.subr.mxu1 %v4776_v30  ;;  %4057 = vmatprep.subr.mxu0 %v1325_v63 }
 0x5e8   : > { %3629 = vmatpush2.msk.msra.mxu1 %vm4994_vm2, %v1212_v5  ;;  %4058 = vmatpush3.msra.mxu0 %v1325_v63 }
 0x5e9   : > { %1292 = vmatprep.subr.mxu1 %v4776_v30  ;;  %4059 = vmatprep.subr.mxu0 %v1324_v0 }
 0x5ea   : > { %3630 = vmatpush2.msk.msra.mxu1 %vm4994_vm2, %v1210_v6  ;;  %4060 = vmatpush3.msra.mxu0 %v1324_v0 }
 0x5eb   : > { %1294 = vmatprep.subr.mxu1 %v4776_v30  ;;  %4061 = vmatprep.subr.mxu0 %v1323_v1 }
 0x5ec   : > { %3631 = vmatpush2.msk.msra.mxu1 %vm4994_vm2, %v1208_v8  ;;  %4062 = vmatpush3.msra.mxu0 %v1323_v1  ;;  %vm1849_vm2 = vcmp.lt.s32.totalorder %v5011_v27, 7  ;;  %v1825_v1 = vld [vmem:[%s6263_s10] sm:$0xff] }
 0x5ed   : > { %1297 = vmatmul.mubr.f32.vlgmr.msra.gmra.mxu1 %v1163_v7  ;;  %4063 = vmatprep.subr.mxu0 %v1322_v2 }
 0x5ee   : > { %3633 = vmatprep.mubr.msk.f32.mxu1 %vm1219_vm0, %v1166_v9  ;;  %4064 = vmatpush3.msra.mxu0 %v1322_v2 }
 0x5ef   : > { %4065 = vmatprep.subr.mxu0 %v1321_v3 }
 0x5f0   : > { %4066 = vmatpush3.msra.mxu0 %v1321_v3 }
 0x5f1   : > { %1302 = vmatmul.mubr.f32.gmra.mxu1 %v1165_v22  ;;  %1712 = vmatprep.subr.mxu0 %v4776_v30 }
 0x5f2   : > { %3634 = vmatprep.mubr.msk.f32.mxu1 %vm1219_vm0, %v1168_v12 }
 0x5f5   : > { %1307 = vmatmul.mubr.f32.gmra.mxu1 %v1167_v14 }
 0x5f6   : > { %3635 = vmatprep.mubr.msk.f32.mxu1 %vm1219_vm0, %v1170_v13 }
 0x5f9   : > { %1312 = vmatmul.mubr.f32.gmra.mxu1 %v1169_v15 }
 0x6ad   : > { %v1298_v16 = vpop.f32.mrf.mxu1 }
 0x6ae   : > { %v5380_v19 = vmax.f32 %v1298_v16, 0.0 }
 0x6af   : > { %v1300_v17 = vpop.f32.mrf.mxu1 }
 0x6b0   : > { %v1847_v17 = vrot.slane %v5112_v44, 1 }
 0x6b1   : > { %v1303_v18 = vpop.f32.mrf.mxu1 }
 0x6b2   : > { %v5382_v20 = vmax.f32 %v1303_v18, 0.0  ;;  %v1848_v18 = vrot.slane %v5110_v43, 1 }
 0x6b3   : > { %v1305_v21 = vpop.f32.mrf.mxu1 }
 0x6b4   : > { %v4439_v24 = vpack.i.bf16 %v5382_v20, %v5380_v19  ;;  %v1850_v21 = vsel %vm1849_vm2, %v1847_v17, %v1848_v18 }
 0x6b5   : > { %v1308_v25 = vpop.f32.mrf.mxu1 }
 0x6b6   : > { %4440 = vrot.lane.b32.xlu0 %v4439_v24, %s4770_s1  ;;  %v5387_v32 = vmax.f32 %v1308_v25, 0.0  ;;  %v1836_v24 = vrot.slane %v5112_v44, 7  ;;  %v1837_v25 = vrot.slane %v5110_v43, 7 }
 0x6b7   : > { %v1310_v28 = vpop.f32.mrf.mxu1 }
 0x6b8   : > { %v1840_v28 = vsel %vm1838_vm6, %v1837_v25, %v1836_v24 }
 0x6b9   : > { %v1313_v31 = vpop.f32.mrf.mxu1 }
 0x6ba   : > { %v5389_v33 = vmax.f32 %v1313_v31, 0.0  ;;  %v1851_v31 = vsel %vm1849_vm2, %v1848_v18, %v1847_v17 }
 0x6bb   : > { %v1315_v34 = vpop.f32.mrf.mxu1 }
 0x6bc   : > { %v4444_v11 = vpack.i.bf16 %v5389_v33, %v5387_v32  ;;  %v1839_v34 = vsel %vm1838_vm6, %v1836_v24, %v1837_v25 }
 0x6be   : > { %4445 = vrot.lane.b32.xlu1 %v4444_v11, %s4770_s1 }
 0x728   : > { %v4441_v4 = vpop.permute.xlu0 %4440 }
 0x729   : > { %v4443_v5 = vunpack.i.h.bf16 %v4441_v4  ;;  %v4442_v6 = vunpack.i.l.bf16 %v4441_v4 }
 0x72b   : > { %v1346_v7 = vmax.f32 %v5382_v20, %v4443_v5  ;;  %v1345_v8 = vmax.f32 %v5380_v19, %v4442_v6  ;;  %v1829_v5 = vadd.s32 8, %v5011_v27 }
 0x72d   : > { %v4449_v9 = vpack.i.bf16 %v1346_v7, %v1345_v8  ;;  %vm1863_vm7 = vcmp.lt.s32.totalorder %v1829_v5, 15 }
 0x72f   : > { %4450 = vrot.lane.b32.xlu0 %v4449_v9, %s4774_s21 }
 0x730   : > { %v4446_v22 = vpop.permute.xlu1 %4445 }
 0x731   : > { %v4448_v12 = vunpack.i.h.bf16 %v4446_v22  ;;  %v4447_v14 = vunpack.i.l.bf16 %v4446_v22 }
 0x733   : > { %v1348_v13 = vmax.f32 %v5389_v33, %v4448_v12  ;;  %v1347_v15 = vmax.f32 %v5387_v32, %v4447_v14 }
 0x735   : > { %v4454_v16 = vpack.i.bf16 %v1348_v13, %v1347_v15 }
 0x737   : > { %4455 = vrot.lane.b32.xlu1 %v4454_v16, %s4774_s21 }
 0x74e   : > { %1832 = vadd.xlane.f32.xlu0 %v5110_v43 }
 0x752   : > { %1830 = vadd.xlane.f32.xlu0 %v5112_v44 }
 0x756   : > { %1852 = vadd.xlane.f32.xlu0 %v1850_v21 }
 0x75a   : > { %1841 = vadd.xlane.f32.xlu0 %v1840_v28 }
 0x75b   : > { %1854 = vadd.xlane.f32.xlu1 %v1851_v31 }
 0x75f   : > { %1843 = vadd.xlane.f32.xlu1 %v1839_v34 }
 0x7a1   : > { %v4451_v11 = vpop.permute.xlu0 %4450 }
 0x7a2   : > { %v4453_v35 = vunpack.i.h.bf16 %v4451_v11  ;;  %v4452_v36 = vunpack.i.l.bf16 %v4451_v11 }
 0x7a4   : > { %v1358_v37 = vmax.f32 %v1346_v7, %v4453_v35  ;;  %v1357_v38 = vmax.f32 %v1345_v8, %v4452_v36 }
 0x7a6   : > { %4067 = vmatprep.mubr.f32.mxu0 %v1357_v38 }
 0x7a7   : > { %4068 = vmatmul.mubr.f32.vlgmr.msra.gmra.mxu0 %v1358_v37 }
 0x7a9   : > { %v4456_v39 = vpop.permute.xlu1 %4455 }
 0x7aa   : > { %v4458_v42 = vunpack.i.h.bf16 %v4456_v39  ;;  %v4457_v46 = vunpack.i.l.bf16 %v4456_v39 }
 0x7ac   : > { %v1359_v59 = vmax.f32 %v1347_v15, %v4457_v46  ;;  %v1360_v60 = vmax.f32 %v1348_v13, %v4458_v42 }
 0x7ae   : > { %4070 = vmatprep.mubr.f32.mxu0 %v1359_v59 }
 0x7af   : > { %4071 = vmatmul.mubr.f32.gmra.mxu0 %v1360_v60 }
 0x7d7   : > { %v1833_v62 = vpop.xlane.xlu0 %1832 }
 0x7d8   : > { %v1835_v63 = vmul.f32 0.0078125, %v1833_v62 }
 0x7da   : > { %v1869_v0 = vmul.f32 %v1835_v63, %v1826_v61 }
 0x7db   : > { %v1831_v2 = vpop.xlane.xlu0 %1830 }
 0x7dc   : > { %v1834_v3 = vmul.f32 0.0078125, %v1831_v2  ;;  %1874 = vrot.lane.b32.xlu1 %v1869_v0, %s4770_s1 }
 0x7de   : > { %v1868_v4 = vmul.f32 %v1834_v3, %v1825_v1 }
 0x7df   : > { %v1853_v7 = vpop.xlane.xlu0 %1852 }
 0x7e0   : > { %1872 = vrot.lane.b32.xlu0 %v1868_v4, %s4770_s1  ;;  %v1856_v22 = vmul.f32 0.0078125, %v1853_v7  ;;  %v1628_v4 = vld [vmem:[%s6259_s6 + $0x28] sm:$0xff] }
 0x7e2   : > { %v1880_v14 = vmul.f32 %v1856_v22, %v1825_v1 }
 0x7e3   : > { %v1842_v15 = vpop.xlane.xlu0 %1841 }
 0x7e4   : > { %v1855_v6 = vpop.xlane.xlu1 %1854  ;;  %v1845_v17 = vmul.f32 0.0078125, %v1842_v15 }
 0x7e5   : > { %v1857_v8 = vmul.f32 0.0078125, %v1855_v6 }
 0x7e6   : > { %v1860_v24 = vsel %vm1858_vm8, %v1845_v17, 0.0  ;;  %v1450_v17 = vld [vmem:[%s6258_s5 + $0x20] sm:$0xff] }
 0x7e7   : > { %v1865_v9 = vsel %vm1863_vm7, %v1857_v8, 0.0  ;;  %v1866_v34 = vmul.f32 %v1860_v24, %v1825_v1  ;;  %v1446_v1 = vld [vmem:[%s6258_s5] sm:$0xff] }
 0x7e8   : > { %v1881_v12 = vmul.f32 %v1865_v9, %v1826_v61  ;;  %v1844_v13 = vpop.xlane.xlu1 %1843  ;;  %4097 = vmatprep.mubr.msk.f32.mxu1 %vm1485_vm9, %v1446_v1 }
 0x7e9   : > { %v1846_v16 = vmul.f32 0.0078125, %v1844_v13 }
 0x7ea   : > { %1886 = vrot.lane.b32.xlu1 %v1881_v12, %s4774_s21  ;;  %v1447_v12 = vld [vmem:[%s6258_s5 + $0x8] sm:$0xff] }
 0x7eb   : > { %v1867_v21 = vmul.f32 %v1846_v16, %v1826_v61  ;;  %v1449_v16 = vld [vmem:[%s6258_s5 + $0x18] sm:$0xff] }
 0x7ee   : > { %1884 = vrot.lane.b32.xlu1 %v1880_v14, %s4774_s21  ;;  %v1448_v14 = vld [vmem:[%s6258_s5 + $0x10] sm:$0xff] }
 0x84e   : > { %v1875_v18 = vpop.permute.xlu1 %1874 }
 0x84f   : > { %v1879_v25 = vadd.f32 %v1875_v18, %v1867_v21 }
 0x852   : > { %v1873_v28 = vpop.permute.xlu0 %1872 }
 0x853   : > { %v1878_v35 = vadd.f32 %v1873_v28, %v1866_v34  ;;  %v1918_v34 = vld [vmem:[%s6260_s7] sm:$0xff] }
 0x85c   : > { %v1887_v31 = vpop.permute.xlu1 %1886 }
 0x85d   : > { %v1891_v11 = vadd.f32 %v1887_v31, %v1879_v25  ;;  %v1451_v25 = vld [vmem:[%s6258_s5 + $0x28] sm:$0xff]  ;;  %v1452_v31 = vld [vmem:[%s6258_s5 + $0x30] sm:$0xff] }
 0x85f   : > { %v3677_v36 = vmul.f32 -1.442695, %v1891_v11  ;;  %v1920_v11 = vld [vmem:[%s6260_s7 + $0x10] sm:$0xff] }
 0x860   : > { %v1885_v37 = vpop.permute.xlu1 %1884 }
 0x861   : > { %4561 = vpow2.f32 %v3677_v36  ;;  %v1890_v38 = vadd.f32 %v1885_v37, %v1878_v35  ;;  %v1921_v35 = vld [vmem:[%s6260_s7 + $0x18] sm:$0xff] }
 0x863   : > { %v3676_v39 = vmul.f32 -1.442695, %v1890_v38 }
 0x865   : > { %4563 = vpow2.f32 %v3676_v39 }
 0x867   : > { %v4069_v42 = vpop.f32.mrf.mxu0 }
 0x869   : > { %v1427_v46 = vpop.f32.mrf.mxu0 }
 0x86e   : > { %v4562_v59 = vpop.eup %4561 }
 0x86f   : > { %v1899_v60 = vadd.f32 1.0, %v4562_v59  ;;  %v4072_v61 = vpop.f32.mrf.mxu0 }
 0x870   : > { %1476 = vrot.lane.b32.xlu0 %v4072_v61, %s4770_s1 }
 0x871   : > { %4565 = vrcp.f32 %v1899_v60  ;;  %v1437_v62 = vpop.f32.mrf.mxu0 }
 0x872   : > { %v4564_v63 = vpop.eup %4563  ;;  %1474 = vrot.lane.b32.xlu1 %v1437_v62, %s4770_s1 }
 0x873   : > { %v1898_v0 = vadd.f32 1.0, %v4564_v63 }
 0x874   : > { %1472 = vrot.lane.b32.xlu0 %v4069_v42, %s4770_s1 }
 0x875   : > { %4567 = vrcp.f32 %v1898_v0 }
 0x876   : > { %1470 = vrot.lane.b32.xlu1 %v1427_v46, %s4770_s1 }
 0x878   : > { %1460 = vrot.lane.b32.xlu0 %v4072_v61, %s4768_s27 }
 0x87a   : > { %1458 = vrot.lane.b32.xlu1 %v1437_v62, %s4768_s27 }
 0x87c   : > { %1456 = vrot.lane.b32.xlu0 %v4069_v42, %s4768_s27 }
 0x87e   : > { %v4566_v2 = vpop.eup %4565  ;;  %1454 = vrot.lane.b32.xlu1 %v1427_v46, %s4768_s27 }
 0x880   : > { %1911 = vperm.xlu0 %4459, %v4566_v2  }
 0x882   : > { %v4568_v3 = vpop.eup %4567 }
 0x883   : > { %1906 = vperm.xlu1 %4460, %v4568_v3  }
 0x8e2   : > { %v1477_v5 = vpop.permute.xlu0 %1476 }
 0x8e3   : > { %4073 = vmatprep.subr.msk.mxu1 %vm5495_vm12, %v1477_v5 }
 0x8e4   : > { %4074 = vmatpush3.msk.msra.mxu1 %vm5495_vm12, %v1477_v5  ;;  %v1475_v6 = vpop.permute.xlu1 %1474 }
 0x8e5   : > { %4075 = vmatprep.subr.msk.mxu1 %vm5495_vm12, %v1475_v6 }
 0x8e6   : > { %v1473_v7 = vpop.permute.xlu0 %1472  ;;  %4076 = vmatpush3.msk.msra.mxu1 %vm5495_vm12, %v1475_v6 }
 0x8e7   : > { %4077 = vmatprep.subr.msk.mxu1 %vm5495_vm12, %v1473_v7 }
 0x8e8   : > { %4078 = vmatpush3.msk.msra.mxu1 %vm5495_vm12, %v1473_v7  ;;  %v1471_v29 = vpop.permute.xlu1 %1470 }
 0x8e9   : > { %4079 = vmatprep.subr.msk.mxu1 %vm5495_vm12, %v1471_v29 }
 0x8ea   : > { %4080 = vmatpush3.msk.msra.mxu1 %vm5495_vm12, %v1471_v29  ;;  %v1461_v9 = vpop.permute.xlu0 %1460 }
 0x8eb   : > { %4081 = vmatprep.subr.mxu1 %v4072_v61 }
 0x8ec   : > { %4082 = vmatpush3.msra.mxu1 %v4072_v61  ;;  %v1459_v22 = vpop.permute.xlu1 %1458 }
 0x8ed   : > { %4083 = vmatprep.subr.mxu1 %v1437_v62 }
 0x8ee   : > { %4084 = vmatpush3.msra.mxu1 %v1437_v62  ;;  %v1457_v10 = vpop.permute.xlu0 %1456 }
 0x8ef   : > { %4085 = vmatprep.subr.mxu1 %v4069_v42 }
 0x8f0   : > { %4086 = vmatpush3.msra.mxu1 %v4069_v42  ;;  %v1455_v23 = vpop.permute.xlu1 %1454 }
 0x8f1   : > { %4087 = vmatprep.subr.mxu1 %v1427_v46 }
 0x8f2   : > { %4088 = vmatpush3.msra.mxu1 %v1427_v46 }
 0x8f3   : > { %4089 = vmatprep.subr.msk.mxu1 %vm5520_vm15, %v1461_v9 }
 0x8f4   : > { %4090 = vmatpush3.msk.msra.mxu1 %vm5520_vm15, %v1461_v9 }
 0x8f5   : > { %4091 = vmatprep.subr.msk.mxu1 %vm5520_vm15, %v1459_v22 }
 0x8f6   : > { %4092 = vmatpush3.msk.msra.mxu1 %vm5520_vm15, %v1459_v22 }
 0x8f7   : > { %4093 = vmatprep.subr.msk.mxu1 %vm5520_vm15, %v1457_v10 }
 0x8f8   : > { %4094 = vmatpush3.msk.msra.mxu1 %vm5520_vm15, %v1457_v10 }
 0x8f9   : > { %4095 = vmatprep.subr.msk.mxu1 %vm5520_vm15, %v1455_v23 }
 0x8fa   : > { %4096 = vmatpush3.msk.msra.mxu1 %vm5520_vm15, %v1455_v23 }
 0x8fb   : > { %v1912_v13 = vpop.permute.xlu0 %1911  ;;  %4098 = vmatmul.mubr.msk.f32.vlgmr.msra.gmra.mxu1 %vm1485_vm9, %v1447_v12 }
 0x8fc   : > { %v1915_v15 = vmul.f32 %v1912_v13, %v5110_v43  ;;  %4100 = vmatprep.mubr.msk.f32.mxu1 %vm1485_vm9, %v1448_v14 }
 0x8fe   : > { %v1917_v18 = vadd.f32 %v1915_v15, %v5110_v43  ;;  %v1907_v21 = vpop.permute.xlu1 %1906  ;;  %v1453_v43 = vld [vmem:[%s6258_s5 + $0x38] sm:$0xff] }
 0x8ff   : > { %v1914_v24 = vmul.f32 %v1907_v21, %v5112_v44  ;;  %4101 = vmatmul.mubr.msk.f32.gmra.mxu1 %vm1485_vm9, %v1449_v16 }
 0x900   : > { %4109 = vmatprep.subr.mxu1 %v1917_v18  ;;  %4103 = vmatprep.mubr.msk.f32.mxu1 %vm1485_vm9, %v1450_v17 }
 0x901   : > { %v1916_v28 = vadd.f32 %v1914_v24, %v5112_v44  ;;  %4110 = vmatpush3.msra.mxu1 %v1917_v18  ;;  %v1919_v44 = vld [vmem:[%s6260_s7 + $0x8] sm:$0xff] }
 0x903   : > { %4104 = vmatmul.mubr.msk.f32.gmra.mxu1 %vm1485_vm9, %v1451_v25  ;;  %4111 = vmatprep.subr.mxu1 %v1916_v28 }
 0x904   : > { %4112 = vmatpush3.msra.mxu1 %v1916_v28  ;;  %4106 = vmatprep.mubr.msk.f32.mxu1 %vm1485_vm9, %v1452_v31 }
 0x905   : > { %4119 = vmatprep.subr.mxu1 %v5096_v40 }
 0x907   : > { %4107 = vmatmul.mubr.msk.f32.gmra.mxu1 %vm1485_vm9, %v1453_v43 }
 0x908   : > { %4113 = vmatprep.mubr.msk.f32.mxu1 %vm1922_vm4, %v1918_v34 }
 0x90b   : > { %4114 = vmatmul.mubr.msk.f32.vlgmr.msra.gmra.mxu1 %vm1922_vm4, %v1919_v44 }
 0x90c   : > { %4116 = vmatprep.mubr.msk.f32.mxu1 %vm1922_vm4, %v1920_v11  ;;  %4120 = vmatpush3.msra.mxu1 %v5096_v40 }
 0x90d   : > { %4121 = vmatprep.subr.mxu1 %v5101_v41 }
 0x90e   : > { %4122 = vmatpush3.msra.mxu1 %v5101_v41 }
 0x90f   : > { %4117 = vmatmul.mubr.msk.f32.gmra.mxu1 %vm1922_vm4, %v1921_v35  ;;  %4123 = vmatprep.subr.mxu1 %v5108_v26 }
 0x910   : > { %4124 = vmatpush3.msra.mxu1 %v5108_v26 }
 0x911   : > { %4125 = vmatprep.subr.mxu1 %v5119_v45 }
 0x912   : > { %4126 = vmatpush3.msra.mxu1 %v5119_v45 }
 0x913   : > { %4127 = vmatprep.subr.mxu1 %v5128_v47 }
 0x914   : > { %4128 = vmatpush3.msra.mxu1 %v5128_v47 }
 0x915   : > { %4129 = vmatprep.subr.mxu1 %v5136_v48 }
 0x916   : > { %4130 = vmatpush3.msra.mxu1 %v5136_v48 }
 0x917   : > { %4131 = vmatprep.subr.mxu1 %v5143_v49 }
 0x918   : > { %4132 = vmatpush3.msra.mxu1 %v5143_v49 }
 0x919   : > { %4133 = vmatprep.subr.mxu1 %v5150_v50 }
 0x91a   : > { %4134 = vmatpush3.msra.mxu1 %v5150_v50 }
 0x91b   : > { %4135 = vmatprep.subr.mxu1 %v5157_v51 }
 0x91c   : > { %4136 = vmatpush3.msra.mxu1 %v5157_v51 }
 0x91d   : > { %4137 = vmatprep.subr.mxu1 %v5164_v52 }
 0x91e   : > { %4138 = vmatpush3.msra.mxu1 %v5164_v52 }
 0x91f   : > { %4139 = vmatprep.subr.mxu1 %v5171_v53 }
 0x920   : > { %4140 = vmatpush3.msra.mxu1 %v5171_v53 }
 0x921   : > { %4141 = vmatprep.subr.mxu1 %v5178_v54 }
 0x922   : > { %4142 = vmatpush3.msra.mxu1 %v5178_v54 }
 0x923   : > { %4143 = vmatprep.subr.mxu1 %v5185_v55 }
 0x924   : > { %4144 = vmatpush3.msra.mxu1 %v5185_v55 }
 0x925   : > { %4145 = vmatprep.subr.mxu1 %v5192_v56 }
 0x926   : > { %4146 = vmatpush3.msra.mxu1 %v5192_v56 }
 0x927   : > { %4147 = vmatprep.subr.mxu1 %v5201_v57 }
 0x928   : > { %4148 = vmatpush3.msra.mxu1 %v5201_v57 }
 0x929   : > { %4149 = vmatprep.subr.mxu1 %v5206_v58 }
 0x92a   : > { %4150 = vmatpush3.msra.mxu1 %v5206_v58 }
 0x9bb   : > { %v4099_v40 = vpop.f32.mrf.mxu1 }
 0x9bc   : > { %v5639_v60 = vmax.f32 %v4099_v40, 0.0 }
 0x9bd   : > { %v1576_v41 = vpop.f32.mrf.mxu1 }
 0x9be   : > { %v5643_v62 = vmax.f32 %v1576_v41, 0.0 }
 0x9bf   : > { %v4102_v26 = vpop.f32.mrf.mxu1 }
 0x9c0   : > { %v5630_v37 = vmax.f32 %v4102_v26, 0.0 }
 0x9c1   : > { %v1586_v45 = vpop.f32.mrf.mxu1 }
 0x9c2   : > { %v5634_v42 = vmax.f32 %v1586_v45, 0.0 }
 0x9c3   : > { %v4105_v47 = vpop.f32.mrf.mxu1 }
 0x9c4   : > { %v5622_v54 = vmax.f32 %v4105_v47, 0.0 }
 0x9c5   : > { %v1596_v48 = vpop.f32.mrf.mxu1 }
 0x9c6   : > { %v5626_v56 = vmax.f32 %v1596_v48, 0.0 }
 0x9c7   : > { %v4108_v49 = vpop.f32.mrf.mxu1 }
 0x9c8   : > { %v5616_v50 = vmax.f32 %v4108_v49, 0.0 }
 0x9c9   : > { %v1606_v51 = vpop.f32.mrf.mxu1 }
 0x9ca   : > { %v5618_v52 = vmax.f32 %v1606_v51, 0.0  ;;  %1713 = vmatpush1.msra.mxu0 %v5616_v50 }
 0x9cb   : > { %1714 = vmatprep.subr.mxu0 %v4776_v30  ;;  %v4115_v53 = vpop.f32.mrf.mxu1 }
 0x9cc   : > { %1715 = vmatpush1.msra.mxu0 %v5618_v52  ;;  %v2021_v57 = vmax.f32 %v4115_v53, 0.0 }
 0x9cd   : > { %1716 = vmatprep.subr.mxu0 %v4776_v30  ;;  %v2001_v55 = vpop.f32.mrf.mxu1 }
 0x9ce   : > { %v2020_v58 = vmax.f32 %v2001_v55, 0.0  ;;  %1717 = vmatpush1.msra.mxu0 %v5622_v54 }
 0x9cf   : > { %1718 = vmatprep.subr.mxu0 %v4776_v30  ;;  %v4118_v36 = vpop.f32.mrf.mxu1 }
 0x9d0   : > { %v4461_v38 = vpack.i.bf16 %v2021_v57, %v2020_v58  ;;  %1719 = vmatpush1.msra.mxu0 %v5626_v56  ;;  %v2023_v46 = vmax.f32 %v4118_v36, 0.0  ;;  %v5695_v36 = vld [vmem:[%s6264_s11 + $0x8] sm:$0xff] }
 0x9d1   : > { %1720 = vmatprep.subr.mxu0 %v4776_v30  ;;  %v2011_v39 = vpop.f32.mrf.mxu1 }
 0x9d2   : > { %v2022_v59 = vmax.f32 %v2011_v39, 0.0  ;;  %1721 = vmatpush1.msra.mxu0 %v5630_v37  ;;  %4462 = vrot.lane.b32.xlu1 %v4461_v38, %s4770_s1 }
 0x9d3   : > { %1722 = vmatprep.subr.mxu0 %v4776_v30 }
 0x9d4   : > { %v4466_v61 = vpack.i.bf16 %v2023_v46, %v2022_v59  ;;  %1723 = vmatpush1.msra.mxu0 %v5634_v42 }
 0x9d5   : > { %1724 = vmatprep.subr.mxu0 %v4776_v30 }
 0x9d6   : > { %1725 = vmatpush1.msra.mxu0 %v5639_v60  ;;  %4467 = vrot.lane.b32.xlu0 %v4466_v61, %s4770_s1 }
 0x9d7   : > { %1726 = vmatprep.subr.mxu0 %v4776_v30 }
 0x9d8   : > { %1727 = vmatpush1.msra.mxu0 %v5643_v62 }
 0x9d9   : > { %1728 = vmatprep.subr.mxu0 %v4776_v30 }
 0xa44   : > { %v4463_v63 = vpop.permute.xlu1 %4462 }
 0xa45   : > { %v4465_v0 = vunpack.i.h.bf16 %v4463_v63  ;;  %v4464_v1 = vunpack.i.l.bf16 %v4463_v63 }
 0xa47   : > { %v2033_v2 = vmax.f32 %v2021_v57, %v4465_v0  ;;  %v2032_v3 = vmax.f32 %v2020_v58, %v4464_v1  ;;  %v2139_v0 = vld [vmem:[%s6264_s11 + $0x10] sm:$0xff] }
 0xa48   : > { %v4468_v5 = vpop.permute.xlu0 %4467 }
 0xa49   : > { %v4470_v6 = vunpack.i.h.bf16 %v4468_v5  ;;  %v4469_v7 = vunpack.i.l.bf16 %v4468_v5  ;;  %v4471_v29 = vpack.i.bf16 %v2033_v2, %v2032_v3 }
 0xa4b   : > { %v2035_v9 = vmax.f32 %v2023_v46, %v4470_v6  ;;  %v2034_v22 = vmax.f32 %v2022_v59, %v4469_v7  ;;  %4472 = vrot.lane.b32.xlu1 %v4471_v29, %s4774_s21  ;;  %v2140_v59 = vld [vmem:[%s6264_s11 + $0x18] sm:$0xff]  ;;  %v2137_v6 = vld [vmem:[%s6264_s11] sm:$0xff] }
 0xa4d   : > { %v4476_v10 = vpack.i.bf16 %v2035_v9, %v2034_v22 }
 0xa4f   : > { %4477 = vrot.lane.b32.xlu0 %v4476_v10, %s4774_s21 }
 0xabd   : > { %v4473_v23 = vpop.permute.xlu1 %4472 }
 0xabe   : > { %v4475_v12 = vunpack.i.h.bf16 %v4473_v23  ;;  %v4474_v14 = vunpack.i.l.bf16 %v4473_v23 }
 0xac0   : > { %v2045_v13 = vmax.f32 %v2033_v2, %v4475_v12  ;;  %v2044_v15 = vmax.f32 %v2032_v3, %v4474_v14  ;;  %v2142_v2 = vadd.s32 24, %v5011_v27 }
 0xac1   : > { %v4478_v16 = vpop.permute.xlu0 %4477 }
 0xac2   : > { %v4480_v17 = vunpack.i.h.bf16 %v4478_v16  ;;  %v4479_v18 = vunpack.i.l.bf16 %v4478_v16  ;;  %4151 = vmatprep.mubr.f32.mxu1 %v2044_v15  ;;  %vm2204_vm1 = vcmp.lt.s32.totalorder %v2142_v2, 31 }
 0xac3   : > { %4152 = vmatmul.mubr.f32.vlgmr.msra.gmra.mxu1 %v2045_v13 }
 0xac4   : > { %v2046_v21 = vmax.f32 %v2034_v22, %v4479_v18  ;;  %v2047_v24 = vmax.f32 %v2035_v9, %v4480_v17 }
 0xac6   : > { %4154 = vmatprep.mubr.f32.mxu1 %v2046_v21 }
 0xac7   : > { %4155 = vmatmul.mubr.f32.gmra.mxu1 %v2047_v24 }
 0xb83   : > { %v4153_v25 = vpop.f32.mrf.mxu1 }
 0xb84   : > { %v5653_v28 = vadd.f32 %v4153_v25, %v5382_v20 }
 0xb85   : > { %v2114_v31 = vpop.f32.mrf.mxu1 }
 0xb86   : > { %2145 = vadd.xlane.f32.xlu1 %v5653_v28  ;;  %v5660_v44 = vadd.f32 %v2114_v31, %v5380_v19  ;;  %v2176_v19 = vrot.slane %v5653_v28, 1  ;;  %v2156_v53 = vrot.slane %v5653_v28, 7 }
 0xb87   : > { %v4156_v43 = vpop.f32.mrf.mxu1 }
 0xb88   : > { %v5657_v34 = vadd.f32 %v4156_v43, %v5389_v33  ;;  %v2175_v20 = vrot.slane %v5660_v44, 1  ;;  %v2155_v47 = vrot.slane %v5660_v44, 7 }
 0xb89   : > { %v2124_v11 = vpop.f32.mrf.mxu1 }
 0xb8a   : > { %v5663_v35 = vadd.f32 %v2124_v11, %v5387_v32  ;;  %2149 = vadd.xlane.f32.xlu1 %v5657_v34  ;;  %v2178_v40 = vrot.slane %v5657_v34, 1  ;;  %v2181_v32 = vsel %vm1849_vm2, %v2175_v20, %v2176_v19  ;;  %v2158_v26 = vrot.slane %v5657_v34, 7 }
 0xb8b   : > { %v2161_v57 = vsel %vm1838_vm6, %v2155_v47, %v2156_v53 }
 0xb8c   : > { %2147 = vadd.xlane.f32.xlu0 %v5663_v35  ;;  %v2182_v33 = vsel %vm1849_vm2, %v2178_v40, %v2175_v20  ;;  %v2177_v41 = vrot.slane %v5663_v35, 1  ;;  %v2162_v48 = vsel %vm1838_vm6, %v2158_v26, %v2155_v47  ;;  %v2157_v49 = vrot.slane %v5663_v35, 7 }
 0xb8e   : > { %2143 = vadd.xlane.f32.xlu1 %v5660_v44  ;;  %v2179_v45 = vsel %vm1849_vm2, %v2177_v41, %v2178_v40  ;;  %v2180_v51 = vsel %vm1849_vm2, %v2176_v19, %v2177_v41  ;;  %v2160_v55 = vsel %vm1838_vm6, %v2156_v53, %v2157_v49  ;;  %v2159_v58 = vsel %vm1838_vm6, %v2157_v49, %v2158_v26 }
 0xb90   : > { %2189 = vadd.xlane.f32.xlu0 %v2182_v33 }
 0xb92   : > { %2183 = vadd.xlane.f32.xlu1 %v2181_v32 }
 0xb94   : > { %2187 = vadd.xlane.f32.xlu0 %v2179_v45 }
 0xb96   : > { %2163 = vadd.xlane.f32.xlu1 %v2162_v48 }
 0xb98   : > { %2185 = vadd.xlane.f32.xlu0 %v2180_v51 }
 0xb9a   : > { %2167 = vadd.xlane.f32.xlu1 %v2160_v55 }
 0xb9c   : > { %2165 = vadd.xlane.f32.xlu0 %v2161_v57 }
 0xba0   : > { %2169 = vadd.xlane.f32.xlu0 %v2159_v58 }
 0xc0f   : > { %v2146_v38 = vpop.xlane.xlu1 %2145 }
 0xc10   : > { %v2152_v39 = vmul.f32 0.03125, %v2146_v38 }
 0xc12   : > { %v2214_v46 = vmul.f32 %v2152_v39, %v5695_v36 }
 0xc13   : > { %v2150_v61 = vpop.xlane.xlu1 %2149 }
 0xc14   : > { %v2154_v63 = vmul.f32 0.03125, %v2150_v61  ;;  %2223 = vrot.lane.b32.xlu0 %v2214_v46, %s4770_s1 }
 0xc15   : > { %v2148_v1 = vpop.xlane.xlu0 %2147 }
 0xc16   : > { %v2216_v3 = vmul.f32 %v2154_v63, %v2140_v59  ;;  %v2153_v5 = vmul.f32 0.03125, %v2148_v1 }
 0xc17   : > { %v2144_v7 = vpop.xlane.xlu1 %2143 }
 0xc18   : > { %v2215_v29 = vmul.f32 %v2153_v5, %v2139_v0  ;;  %v2151_v9 = vmul.f32 0.03125, %v2144_v7  ;;  %2227 = vrot.lane.b32.xlu0 %v2216_v3, %s4770_s1 }
 0xc19   : > { %v2190_v22 = vpop.xlane.xlu0 %2189 }
 0xc1a   : > { %v2213_v10 = vmul.f32 %v2151_v9, %v2137_v6  ;;  %v2194_v23 = vmul.f32 0.03125, %v2190_v22  ;;  %2225 = vrot.lane.b32.xlu1 %v2215_v29, %s4770_s1 }
 0xc1b   : > { %v2184_v12 = vpop.xlane.xlu1 %2183 }
 0xc1c   : > { %v2208_v14 = vsel %vm2204_vm1, %v2194_v23, 0.0  ;;  %v2191_v13 = vmul.f32 0.03125, %v2184_v12  ;;  %2221 = vrot.lane.b32.xlu0 %v2213_v10, %s4770_s1 }
 0xc1d   : > { %v2240_v15 = vmul.f32 %v2208_v14, %v2140_v59  ;;  %v2188_v16 = vpop.xlane.xlu0 %2187 }
 0xc1e   : > { %v2237_v17 = vmul.f32 %v2191_v13, %v2137_v6  ;;  %v2193_v18 = vmul.f32 0.03125, %v2188_v16 }
 0xc1f   : > { %2251 = vrot.lane.b32.xlu1 %v2240_v15, %s4774_s21  ;;  %v2164_v11 = vpop.xlane.xlu1 %2163 }
 0xc20   : > { %v2239_v21 = vmul.f32 %v2193_v18, %v2139_v0  ;;  %2245 = vrot.lane.b32.xlu0 %v2237_v17, %s4774_s21  ;;  %v2171_v33 = vmul.f32 0.03125, %v2164_v11 }
 0xc21   : > { %v2186_v24 = vpop.xlane.xlu0 %2185 }
 0xc22   : > { %v2192_v25 = vmul.f32 0.03125, %v2186_v24  ;;  %v2197_v26 = vsel %vm1858_vm8, %v2171_v33, 0.0  ;;  %v2313_v24 = vld [vmem:[%s6261_s8] sm:$0xff] }
 0xc23   : > { %2249 = vrot.lane.b32.xlu1 %v2239_v21, %s4774_s21  ;;  %v2168_v19 = vpop.xlane.xlu1 %2167  ;;  %v2209_v51 = vmul.f32 %v2197_v26, %v2137_v6  ;;  %4165 = vmatprep.mubr.msk.f32.mxu1 %vm1219_vm0, %v2313_v24 }
 0xc24   : > { %v2238_v31 = vmul.f32 %v2192_v25, %v5695_v36  ;;  %v2173_v47 = vmul.f32 0.03125, %v2168_v19 }
 0xc25   : > { %v2166_v43 = vpop.xlane.xlu0 %2165 }
 0xc26   : > { %v2172_v58 = vmul.f32 0.03125, %v2166_v43  ;;  %v2211_v38 = vmul.f32 %v2173_v47, %v2139_v0  ;;  %v2315_v47 = vld [vmem:[%s6261_s8 + $0x10] sm:$0xff] }
 0xc27   : > { %2247 = vrot.lane.b32.xlu1 %v2238_v31, %s4774_s21 }
 0xc28   : > { %v2210_v5 = vmul.f32 %v2172_v58, %v5695_v36 }
 0xc29   : > { %v2170_v40 = vpop.xlane.xlu0 %2169 }
 0xc2a   : > { %v2174_v41 = vmul.f32 0.03125, %v2170_v40 }
 0xc2c   : > { %v2212_v48 = vmul.f32 %v2174_v41, %v2140_v59 }
 0xc86   : > { %v2224_v20 = vpop.permute.xlu0 %2223 }
 0xc87   : > { %v2234_v29 = vadd.f32 %v2224_v20, %v2210_v5 }
 0xc8a   : > { %v2228_v32 = vpop.permute.xlu0 %2227 }
 0xc8b   : > { %v2236_v53 = vadd.f32 %v2228_v32, %v2212_v48  ;;  %v2316_v48 = vld [vmem:[%s6261_s8 + $0x18] sm:$0xff] }
 0xc8c   : > { %v2226_v45 = vpop.permute.xlu1 %2225 }
 0xc8d   : > { %v2235_v63 = vadd.f32 %v2226_v45, %v2211_v38 }
 0xc8e   : > { %v2222_v49 = vpop.permute.xlu0 %2221 }
 0xc8f   : > { %v2233_v55 = vadd.f32 %v2222_v49, %v2209_v51  ;;  %v2317_v49 = vld [vmem:[%s6261_s8 + $0x20] sm:$0xff]  ;;  %v2318_v51 = vld [vmem:[%s6261_s8 + $0x28] sm:$0xff] }
 0xc91   : > { %v2252_v57 = vpop.permute.xlu1 %2251 }
 0xc92   : > { %v2260_v39 = vadd.f32 %v2252_v57, %v2236_v53  ;;  %v2246_v46 = vpop.permute.xlu0 %2245  ;;  %v2319_v53 = vld [vmem:[%s6261_s8 + $0x30] sm:$0xff] }
 0xc93   : > { %v2257_v61 = vadd.f32 %v2246_v46, %v2233_v55  ;;  %v2320_v55 = vld [vmem:[%s6261_s8 + $0x38] sm:$0xff] }
 0xc94   : > { %v3685_v1 = vmul.f32 -1.442695, %v2260_v39 }
 0xc95   : > { %v3682_v2 = vmul.f32 -1.442695, %v2257_v61  ;;  %v2250_v3 = vpop.permute.xlu1 %2249 }
 0xc96   : > { %4569 = vpow2.f32 %v3685_v1  ;;  %v2259_v7 = vadd.f32 %v2250_v3, %v2235_v63 }
 0xc97   : > { %4571 = vpow2.f32 %v3682_v2 }
 0xc98   : > { %v3684_v59 = vmul.f32 -1.442695, %v2259_v7 }
 0xc99   : > { %v2248_v6 = vpop.permute.xlu1 %2247 }
 0xc9a   : > { %4573 = vpow2.f32 %v3684_v59  ;;  %v2258_v9 = vadd.f32 %v2248_v6, %v2234_v29 }
 0xc9c   : > { %v3683_v22 = vmul.f32 -1.442695, %v2258_v9 }
 0xc9e   : > { %4575 = vpow2.f32 %v3683_v22 }
 0xca3   : > { %v4570_v0 = vpop.eup %4569 }
 0xca4   : > { %v2276_v10 = vadd.f32 1.0, %v4570_v0  ;;  %v4572_v23 = vpop.eup %4571 }
 0xca5   : > { %v2273_v13 = vadd.f32 1.0, %v4572_v23 }
 0xca6   : > { %4577 = vrcp.f32 %v2276_v10 }
 0xca7   : > { %v4574_v12 = vpop.eup %4573 }
 0xca8   : > { %v2275_v14 = vadd.f32 1.0, %v4574_v12  ;;  %v1624_v12 = vld [vmem:[%s6259_s6 + $0x8] sm:$0xff] }
 0xca9   : > { %3668 = vmatprep.mubr.msk.f32.mxu0 %vm1687_vm3, %v1624_v12  ;;  %v4628_v12 = vld [vmem:[%s6267_s14 + $0x20] sm:$0xff] }
 0xcaa   : > { %4579 = vrcp.f32 %v2275_v14 }
 0xcab   : > { %v4576_v15 = vpop.eup %4575  ;;  %4581 = vrcp.f32 %v2273_v13 }
 0xcac   : > { %v2274_v36 = vadd.f32 1.0, %v4576_v15 }
 0xcae   : > { %4583 = vrcp.f32 %v2274_v36 }
 0xcb3   : > { %v4578_v16 = vpop.eup %4577 }
 0xcb4   : > { %2302 = vperm.xlu1 %4460, %v4578_v16  }
 0xcb7   : > { %v4580_v17 = vpop.eup %4579 }
 0xcb8   : > { %2297 = vperm.xlu0 %4459, %v4580_v17   ;;  %v4582_v18 = vpop.eup %4581 }
 0xcbb   : > { %v4584_v21 = vpop.eup %4583 }
 0xcbc   : > { %2292 = vperm.xlu1 %4460, %v4584_v21   ;;  %2287 = vperm.xlu0 %4459, %v4582_v18  }
 0xcc0   : > { %1653 = vrot.lane.b32.xlu1 %v5616_v50, %s4768_s27  ;;  %1649 = vrot.lane.b32.xlu0 %v5622_v54, %s4768_s27 }
 0xcc4   : > { %1651 = vrot.lane.b32.xlu1 %v5618_v52, %s4768_s27 }
 0xcc8   : > { %1645 = vrot.lane.b32.xlu1 %v5630_v37, %s4768_s27 }
 0xd2f   : > { %v2303_v25 = vpop.permute.xlu1 %2302 }
 0xd30   : > { %v2308_v31 = vmul.f32 %v2303_v25, %v5657_v34 }
 0xd32   : > { %v2312_v43 = vadd.f32 %v2308_v31, %v5657_v34 }
 0xd33   : > { %v2298_v11 = vpop.permute.xlu0 %2297 }
 0xd34   : > { %v2307_v40 = vmul.f32 %v2298_v11, %v5663_v35  ;;  %4157 = vmatprep.subr.mxu1 %v2312_v43 }
 0xd35   : > { %4158 = vmatpush3.msra.mxu1 %v2312_v43 }
 0xd36   : > { %v2311_v20 = vadd.f32 %v2307_v40, %v5663_v35  ;;  %v2314_v35 = vld [vmem:[%s6261_s8 + $0x8] sm:$0xff] }
 0xd37   : > { %v2293_v33 = vpop.permute.xlu1 %2292  ;;  %v2288_v19 = vpop.permute.xlu0 %2287 }
 0xd38   : > { %v2306_v41 = vmul.f32 %v2293_v33, %v5653_v28  ;;  %v2305_v32 = vmul.f32 %v2288_v19, %v5660_v44  ;;  %4159 = vmatprep.subr.mxu1 %v2311_v20 }
 0xd39   : > { %4160 = vmatpush3.msra.mxu1 %v2311_v20 }
 0xd3a   : > { %v2310_v26 = vadd.f32 %v2306_v41, %v5653_v28  ;;  %v2309_v34 = vadd.f32 %v2305_v32, %v5660_v44 }
 0xd3b   : > { %v1654_v45 = vpop.permute.xlu1 %1653  ;;  %v1650_v44 = vpop.permute.xlu0 %1649 }
 0xd3c   : > { %3652 = vmatpush1.msk.msra.mxu0 %vm5520_vm15, %v1654_v45  ;;  %4161 = vmatprep.subr.mxu1 %v2310_v26 }
 0xd3d   : > { %4162 = vmatpush3.msra.mxu1 %v2310_v26  ;;  %1730 = vmatprep.subr.mxu0 %v4776_v30 }
 0xd3e   : > { %4163 = vmatprep.subr.mxu1 %v2309_v34 }
 0xd3f   : > { %v1652_v28 = vpop.permute.xlu1 %1651  ;;  %4164 = vmatpush3.msra.mxu1 %v2309_v34 }
 0xd40   : > { %3653 = vmatpush1.msk.msra.mxu0 %vm5520_vm15, %v1652_v28  ;;  %4166 = vmatmul.mubr.msk.f32.vlgmr.msra.gmra.mxu1 %vm1219_vm0, %v2314_v35 }
 0xd41   : > { %1732 = vmatprep.subr.mxu0 %v4776_v30  ;;  %4168 = vmatprep.mubr.msk.f32.mxu1 %vm1219_vm0, %v2315_v47 }
 0xd42   : > { %3654 = vmatpush1.msk.msra.mxu0 %vm5520_vm15, %v1650_v44 }
 0xd43   : > { %1734 = vmatprep.subr.mxu0 %v4776_v30 }
 0xd44   : > { %4169 = vmatmul.mubr.msk.f32.gmra.mxu1 %vm1219_vm0, %v2316_v48 }
 0xd45   : > { %4171 = vmatprep.mubr.msk.f32.mxu1 %vm1219_vm0, %v2317_v49  ;;  %v1623_v49 = vld [vmem:[%s6259_s6] sm:$0xff] }
 0xd48   : > { %4172 = vmatmul.mubr.msk.f32.gmra.mxu1 %vm1219_vm0, %v2318_v51 }
 0xd49   : > { %4174 = vmatprep.mubr.msk.f32.mxu1 %vm1219_vm0, %v2319_v53  ;;  %v1626_v53 = vld [vmem:[%s6259_s6 + $0x18] sm:$0xff] }
 0xd4c   : > { %4175 = vmatmul.mubr.msk.f32.gmra.mxu1 %vm1219_vm0, %v2320_v55  ;;  %v4617_v55 = vld [vmem:[%s6267_s14 + $0x78] sm:$0xff]  ;;  %vm4777_vm0 = vmmov 0  }
 0xe00   : > { %v4167_v57 = vpop.f32.mrf.mxu1 }
 0xe01   : > { %v2451_v38 = vmax.f32 %v4167_v57, 0.0  ;;  %v1625_v57 = vld [vmem:[%s6259_s6 + $0x10] sm:$0xff] }
 0xe02   : > { %v2411_v58 = vpop.f32.mrf.mxu1 }
 0xe03   : > { %v2450_v39 = vmax.f32 %v2411_v58, 0.0  ;;  %v4618_v58 = vld [vmem:[%s6267_s14 + $0x70] sm:$0xff] }
 0xe04   : > { %v4170_v46 = vpop.f32.mrf.mxu1 }
 0xe05   : > { %v4481_v61 = vpack.i.bf16 %v2451_v38, %v2450_v39  ;;  %v2453_v1 = vmax.f32 %v4170_v46, 0.0  ;;  %v4620_v46 = vld [vmem:[%s6267_s14 + $0x60] sm:$0xff] }
 0xe06   : > { %v2421_v63 = vpop.f32.mrf.mxu1 }
 0xe07   : > { %v2452_v2 = vmax.f32 %v2421_v63, 0.0  ;;  %4482 = vrot.lane.b32.xlu0 %v4481_v61, %s4770_s1  ;;  %v1630_v61 = vld [vmem:[%s6259_s6 + $0x38] sm:$0xff] }
 0xe08   : > { %v4173_v3 = vpop.f32.mrf.mxu1  ;;  %v4621_v63 = vld [vmem:[%s6267_s14 + $0x58] sm:$0xff] }
 0xe09   : > { %v4486_v5 = vpack.i.bf16 %v2453_v1, %v2452_v2  ;;  %v2455_v29 = vmax.f32 %v4173_v3, 0.0  ;;  %v1632_v3 = vld [vmem:[%s6259_s6 + $0x48] sm:$0xff] }
 0xe0a   : > { %v2431_v7 = vpop.f32.mrf.mxu1 }
 0xe0b   : > { %v2454_v59 = vmax.f32 %v2431_v7, 0.0  ;;  %1647 = vrot.lane.b32.xlu0 %v5626_v56, %s4768_s27  ;;  %4487 = vrot.lane.b32.xlu1 %v4486_v5, %s4770_s1  ;;  %v4623_v5 = vld [vmem:[%s6267_s14 + $0x48] sm:$0xff]  ;;  %v1631_v7 = vld [vmem:[%s6259_s6 + $0x40] sm:$0xff] }
 0xe0c   : > { %v4176_v6 = vpop.f32.mrf.mxu1 }
 0xe0d   : > { %v4491_v9 = vpack.i.bf16 %v2455_v29, %v2454_v59  ;;  %v2457_v22 = vmax.f32 %v4176_v6, 0.0  ;;  %v4625_v6 = vld [vmem:[%s6267_s14 + $0x38] sm:$0xff] }
 0xe0e   : > { %v2441_v0 = vpop.f32.mrf.mxu1 }
 0xe0f   : > { %v2456_v10 = vmax.f32 %v2441_v0, 0.0  ;;  %1643 = vrot.lane.b32.xlu1 %v5634_v42, %s4768_s27  ;;  %4492 = vrot.lane.b32.xlu0 %v4491_v9, %s4770_s1  ;;  %v1633_v9 = vld [vmem:[%s6259_s6 + $0x50] sm:$0xff]  ;;  %v1636_v0 = vld [vmem:[%s6259_s6 + $0x68] sm:$0xff] }
 0xe11   : > { %v4496_v23 = vpack.i.bf16 %v2457_v22, %v2456_v10 }
 0xe13   : > { %1641 = vrot.lane.b32.xlu0 %v5639_v60, %s4768_s27  ;;  %4497 = vrot.lane.b32.xlu1 %v4496_v23, %s4770_s1  ;;  %v1635_v23 = vld [vmem:[%s6259_s6 + $0x60] sm:$0xff] }
 0xe17   : > { %1639 = vrot.lane.b32.xlu0 %v5643_v62, %s4768_s27  ;;  %1677 = vrot.lane.b32.xlu1 %v5616_v50, %s4770_s1  ;;  %v1646_v50 = vpop.permute.xlu1 %1645 }
 0xe1b   : > { %1675 = vrot.lane.b32.xlu0 %v5618_v52, %s4770_s1  ;;  %1673 = vrot.lane.b32.xlu1 %v5622_v54, %s4770_s1 }
 0xe1f   : > { %1671 = vrot.lane.b32.xlu0 %v5626_v56, %s4770_s1  ;;  %1669 = vrot.lane.b32.xlu1 %v5630_v37, %s4770_s1 }
 0xe23   : > { %1667 = vrot.lane.b32.xlu0 %v5634_v42, %s4770_s1  ;;  %1665 = vrot.lane.b32.xlu1 %v5639_v60, %s4770_s1 }
 0xe27   : > { %1663 = vrot.lane.b32.xlu0 %v5643_v62, %s4770_s1 }
 0xe79   : > { %v4483_v52 = vpop.permute.xlu0 %4482 }
 0xe7a   : > { %v4485_v54 = vunpack.i.h.bf16 %v4483_v52  ;;  %v4484_v14 = vunpack.i.l.bf16 %v4483_v52  ;;  %v4629_v52 = vld [vmem:[%s6267_s14 + $0x18] sm:$0xff] }
 0xe7c   : > { %v5809_v13 = vmax.f32 %v2451_v38, %v4485_v54  ;;  %v5811_v15 = vmax.f32 %v2450_v39, %v4484_v14  ;;  %v4619_v38 = vld [vmem:[%s6267_s14 + $0x68] sm:$0xff]  ;;  %v1627_v39 = vld [vmem:[%s6259_s6 + $0x20] sm:$0xff]  ;;  %v1637_v54 = vld [vmem:[%s6259_s6 + $0x70] sm:$0xff] }
 0xe7d   : > { %v4488_v56 = vpop.permute.xlu1 %4487  ;;  %v1648_v36 = vpop.permute.xlu0 %1647  ;;  %v4630_v14 = vld [vmem:[%s6267_s14 + $0x10] sm:$0xff] }
 0xe7e   : > { %v4501_v37 = vpack.i.bf16 %v5809_v13, %v5811_v15  ;;  %v4490_v42 = vunpack.i.h.bf16 %v4488_v56  ;;  %v4489_v16 = vunpack.i.l.bf16 %v4488_v56  ;;  %3655 = vmatpush1.msk.msra.mxu0 %vm5520_vm15, %v1648_v36  ;;  %v4631_v56 = vld [vmem:[%s6267_s14 + $0x8] sm:$0xff]  ;;  %v4632_v36 = vld [vmem:[%s6267_s14] sm:$0xff] }
 0xe7f   : > { %1736 = vmatprep.subr.mxu0 %v4776_v30 }
 0xe80   : > { %v5818_v60 = vmax.f32 %v2453_v1, %v4490_v42  ;;  %v5820_v62 = vmax.f32 %v2452_v2, %v4489_v16  ;;  %3656 = vmatpush1.msk.msra.mxu0 %vm5520_vm15, %v1646_v50  ;;  %4502 = vrot.lane.b32.xlu1 %v4501_v37, %s4774_s21  ;;  %v1629_v1 = vld [vmem:[%s6259_s6 + $0x30] sm:$0xff]  ;;  %v1638_v50 = vld [vmem:[%s6259_s6 + $0x78] sm:$0xff] }
 0xe81   : > { %v1644_v17 = vpop.permute.xlu1 %1643  ;;  %1738 = vmatprep.subr.mxu0 %v4776_v30  ;;  %v4493_v18 = vpop.permute.xlu0 %4492  ;;  %v4622_v2 = vld [vmem:[%s6267_s14 + $0x50] sm:$0xff] }
 0xe82   : > { %v4506_v21 = vpack.i.bf16 %v5818_v60, %v5820_v62  ;;  %v4495_v24 = vunpack.i.h.bf16 %v4493_v18  ;;  %v4494_v25 = vunpack.i.l.bf16 %v4493_v18  ;;  %3657 = vmatpush1.msk.msra.mxu0 %vm5520_vm15, %v1644_v17 }
 0xe83   : > { %1740 = vmatprep.subr.mxu0 %v4776_v30 }
 0xe84   : > { %v5831_v31 = vmax.f32 %v2455_v29, %v4495_v24  ;;  %v5833_v43 = vmax.f32 %v2454_v59, %v4494_v25  ;;  %4507 = vrot.lane.b32.xlu0 %v4506_v21, %s4774_s21  ;;  %v4624_v29 = vld [vmem:[%s6267_s14 + $0x40] sm:$0xff]  ;;  %v1634_v59 = vld [vmem:[%s6259_s6 + $0x58] sm:$0xff] }
 0xe85   : > { %v4498_v11 = vpop.permute.xlu1 %4497  ;;  %v1642_v40 = vpop.permute.xlu0 %1641 }
 0xe86   : > { %v4511_v20 = vpack.i.bf16 %v5831_v31, %v5833_v43  ;;  %v4500_v33 = vunpack.i.h.bf16 %v4498_v11  ;;  %v4499_v19 = vunpack.i.l.bf16 %v4498_v11  ;;  %3658 = vmatpush1.msk.msra.mxu0 %vm5520_vm15, %v1642_v40 }
 0xe87   : > { %1742 = vmatprep.subr.mxu0 %v4776_v30 }
 0xe88   : > { %v5841_v41 = vmax.f32 %v2457_v22, %v4500_v33  ;;  %v5843_v32 = vmax.f32 %v2456_v10, %v4499_v19  ;;  %4512 = vrot.lane.b32.xlu1 %v4511_v20, %s4774_s21  ;;  %v4626_v22 = vld [vmem:[%s6267_s14 + $0x30] sm:$0xff]  ;;  %v4627_v10 = vld [vmem:[%s6267_s14 + $0x28] sm:$0xff] }
 0xe89   : > { %v1678_v26 = vpop.permute.xlu1 %1677  ;;  %v1640_v45 = vpop.permute.xlu0 %1639 }
 0xe8a   : > { %v4516_v34 = vpack.i.bf16 %v5841_v41, %v5843_v32  ;;  %3659 = vmatpush1.msk.msra.mxu0 %vm5520_vm15, %v1640_v45 }
 0xe8b   : > { %1760 = vmatprep.subr.mxu0 %v4776_v30 }
 0xe8c   : > { %4517 = vrot.lane.b32.xlu0 %v4516_v34, %s4774_s21  ;;  %3660 = vmatpush2.msk.msra.mxu0 %vm5495_vm12, %v1678_v26 }
 0xe8d   : > { %v1674_v35 = vpop.permute.xlu1 %1673  ;;  %1762 = vmatprep.subr.mxu0 %v4776_v30  ;;  %v1676_v47 = vpop.permute.xlu0 %1675 }
 0xe8e   : > { %3661 = vmatpush2.msk.msra.mxu0 %vm5495_vm12, %v1676_v47 }
 0xe8f   : > { %1764 = vmatprep.subr.mxu0 %v4776_v30 }
 0xe90   : > { %3662 = vmatpush2.msk.msra.mxu0 %vm5495_vm12, %v1674_v35 }
 0xe91   : > { %v1670_v8 = vpop.permute.xlu1 %1669  ;;  %1766 = vmatprep.subr.mxu0 %v4776_v30  ;;  %v1672_v28 = vpop.permute.xlu0 %1671 }
 0xe92   : > { %3663 = vmatpush2.msk.msra.mxu0 %vm5495_vm12, %v1672_v28 }
 0xe93   : > { %1768 = vmatprep.subr.mxu0 %v4776_v30 }
 0xe94   : > { %3664 = vmatpush2.msk.msra.mxu0 %vm5495_vm12, %v1670_v8 }
 0xe95   : > { %1770 = vmatprep.subr.mxu0 %v4776_v30  ;;  %v1668_v44 = vpop.permute.xlu0 %1667  ;;  %v1666_v48 = vpop.permute.xlu1 %1665 }
 0xe96   : > { %3665 = vmatpush2.msk.msra.mxu0 %vm5495_vm12, %v1668_v44 }
 0xe97   : > { %1772 = vmatprep.subr.mxu0 %v4776_v30 }
 0xe98   : > { %3666 = vmatpush2.msk.msra.mxu0 %vm5495_vm12, %v1666_v48 }
 0xe99   : > { %1774 = vmatprep.subr.mxu0 %v4776_v30  ;;  %v1664_v51 = vpop.permute.xlu0 %1663 }
 0xe9a   : > { %3667 = vmatpush2.msk.msra.mxu0 %vm5495_vm12, %v1664_v51 }
 0xe9b   : > { %1777 = vmatmul.mubr.f32.vlgmr.msra.gmra.mxu0 %v1623_v49  ;;  %4177 = vmatprep.subr.mxu0 %v4617_v55 }
 0xe9c   : > { %4178 = vmatpush3.msra.mxu0 %v4617_v55  ;;  %3669 = vmatprep.mubr.msk.f32.mxu0 %vm1687_vm3, %v1626_v53 }
 0xe9d   : > { %4179 = vmatprep.subr.mxu0 %v4618_v58 }
 0xe9e   : > { %4180 = vmatpush3.msra.mxu0 %v4618_v58 }
 0xe9f   : > { %1782 = vmatmul.mubr.f32.gmra.mxu0 %v1625_v57  ;;  %4181 = vmatprep.subr.mxu0 %v4619_v38 }
 0xea0   : > { %4182 = vmatpush3.msra.mxu0 %v4619_v38  ;;  %3670 = vmatprep.mubr.msk.f32.mxu0 %vm1687_vm3, %v1628_v4 }
 0xea1   : > { %4183 = vmatprep.subr.mxu0 %v4620_v46 }
 0xea2   : > { %4184 = vmatpush3.msra.mxu0 %v4620_v46 }
 0xea3   : > { %1787 = vmatmul.mubr.f32.gmra.mxu0 %v1627_v39  ;;  %4185 = vmatprep.subr.mxu0 %v4621_v63 }
 0xea4   : > { %4186 = vmatpush3.msra.mxu0 %v4621_v63  ;;  %3671 = vmatprep.mubr.msk.f32.mxu0 %vm1687_vm3, %v1630_v61 }
 0xea5   : > { %4187 = vmatprep.subr.mxu0 %v4622_v2 }
 0xea6   : > { %4188 = vmatpush3.msra.mxu0 %v4622_v2 }
 0xea7   : > { %1792 = vmatmul.mubr.f32.gmra.mxu0 %v1629_v1  ;;  %4189 = vmatprep.subr.mxu0 %v4623_v5 }
 0xea8   : > { %4190 = vmatpush3.msra.mxu0 %v4623_v5  ;;  %3672 = vmatprep.mubr.msk.f32.mxu0 %vm1687_vm3, %v1632_v3 }
 0xea9   : > { %4191 = vmatprep.subr.mxu0 %v4624_v29 }
 0xeaa   : > { %4192 = vmatpush3.msra.mxu0 %v4624_v29 }
 0xeab   : > { %1797 = vmatmul.mubr.f32.gmra.mxu0 %v1631_v7  ;;  %4193 = vmatprep.subr.mxu0 %v4625_v6 }
 0xeac   : > { %4194 = vmatpush3.msra.mxu0 %v4625_v6  ;;  %3673 = vmatprep.mubr.msk.f32.mxu0 %vm1687_vm3, %v1634_v59 }
 0xead   : > { %4195 = vmatprep.subr.mxu0 %v4626_v22 }
 0xeae   : > { %4196 = vmatpush3.msra.mxu0 %v4626_v22 }
 0xeaf   : > { %1802 = vmatmul.mubr.f32.gmra.mxu0 %v1633_v9  ;;  %4197 = vmatprep.subr.mxu0 %v4627_v10 }
 0xeb0   : > { %4198 = vmatpush3.msra.mxu0 %v4627_v10  ;;  %3674 = vmatprep.mubr.msk.f32.mxu0 %vm1687_vm3, %v1636_v0 }
 0xeb1   : > { %4199 = vmatprep.subr.mxu0 %v4628_v12 }
 0xeb2   : > { %4200 = vmatpush3.msra.mxu0 %v4628_v12 }
 0xeb3   : > { %1807 = vmatmul.mubr.f32.gmra.mxu0 %v1635_v23  ;;  %4201 = vmatprep.subr.mxu0 %v4629_v52 }
 0xeb4   : > { %4202 = vmatpush3.msra.mxu0 %v4629_v52  ;;  %3675 = vmatprep.mubr.msk.f32.mxu0 %vm1687_vm3, %v1638_v50 }
 0xeb5   : > { %4203 = vmatprep.subr.mxu0 %v4630_v14 }
 0xeb6   : > { %4204 = vmatpush3.msra.mxu0 %v4630_v14 }
 0xeb7   : > { %1812 = vmatmul.mubr.f32.gmra.mxu0 %v1637_v54  ;;  %4205 = vmatprep.subr.mxu0 %v4631_v56 }
 0xeb8   : > { %4206 = vmatpush3.msra.mxu0 %v4631_v56 }
 0xeb9   : > { %4207 = vmatprep.subr.mxu0 %v4632_v36 }
 0xeba   : > { %4208 = vmatpush3.msra.mxu0 %v4632_v36 }
 0xef2   : > { %v4503_v37 = vpop.permute.xlu1 %4502 }
 0xef3   : > { %v4505_v42 = vunpack.i.h.bf16 %v4503_v37  ;;  %v4504_v16 = vunpack.i.l.bf16 %v4503_v37 }
 0xef5   : > { %v2499_v17 = vmax.f32 %v5809_v13, %v4505_v42  ;;  %v2498_v18 = vmax.f32 %v5811_v15, %v4504_v16 }
 0xef6   : > { %v4508_v21 = vpop.permute.xlu0 %4507 }
 0xef7   : > { %v4510_v24 = vunpack.i.h.bf16 %v4508_v21  ;;  %v4509_v25 = vunpack.i.l.bf16 %v4508_v21  ;;  %4209 = vmatprep.mubr.f32.mxu0 %v2498_v18 }
 0xef8   : > { %4210 = vmatmul.mubr.f32.vlgmr.msra.gmra.mxu0 %v2499_v17 }
 0xef9   : > { %v2501_v11 = vmax.f32 %v5818_v60, %v4510_v24  ;;  %v2500_v40 = vmax.f32 %v5820_v62, %v4509_v25 }
 0xefa   : > { %v4513_v20 = vpop.permute.xlu1 %4512 }
 0xefb   : > { %v4515_v33 = vunpack.i.h.bf16 %v4513_v20  ;;  %v4514_v19 = vunpack.i.l.bf16 %v4513_v20  ;;  %4212 = vmatprep.mubr.f32.mxu0 %v2500_v40 }
 0xefc   : > { %4213 = vmatmul.mubr.f32.gmra.mxu0 %v2501_v11 }
 0xefd   : > { %v2503_v26 = vmax.f32 %v5831_v31, %v4515_v33  ;;  %v2502_v13 = vmax.f32 %v5833_v43, %v4514_v19 }
 0xefe   : > { %v4518_v45 = vpop.permute.xlu0 %4517 }
 0xeff   : > { %v4520_v15 = vunpack.i.h.bf16 %v4518_v45  ;;  %v4519_v34 = vunpack.i.l.bf16 %v4518_v45  ;;  %4215 = vmatprep.mubr.f32.mxu0 %v2502_v13 }
 0xf00   : > { %4216 = vmatmul.mubr.f32.gmra.mxu0 %v2503_v26 }
 0xf01   : > { %v2505_v35 = vmax.f32 %v5841_v41, %v4520_v15  ;;  %v2504_v60 = vmax.f32 %v5843_v32, %v4519_v34 }
 0xf03   : > { %4218 = vmatprep.mubr.f32.mxu0 %v2504_v60 }
 0xf04   : > { %4219 = vmatmul.mubr.f32.gmra.mxu0 %v2505_v35 }
 0xf5b   : > { %v1778_v62 = vpop.f32.mrf.mxu0 }
 0xf5c   : > { %v1817_v54 = vmax.f32 %v1778_v62, 0.0 }
 0xf5d   : > { %v1780_v47 = vpop.f32.mrf.mxu0 }
 0xf5f   : > { %v1783_v8 = vpop.f32.mrf.mxu0 }
 0xf60   : > { %v1818_v38 = vmax.f32 %v1783_v8, 0.0 }
 0xf61   : > { %v1785_v28 = vpop.f32.mrf.mxu0 }
 0xf63   : > { %v1788_v44 = vpop.f32.mrf.mxu0 }
 0xf64   : > { %v1819_v3 = vmax.f32 %v1788_v44, 0.0 }
 0xf65   : > { %v1790_v48 = vpop.f32.mrf.mxu0 }
 0xf67   : > { %v1793_v31 = vpop.f32.mrf.mxu0 }
 0xf68   : > { %v1820_v61 = vmax.f32 %v1793_v31, 0.0 }
 0xf69   : > { %v1795_v49 = vpop.f32.mrf.mxu0 }
 0xf6b   : > { %v1798_v43 = vpop.f32.mrf.mxu0 }
 0xf6c   : > { %v1821_v29 = vmax.f32 %v1798_v43, 0.0 }
 0xf6d   : > { %v1800_v51 = vpop.f32.mrf.mxu0 }
 0xf6f   : > { %v1803_v53 = vpop.f32.mrf.mxu0 }
 0xf70   : > { %v1822_v5 = vmax.f32 %v1803_v53, 0.0 }
 0xf71   : > { %v1805_v55 = vpop.f32.mrf.mxu0 }
 0xf72   : > { %v6058_v55 = vld [vmem:[%s6265_s12 + $0x18] sm:$0xff] }
 0xf73   : > { %v1808_v57 = vpop.f32.mrf.mxu0 }
 0xf74   : > { %v1823_v37 = vmax.f32 %v1808_v57, 0.0 }
 0xf75   : > { %v1810_v58 = vpop.f32.mrf.mxu0 }
 0xf77   : > { %v1813_v4 = vpop.f32.mrf.mxu0 }
 0xf78   : > { %v1824_v50 = vmax.f32 %v1813_v4, 0.0 }
 0xf79   : > { %v1815_v41 = vpop.f32.mrf.mxu0 }
 0xfb8   : > { %v4211_v32 = vpop.f32.mrf.mxu0 }
 0xfb9   : > { %v5983_v39 = vadd.f32 %v4211_v32, %v1818_v38  ;;  %v6065_v38 = vld [vmem:[%s6265_s12 + $0x28] sm:$0xff] }
 0xfba   : > { %v2572_v46 = vpop.f32.mrf.mxu0 }
 0xfbb   : > { %2633 = vadd.xlane.f32.xlu1 %v5983_v39  ;;  %v6007_v42 = vadd.f32 %v2572_v46, %v1817_v54  ;;  %v2696_v25 = vrot.slane %v5983_v39, 1  ;;  %v2656_v15 = vrot.slane %v5983_v39, 7  ;;  %v6086_v54 = vld [vmem:[%s6265_s12 + $0x30] sm:$0xff] }
 0xfbc   : > { %v4214_v63 = vpop.f32.mrf.mxu0 }
 0xfbd   : > { %v5986_v1 = vadd.f32 %v4214_v63, %v1820_v61  ;;  %v2695_v18 = vrot.slane %v6007_v42, 1  ;;  %v2655_v62 = vrot.slane %v6007_v42, 7  ;;  %v6070_v61 = vld [vmem:[%s6265_s12 + $0x20] sm:$0xff] }
 0xfbe   : > { %v2582_v2 = vpop.f32.mrf.mxu0 }
 0xfbf   : > { %2637 = vadd.xlane.f32.xlu1 %v5986_v1  ;;  %v5989_v59 = vadd.f32 %v2582_v2, %v1819_v3  ;;  %v2698_v52 = vrot.slane %v5986_v1, 1  ;;  %v2709_v11 = vsel %vm1849_vm2, %v2695_v18, %v2696_v25  ;;  %v2658_v33 = vrot.slane %v5986_v1, 7 }
 0xfc0   : > { %v4217_v7 = vpop.f32.mrf.mxu0  ;;  %v2669_v43 = vsel %vm1838_vm6, %v2655_v62, %v2656_v15 }
 0xfc1   : > { %v5991_v6 = vadd.f32 %v4217_v7, %v1822_v5  ;;  %v2657_v26 = vrot.slane %v5989_v59, 7  ;;  %v2697_v45 = vrot.slane %v5989_v59, 1 }
 0xfc2   : > { %v2592_v9 = vpop.f32.mrf.mxu0 }
 0xfc3   : > { %v5993_v22 = vadd.f32 %v2592_v9, %v1821_v29  ;;  %2635 = vadd.xlane.f32.xlu1 %v5989_v59  ;;  %v2700_v10 = vrot.slane %v5991_v6, 1  ;;  %v2668_v34 = vsel %vm1838_vm6, %v2656_v15, %v2657_v26  ;;  %v2707_v60 = vsel %vm1849_vm2, %v2697_v45, %v2698_v52 }
 0xfc4   : > { %v4220_v23 = vpop.f32.mrf.mxu0  ;;  %v2708_v28 = vsel %vm1849_vm2, %v2696_v25, %v2697_v45  ;;  %v2660_v44 = vrot.slane %v5991_v6, 7  ;;  %v2667_v49 = vsel %vm1838_vm6, %v2657_v26, %v2658_v33 }
 0xfc5   : > { %v2699_v0 = vrot.slane %v5993_v22, 1  ;;  %v6002_v14 = vadd.f32 %v4220_v23, %v1824_v50  ;;  %v2659_v40 = vrot.slane %v5993_v22, 7 }
 0xfc6   : > { %v2602_v56 = vpop.f32.mrf.mxu0 }
 0xfc7   : > { %2641 = vadd.xlane.f32.xlu1 %v5991_v6  ;;  %v2705_v12 = vsel %vm1849_vm2, %v2699_v0, %v2700_v10  ;;  %v2706_v36 = vsel %vm1849_vm2, %v2698_v52, %v2699_v0  ;;  %v6009_v16 = vadd.f32 %v2602_v56, %v1823_v37  ;;  %v2702_v17 = vrot.slane %v6002_v14, 1 }
 0xfc8   : > { %2719 = vadd.xlane.f32.xlu0 %v2705_v12  ;;  %v2666_v19 = vsel %vm1838_vm6, %v2658_v33, %v2659_v40  ;;  %v2662_v35 = vrot.slane %v6002_v14, 7  ;;  %v2665_v31 = vsel %vm1838_vm6, %v2659_v40, %v2660_v44  ;;  %v6081_v12 = vld [vmem:[%s6265_s12 + $0x38] sm:$0xff] }
 0xfc9   : > { %v2710_v21 = vsel %vm1849_vm2, %v2702_v17, %v2695_v18  ;;  %v2701_v24 = vrot.slane %v6009_v16, 1  ;;  %v2661_v8 = vrot.slane %v6009_v16, 7 }
 0xfca   : > { %v2670_v47 = vsel %vm1838_vm6, %v2662_v35, %v2655_v62 }
 0xfcb   : > { %2639 = vadd.xlane.f32.xlu1 %v5993_v22  ;;  %v2703_v20 = vsel %vm1849_vm2, %v2701_v24, %v2702_v17  ;;  %v2704_v13 = vsel %vm1849_vm2, %v2700_v10, %v2701_v24  ;;  %v2664_v48 = vsel %vm1838_vm6, %v2660_v44, %v2661_v8  ;;  %v2663_v51 = vsel %vm1838_vm6, %v2661_v8, %v2662_v35 }
 0xfcc   : > { %2717 = vadd.xlane.f32.xlu0 %v2706_v36  ;;  %v2630_v36 = vadd.s32 56, %v5011_v27  ;;  %vm3476_vm2 = vcmask 1044480   ;;  %vm3483_vm6 = vcmask 4096  }
 0xfce   : > { %vm2754_vm5 = vcmp.lt.s32.totalorder %v2630_v36, 63 }
 0xfcf   : > { %2645 = vadd.xlane.f32.xlu1 %v6002_v14 }
 0xfd0   : > { %2643 = vadd.xlane.f32.xlu0 %v6009_v16 }
 0xfd3   : > { %2631 = vadd.xlane.f32.xlu1 %v6007_v42 }
 0xfd4   : > { %2725 = vadd.xlane.f32.xlu0 %v2710_v21  ;;  %v6095_v21 = vld [vmem:[%s6265_s12 + $0x10] sm:$0xff] }
 0xfd7   : > { %2711 = vadd.xlane.f32.xlu1 %v2709_v11 }
 0xfd8   : > { %2723 = vadd.xlane.f32.xlu0 %v2703_v20 }
 0xfdb   : > { %2679 = vadd.xlane.f32.xlu1 %v2666_v19  ;;  %v6104_v19 = vld [vmem:[%s6265_s12 + $0x8] sm:$0xff] }
 0xfdc   : > { %2721 = vadd.xlane.f32.xlu0 %v2704_v13 }
 0xfdf   : > { %2675 = vadd.xlane.f32.xlu1 %v2668_v34 }
 0xfe0   : > { %2715 = vadd.xlane.f32.xlu0 %v2707_v60  ;;  %v6113_v60 = vld [vmem:[%s6265_s12] sm:$0xff] }
 0xfe3   : > { %2671 = vadd.xlane.f32.xlu1 %v2670_v47 }
 0xfe4   : > { %2713 = vadd.xlane.f32.xlu0 %v2708_v28 }
 0xfe7   : > { %2683 = vadd.xlane.f32.xlu1 %v2664_v48 }
 0xfe8   : > { %2681 = vadd.xlane.f32.xlu0 %v2665_v31 }
 0xfec   : > { %2677 = vadd.xlane.f32.xlu0 %v2667_v49 }
 0xff0   : > { %2673 = vadd.xlane.f32.xlu0 %v2669_v43 }
 0xff4   : > { %2685 = vadd.xlane.f32.xlu0 %v2663_v51 }
0x1044   : > { %v2634_v53 = vpop.xlane.xlu1 %2633 }
0x1045   : > { %v2648_v20 = vmul.f32 0.125, %v2634_v53 }
0x1047   : > { %v2772_v34 = vmul.f32 %v2648_v20, %v6104_v19 }
0x1048   : > { %v2638_v57 = vpop.xlane.xlu1 %2637 }
0x1049   : > { %v2650_v58 = vmul.f32 0.125, %v2638_v57 }
0x104b   : > { %v2774_v4 = vmul.f32 %v2650_v58, %v6058_v55 }
0x104c   : > { %v2636_v41 = vpop.xlane.xlu1 %2635 }
0x104d   : > { %2793 = vrot.lane.b32.xlu0 %v2774_v4, %s4770_s1  ;;  %v2649_v17 = vmul.f32 0.125, %v2636_v41 }
0x104f   : > { %v2773_v33 = vmul.f32 %v2649_v17, %v6095_v21 }
0x1050   : > { %v2642_v32 = vpop.xlane.xlu1 %2641 }
0x1051   : > { %v2652_v46 = vmul.f32 0.125, %v2642_v32  ;;  %v2720_v63 = vpop.xlane.xlu0 %2719 }
0x1052   : > { %v2731_v2 = vmul.f32 0.125, %v2720_v63 }
0x1053   : > { %v2776_v3 = vmul.f32 %v2652_v46, %v6065_v38 }
0x1054   : > { %v2823_v5 = vmul.f32 %v2731_v2, %v6070_v61  ;;  %v2640_v7 = vpop.xlane.xlu1 %2639 }
0x1055   : > { %v2651_v29 = vmul.f32 0.125, %v2640_v7  ;;  %v2718_v9 = vpop.xlane.xlu0 %2717  ;;  %2797 = vrot.lane.b32.xlu0 %v2776_v3, %s4770_s1 }
0x1056   : > { %v2730_v0 = vmul.f32 0.125, %v2718_v9  ;;  %2843 = vrot.lane.b32.xlu1 %v2823_v5, %s4774_s21 }
0x1057   : > { %v2775_v10 = vmul.f32 %v2651_v29, %v6070_v61 }
0x1058   : > { %v2822_v23 = vmul.f32 %v2730_v0, %v6058_v55  ;;  %v2646_v50 = vpop.xlane.xlu1 %2645 }
0x1059   : > { %v2654_v52 = vmul.f32 0.125, %v2646_v50  ;;  %v2644_v56 = vpop.xlane.xlu0 %2643  ;;  %2795 = vrot.lane.b32.xlu0 %v2775_v10, %s4770_s1 }
0x105a   : > { %v2653_v37 = vmul.f32 0.125, %v2644_v56  ;;  %2841 = vrot.lane.b32.xlu1 %v2822_v23, %s4774_s21 }
0x105b   : > { %v2778_v18 = vmul.f32 %v2654_v52, %v6081_v12 }
0x105c   : > { %v2777_v24 = vmul.f32 %v2653_v37, %v6086_v54  ;;  %v2632_v11 = vpop.xlane.xlu1 %2631 }
0x105d   : > { %v2726_v25 = vpop.xlane.xlu0 %2725  ;;  %2801 = vrot.lane.b32.xlu0 %v2778_v18, %s4770_s1  ;;  %v2647_v35 = vmul.f32 0.125, %v2632_v11 }
0x105e   : > { %v2734_v40 = vmul.f32 0.125, %v2726_v25  ;;  %2799 = vrot.lane.b32.xlu1 %v2777_v24, %s4770_s1 }
0x105f   : > { %v2771_v44 = vmul.f32 %v2647_v35, %v6113_v60 }
0x1060   : > { %v2762_v26 = vsel %vm2754_vm5, %v2734_v40, 0.0  ;;  %v2712_v62 = vpop.xlane.xlu1 %2711 }
0x1061   : > { %v2826_v13 = vmul.f32 %v2762_v26, %v6081_v12  ;;  %v2724_v45 = vpop.xlane.xlu0 %2723  ;;  %2791 = vrot.lane.b32.xlu0 %v2773_v33, %s4770_s1  ;;  %v2727_v48 = vmul.f32 0.125, %v2712_v62 }
0x1062   : > { %v2733_v15 = vmul.f32 0.125, %v2724_v45 }
0x1063   : > { %2849 = vrot.lane.b32.xlu1 %v2826_v13, %s4774_s21  ;;  %v2819_v51 = vmul.f32 %v2727_v48, %v6113_v60 }
0x1064   : > { %v2825_v47 = vmul.f32 %v2733_v15, %v6086_v54  ;;  %v2680_v32 = vpop.xlane.xlu1 %2679 }
0x1065   : > { %v2722_v8 = vpop.xlane.xlu0 %2721  ;;  %2789 = vrot.lane.b32.xlu0 %v2772_v34, %s4770_s1  ;;  %v2691_v10 = vmul.f32 0.125, %v2680_v32 }
0x1066   : > { %v2732_v28 = vmul.f32 0.125, %v2722_v8 }
0x1067   : > { %2847 = vrot.lane.b32.xlu1 %v2825_v47, %s4774_s21  ;;  %v2767_v56 = vmul.f32 %v2691_v10, %v6070_v61 }
0x1068   : > { %v2824_v31 = vmul.f32 %v2732_v28, %v6065_v38  ;;  %v2676_v63 = vpop.xlane.xlu1 %2675 }
0x1069   : > { %v2716_v49 = vpop.xlane.xlu0 %2715  ;;  %2787 = vrot.lane.b32.xlu0 %v2771_v44, %s4770_s1  ;;  %v2689_v8 = vmul.f32 0.125, %v2676_v63 }
0x106a   : > { %v2729_v43 = vmul.f32 0.125, %v2716_v49 }
0x106b   : > { %2845 = vrot.lane.b32.xlu1 %v2824_v31, %s4774_s21 }
0x106c   : > { %v2821_v53 = vmul.f32 %v2729_v43, %v6095_v21  ;;  %v2672_v3 = vpop.xlane.xlu1 %2671 }
0x106d   : > { %v2714_v57 = vpop.xlane.xlu0 %2713  ;;  %2835 = vrot.lane.b32.xlu0 %v2819_v51, %s4774_s21  ;;  %v2687_v20 = vmul.f32 0.125, %v2672_v3 }
0x106e   : > { %v2728_v58 = vmul.f32 0.125, %v2714_v57  ;;  %v2765_v57 = vmul.f32 %v2689_v8, %v6095_v21 }
0x106f   : > { %2839 = vrot.lane.b32.xlu1 %v2821_v53, %s4774_s21  ;;  %v2739_v28 = vsel %vm1858_vm8, %v2687_v20, 0.0 }
0x1070   : > { %v2820_v4 = vmul.f32 %v2728_v58, %v6104_v19  ;;  %v2684_v29 = vpop.xlane.xlu1 %2683 }
0x1071   : > { %v2682_v41 = vpop.xlane.xlu0 %2681  ;;  %v2693_v18 = vmul.f32 0.125, %v2684_v29 }
0x1072   : > { %v2692_v13 = vmul.f32 0.125, %v2682_v41 }
0x1073   : > { %2837 = vrot.lane.b32.xlu1 %v2820_v4, %s4774_s21  ;;  %v2769_v15 = vmul.f32 %v2693_v18, %v6086_v54  ;;  %v2763_v54 = vmul.f32 %v2739_v28, %v6113_v60 }
0x1074   : > { %v2768_v48 = vmul.f32 %v2692_v13, %v6065_v38 }
0x1075   : > { %v2678_v46 = vpop.xlane.xlu0 %2677 }
0x1076   : > { %v2690_v24 = vmul.f32 0.125, %v2678_v46 }
0x1078   : > { %v2766_v45 = vmul.f32 %v2690_v24, %v6058_v55 }
0x1079   : > { %v2674_v2 = vpop.xlane.xlu0 %2673 }
0x107a   : > { %v2688_v53 = vmul.f32 0.125, %v2674_v2 }
0x107d   : > { %v2686_v5 = vpop.xlane.xlu0 %2685 }
0x107e   : > { %v2694_v52 = vmul.f32 0.125, %v2686_v5  ;;  %v2764_v5 = vmul.f32 %v2688_v53, %v6104_v19 }
0x1080   : > { %v2770_v25 = vmul.f32 %v2694_v52, %v6081_v12 }
0x10bf   : > { %v2794_v7 = vpop.permute.xlu0 %2793 }
0x10c0   : > { %v2814_v61 = vadd.f32 %v2794_v7, %v2766_v45 }
0x10c7   : > { %v2798_v9 = vpop.permute.xlu0 %2797 }
0x10c8   : > { %v2844_v0 = vpop.permute.xlu1 %2843  ;;  %v2816_v55 = vadd.f32 %v2798_v9, %v2768_v48 }
0x10cb   : > { %v2796_v23 = vpop.permute.xlu0 %2795 }
0x10cc   : > { %v2842_v50 = vpop.permute.xlu1 %2841  ;;  %v2815_v17 = vadd.f32 %v2796_v23, %v2767_v56 }
0x10cd   : > { %v2862_v31 = vadd.f32 %v2842_v50, %v2814_v61 }
0x10ce   : > { %v2863_v33 = vadd.f32 %v2844_v0, %v2815_v17 }
0x10cf   : > { %v2802_v36 = vpop.permute.xlu0 %2801  ;;  %v3697_v4 = vmul.f32 -1.442695, %v2862_v31 }
0x10d0   : > { %v2800_v37 = vpop.permute.xlu1 %2799  ;;  %v2818_v40 = vadd.f32 %v2802_v36, %v2770_v25  ;;  %v3698_v12 = vmul.f32 -1.442695, %v2863_v33 }
0x10d1   : > { %v2817_v62 = vadd.f32 %v2800_v37, %v2769_v15 }
0x10d3   : > { %v2792_v11 = vpop.permute.xlu0 %2791 }
0x10d4   : > { %v2813_v46 = vadd.f32 %v2792_v11, %v2765_v57 }
0x10d5   : > { %v2850_v26 = vpop.permute.xlu1 %2849 }
0x10d6   : > { %v2866_v34 = vadd.f32 %v2850_v26, %v2818_v40 }
0x10d7   : > { %v2790_v35 = vpop.permute.xlu0 %2789 }
0x10d8   : > { %v3701_v47 = vmul.f32 -1.442695, %v2866_v34  ;;  %v2812_v60 = vadd.f32 %v2790_v35, %v2764_v5  ;;  %v2978_v5 = vld [vmem:[%s6262_s9 + $0x38] sm:$0xff] }
0x10d9   : > { %v2848_v44 = vpop.permute.xlu1 %2847 }
0x10da   : > { %4585 = vpow2.f32 %v3701_v47  ;;  %v2865_v49 = vadd.f32 %v2848_v44, %v2817_v62  ;;  %v2971_v47 = vld [vmem:[%s6262_s9] sm:$0xff] }
0x10db   : > { %v2788_v43 = vpop.permute.xlu0 %2787  ;;  %4587 = vpow2.f32 %v3698_v12  ;;  %4237 = vmatprep.mubr.msk.f32.mxu1 %vm1687_vm3, %v2971_v47 }
0x10dc   : > { %v3700_v51 = vmul.f32 -1.442695, %v2865_v49  ;;  %v2811_v27 = vadd.f32 %v2788_v43, %v2763_v54 }
0x10dd   : > { %v2846_v58 = vpop.permute.xlu1 %2845 }
0x10de   : > { %4589 = vpow2.f32 %v3700_v51  ;;  %v2864_v41 = vadd.f32 %v2846_v58, %v2816_v55 }
0x10df   : > { %v2836_v32 = vpop.permute.xlu0 %2835  ;;  %4591 = vpow2.f32 %v3697_v4 }
0x10e0   : > { %v3699_v38 = vmul.f32 -1.442695, %v2864_v41  ;;  %v2859_v63 = vadd.f32 %v2836_v32, %v2811_v27 }
0x10e1   : > { %v2840_v3 = vpop.permute.xlu1 %2839 }
0x10e2   : > { %v3694_v7 = vmul.f32 -1.442695, %v2859_v63  ;;  %v2861_v29 = vadd.f32 %v2840_v3, %v2813_v46  ;;  %4593 = vpow2.f32 %v3699_v38  ;;  %v2976_v63 = vld [vmem:[%s6262_s9 + $0x28] sm:$0xff]  ;;  %v2977_v3 = vld [vmem:[%s6262_s9 + $0x30] sm:$0xff] }
0x10e4   : > { %v3696_v2 = vmul.f32 -1.442695, %v2861_v29  ;;  %4595 = vpow2.f32 %v3694_v7  ;;  %v2979_v7 = vld [vmem:[%s6262_s9 + $0x40] sm:$0xff]  ;;  %v2980_v29 = vld [vmem:[%s6262_s9 + $0x48] sm:$0xff] }
0x10e5   : > { %v2838_v21 = vpop.permute.xlu1 %2837 }
0x10e6   : > { %4597 = vpow2.f32 %v3696_v2  ;;  %v2860_v9 = vadd.f32 %v2838_v21, %v2812_v60  ;;  %v2981_v60 = vld [vmem:[%s6262_s9 + $0x50] sm:$0xff]  ;;  %v2982_v2 = vld [vmem:[%s6262_s9 + $0x58] sm:$0xff]  ;;  %v2983_v21 = vld [vmem:[%s6262_s9 + $0x60] sm:$0xff] }
0x10e7   : > { %v4586_v0 = vpop.eup %4585 }
0x10e8   : > { %v2898_v10 = vadd.f32 1.0, %v4586_v0  ;;  %v3695_v23 = vmul.f32 -1.442695, %v2860_v9  ;;  %v4588_v50 = vpop.eup %4587  ;;  %v2984_v9 = vld [vmem:[%s6262_s9 + $0x68] sm:$0xff]  ;;  %v2985_v0 = vld [vmem:[%s6262_s9 + $0x70] sm:$0xff] }
0x10e9   : > { %v2895_v36 = vadd.f32 1.0, %v4588_v50  ;;  %v3210_v50 = vld [vmem:[#allocation6 + $0x70] sm:$0xff] }
0x10ea   : > { %4599 = vrcp.f32 %v2898_v10  ;;  %v2986_v10 = vld [vmem:[%s6262_s9 + $0x78] sm:$0xff] }
0x10eb   : > { %v4590_v52 = vpop.eup %4589  ;;  %4601 = vpow2.f32 %v3695_v23  ;;  %v3211_v23 = vld [vmem:[#allocation6 + $0x78] sm:$0xff] }
0x10ec   : > { %v2897_v56 = vadd.f32 1.0, %v4590_v52  ;;  %v4592_v19 = vpop.eup %4591  ;;  %4261 = vmatprep.subr.mxu0 %v3211_v23  ;;  %v3209_v52 = vld [vmem:[#allocation6 + $0x68] sm:$0xff] }
0x10ed   : > { %v2894_v25 = vadd.f32 1.0, %v4592_v19  ;;  %4262 = vmatpush3.msra.mxu0 %v3211_v23  ;;  %v3206_v19 = vld [vmem:[#allocation6 + $0x50] sm:$0xff] }
0x10ee   : > { %4603 = vrcp.f32 %v2897_v56  ;;  %4263 = vmatprep.subr.mxu0 %v3210_v50  ;;  %v3208_v56 = vld [vmem:[#allocation6 + $0x60] sm:$0xff] }
0x10ef   : > { %v4594_v37 = vpop.eup %4593  ;;  %4605 = vrcp.f32 %v2895_v36  ;;  %4264 = vmatpush3.msra.mxu0 %v3210_v50  ;;  %v3207_v36 = vld [vmem:[#allocation6 + $0x58] sm:$0xff] }
0x10f0   : > { %v2896_v17 = vadd.f32 1.0, %v4594_v37  ;;  %4265 = vmatprep.subr.mxu0 %v3209_v52  ;;  %v3205_v37 = vld [vmem:[#allocation6 + $0x48] sm:$0xff] }
0x10f1   : > { %v4596_v18 = vpop.eup %4595  ;;  %4266 = vmatpush3.msra.mxu0 %v3209_v52 }
0x10f2   : > { %4607 = vrcp.f32 %v2896_v17  ;;  %v2891_v40 = vadd.f32 1.0, %v4596_v18  ;;  %4267 = vmatprep.subr.mxu0 %v3208_v56  ;;  %v3204_v17 = vld [vmem:[#allocation6 + $0x40] sm:$0xff]  ;;  %v3203_v18 = vld [vmem:[#allocation6 + $0x38] sm:$0xff] }
0x10f3   : > { %v4598_v24 = vpop.eup %4597  ;;  %4268 = vmatpush3.msra.mxu0 %v3208_v56 }
0x10f4   : > { %v2893_v11 = vadd.f32 1.0, %v4598_v24  ;;  %4269 = vmatprep.subr.mxu0 %v3207_v36  ;;  %v3202_v24 = vld [vmem:[#allocation6 + $0x30] sm:$0xff] }
0x10f5   : > { %4270 = vmatpush3.msra.mxu0 %v3207_v36 }
0x10f6   : > { %4609 = vrcp.f32 %v2893_v11  ;;  %4271 = vmatprep.subr.mxu0 %v3206_v19  ;;  %v3200_v11 = vld [vmem:[#allocation6 + $0x20] sm:$0xff] }
0x10f7   : > { %v4600_v20 = vpop.eup %4599  ;;  %4611 = vrcp.f32 %v2894_v25  ;;  %4272 = vmatpush3.msra.mxu0 %v3206_v19  ;;  %v3201_v25 = vld [vmem:[#allocation6 + $0x28] sm:$0xff] }
0x10f8   : > { %v4602_v33 = vpop.eup %4601  ;;  %2952 = vperm.xlu1 %4460, %v4600_v20   ;;  %4613 = vrcp.f32 %v2891_v40  ;;  %4273 = vmatprep.subr.mxu0 %v3205_v37  ;;  %v3199_v40 = vld [vmem:[#allocation6 + $0x18] sm:$0xff]  ;;  %v3198_v20 = vld [vmem:[#allocation6 + $0x10] sm:$0xff] }
0x10f9   : > { %v2892_v26 = vadd.f32 1.0, %v4602_v33  ;;  %4274 = vmatpush3.msra.mxu0 %v3205_v37  ;;  %v3197_v33 = vld [vmem:[#allocation6 + $0x8] sm:$0xff] }
0x10fa   : > { %4275 = vmatprep.subr.mxu0 %v3204_v17 }
0x10fb   : > { %v4604_v13 = vpop.eup %4603  ;;  %4615 = vrcp.f32 %v2892_v26  ;;  %4276 = vmatpush3.msra.mxu0 %v3204_v17  ;;  %v3196_v26 = vld [vmem:[#allocation6] sm:$0xff] }
0x10fc   : > { %2947 = vperm.xlu0 %4459, %v4604_v13   ;;  %v4606_v45 = vpop.eup %4605  ;;  %4277 = vmatprep.subr.mxu0 %v3203_v18 }
0x10fd   : > { %4278 = vmatpush3.msra.mxu0 %v3203_v18 }
0x10fe   : > { %4279 = vmatprep.subr.mxu0 %v3202_v24 }
0x10ff   : > { %v4608_v15 = vpop.eup %4607  ;;  %4280 = vmatpush3.msra.mxu0 %v3202_v24 }
0x1100   : > { %2937 = vperm.xlu0 %4459, %v4606_v45   ;;  %2942 = vperm.xlu1 %4460, %v4608_v15  }
0x1101   : > { %4281 = vmatprep.subr.mxu0 %v3201_v25 }
0x1102   : > { %4282 = vmatpush3.msra.mxu0 %v3201_v25 }
0x1103   : > { %v4610_v34 = vpop.eup %4609  ;;  %4283 = vmatprep.subr.mxu0 %v3200_v11 }
0x1104   : > { %v4612_v35 = vpop.eup %4611  ;;  %2927 = vperm.xlu0 %4459, %v4610_v34   ;;  %4284 = vmatpush3.msra.mxu0 %v3200_v11 }
0x1105   : > { %2932 = vperm.xlu1 %4460, %v4612_v35   ;;  %v4614_v61 = vpop.eup %4613  ;;  %4285 = vmatprep.subr.mxu0 %v3199_v40 }
0x1106   : > { %4286 = vmatpush3.msra.mxu0 %v3199_v40 }
0x1107   : > { %4287 = vmatprep.subr.mxu0 %v3198_v20 }
0x1108   : > { %v4616_v62 = vpop.eup %4615  ;;  %2917 = vperm.xlu0 %4459, %v4614_v61   ;;  %4288 = vmatpush3.msra.mxu0 %v3198_v20 }
0x1109   : > { %2922 = vperm.xlu1 %4460, %v4616_v62   ;;  %4289 = vmatprep.subr.mxu0 %v3197_v33 }
0x110a   : > { %4290 = vmatpush3.msra.mxu0 %v3197_v33 }
0x110b   : > { %4291 = vmatprep.subr.mxu0 %v3196_v26 }
0x110c   : > { %4292 = vmatpush3.msra.mxu0 %v3196_v26 }
0x1173   : > { %v2953_v8 = vpop.permute.xlu1 %2952 }
0x1174   : > { %v2962_v28 = vmul.f32 %v2953_v8, %v6002_v14 }
0x1176   : > { %v2970_v12 = vadd.f32 %v2962_v28, %v6002_v14 }
0x1177   : > { %v2948_v44 = vpop.permute.xlu0 %2947 }
0x1178   : > { %v2961_v48 = vmul.f32 %v2948_v44, %v6009_v16  ;;  %4221 = vmatprep.subr.mxu1 %v2970_v12 }
0x1179   : > { %4222 = vmatpush3.msra.mxu1 %v2970_v12 }
0x117a   : > { %v2969_v31 = vadd.f32 %v2961_v48, %v6009_v16 }
0x117b   : > { %v2938_v49 = vpop.permute.xlu0 %2937  ;;  %v2943_v43 = vpop.permute.xlu1 %2942 }
0x117c   : > { %4223 = vmatprep.subr.mxu1 %v2969_v31  ;;  %v2960_v55 = vmul.f32 %v2943_v43, %v5991_v6  ;;  %v2959_v51 = vmul.f32 %v2938_v49, %v5993_v22 }
0x117d   : > { %4224 = vmatpush3.msra.mxu1 %v2969_v31 }
0x117e   : > { %v2968_v54 = vadd.f32 %v2960_v55, %v5991_v6  ;;  %v2967_v14 = vadd.f32 %v2959_v51, %v5993_v22 }
0x117f   : > { %v2928_v53 = vpop.permute.xlu0 %2927 }
0x1180   : > { %v2933_v57 = vpop.permute.xlu1 %2932  ;;  %v2957_v4 = vmul.f32 %v2928_v53, %v5989_v59  ;;  %4225 = vmatprep.subr.mxu1 %v2968_v54 }
0x1181   : > { %v2958_v58 = vmul.f32 %v2933_v57, %v5986_v1  ;;  %4226 = vmatpush3.msra.mxu1 %v2968_v54 }
0x1182   : > { %4227 = vmatprep.subr.mxu1 %v2967_v14  ;;  %v2965_v32 = vadd.f32 %v2957_v4, %v5989_v59  ;;  %v2973_v59 = vld [vmem:[%s6262_s9 + $0x10] sm:$0xff] }
0x1183   : > { %v2966_v16 = vadd.f32 %v2958_v58, %v5986_v1  ;;  %v2918_v27 = vpop.permute.xlu0 %2917  ;;  %4228 = vmatpush3.msra.mxu1 %v2967_v14  ;;  %v2972_v1 = vld [vmem:[%s6262_s9 + $0x8] sm:$0xff] }
0x1184   : > { %v2923_v41 = vpop.permute.xlu1 %2922  ;;  %v2955_v46 = vmul.f32 %v2918_v27, %v6007_v42 }
0x1185   : > { %v2956_v6 = vmul.f32 %v2923_v41, %v5983_v39  ;;  %4229 = vmatprep.subr.mxu1 %v2966_v16 }
0x1186   : > { %4230 = vmatpush3.msra.mxu1 %v2966_v16  ;;  %v2963_v38 = vadd.f32 %v2955_v46, %v6007_v42  ;;  %v2975_v42 = vld [vmem:[%s6262_s9 + $0x20] sm:$0xff] }
0x1187   : > { %v2964_v22 = vadd.f32 %v2956_v6, %v5983_v39  ;;  %4231 = vmatprep.subr.mxu1 %v2965_v32  ;;  %v2974_v39 = vld [vmem:[%s6262_s9 + $0x18] sm:$0xff] }
0x1188   : > { %4232 = vmatpush3.msra.mxu1 %v2965_v32 }
0x1189   : > { %4233 = vmatprep.subr.mxu1 %v2964_v22 }
0x118a   : > { %4234 = vmatpush3.msra.mxu1 %v2964_v22 }
0x118b   : > { %4235 = vmatprep.subr.mxu1 %v2963_v38 }
0x118c   : > { %4236 = vmatpush3.msra.mxu1 %v2963_v38 }
0x118d   : > { %4238 = vmatmul.mubr.msk.f32.vlgmr.msra.gmra.mxu1 %vm1687_vm3, %v2972_v1  ;;  %4317 = vmatprep.subr.mxu1 %v4776_v30 }
0x118e   : > { %4240 = vmatprep.mubr.msk.f32.mxu1 %vm1687_vm3, %v2973_v59 }
0x1191   : > { %4241 = vmatmul.mubr.msk.f32.gmra.mxu1 %vm1687_vm3, %v2974_v39 }
0x1192   : > { %4243 = vmatprep.mubr.msk.f32.mxu1 %vm1687_vm3, %v2975_v42 }
0x1195   : > { %4244 = vmatmul.mubr.msk.f32.gmra.mxu1 %vm1687_vm3, %v2976_v63 }
0x1196   : > { %4246 = vmatprep.mubr.msk.f32.mxu1 %vm1687_vm3, %v2977_v3 }
0x1199   : > { %4247 = vmatmul.mubr.msk.f32.gmra.mxu1 %vm1687_vm3, %v2978_v5 }
0x119a   : > { %4249 = vmatprep.mubr.msk.f32.mxu1 %vm1687_vm3, %v2979_v7 }
0x119d   : > { %4250 = vmatmul.mubr.msk.f32.gmra.mxu1 %vm1687_vm3, %v2980_v29 }
0x119e   : > { %4252 = vmatprep.mubr.msk.f32.mxu1 %vm1687_vm3, %v2981_v60 }
0x11a1   : > { %4253 = vmatmul.mubr.msk.f32.gmra.mxu1 %vm1687_vm3, %v2982_v2 }
0x11a2   : > { %4255 = vmatprep.mubr.msk.f32.mxu1 %vm1687_vm3, %v2983_v21 }
0x11a5   : > { %4256 = vmatmul.mubr.msk.f32.gmra.mxu1 %vm1687_vm3, %v2984_v9 }
0x11a6   : > { %4258 = vmatprep.mubr.msk.f32.mxu1 %vm1687_vm3, %v2985_v0 }
0x11a9   : > { %4259 = vmatmul.mubr.msk.f32.gmra.mxu1 %vm1687_vm3, %v2986_v10 }
0x11aa   : > { %4349 = vmatprep.mubr.msk.f32.mxu1 %vm4777_vm0, %v4776_v30 }
0x124d   : > { %v4239_v13 = vpop.f32.mrf.mxu1 }
0x124e   : > { %v3181_v15 = vmax.f32 %v4239_v13, 0.0 }
0x124f   : > { %v3101_v45 = vpop.f32.mrf.mxu1 }
0x1250   : > { %v3180_v34 = vmax.f32 %v3101_v45, 0.0 }
0x1251   : > { %v4242_v35 = vpop.f32.mrf.mxu1 }
0x1252   : > { %v4521_v61 = vpack.i.bf16 %v3181_v15, %v3180_v34  ;;  %v3183_v47 = vmax.f32 %v4242_v35, 0.0 }
0x1253   : > { %v3111_v62 = vpop.f32.mrf.mxu1 }
0x1254   : > { %v3182_v8 = vmax.f32 %v3111_v62, 0.0  ;;  %4522 = vrot.lane.b32.xlu1 %v4521_v61, %s4770_s1 }
0x1255   : > { %v4245_v28 = vpop.f32.mrf.mxu1 }
0x1256   : > { %v4526_v12 = vpack.i.bf16 %v3183_v47, %v3182_v8  ;;  %v3185_v48 = vmax.f32 %v4245_v28, 0.0 }
0x1257   : > { %v3121_v44 = vpop.f32.mrf.mxu1 }
0x1258   : > { %v3184_v31 = vmax.f32 %v3121_v44, 0.0  ;;  %4527 = vrot.lane.b32.xlu0 %v4526_v12, %s4770_s1 }
0x1259   : > { %v4248_v49 = vpop.f32.mrf.mxu1 }
0x125a   : > { %v4531_v43 = vpack.i.bf16 %v3185_v48, %v3184_v31  ;;  %v3187_v51 = vmax.f32 %v4248_v49, 0.0 }
0x125b   : > { %v3131_v55 = vpop.f32.mrf.mxu1 }
0x125c   : > { %v3186_v54 = vmax.f32 %v3131_v55, 0.0  ;;  %4532 = vrot.lane.b32.xlu1 %v4531_v43, %s4770_s1 }
0x125d   : > { %v4251_v53 = vpop.f32.mrf.mxu1 }
0x125e   : > { %v4536_v57 = vpack.i.bf16 %v3187_v51, %v3186_v54  ;;  %v3189_v58 = vmax.f32 %v4251_v53, 0.0 }
0x125f   : > { %v3141_v14 = vpop.f32.mrf.mxu1 }
0x1260   : > { %v3188_v4 = vmax.f32 %v3141_v14, 0.0  ;;  %4537 = vrot.lane.b32.xlu0 %v4536_v57, %s4770_s1 }
0x1261   : > { %v4254_v16 = vpop.f32.mrf.mxu1 }
0x1262   : > { %v4541_v27 = vpack.i.bf16 %v3189_v58, %v3188_v4  ;;  %v3191_v32 = vmax.f32 %v4254_v16, 0.0 }
0x1263   : > { %v3151_v41 = vpop.f32.mrf.mxu1 }
0x1264   : > { %v3190_v6 = vmax.f32 %v3151_v41, 0.0  ;;  %4542 = vrot.lane.b32.xlu1 %v4541_v27, %s4770_s1 }
0x1265   : > { %v4257_v46 = vpop.f32.mrf.mxu1 }
0x1266   : > { %v4546_v22 = vpack.i.bf16 %v3191_v32, %v3190_v6  ;;  %v3193_v1 = vmax.f32 %v4257_v46, 0.0 }
0x1267   : > { %v3161_v38 = vpop.f32.mrf.mxu1 }
0x1268   : > { %v3192_v59 = vmax.f32 %v3161_v38, 0.0  ;;  %4547 = vrot.lane.b32.xlu0 %v4546_v22, %s4770_s1 }
0x1269   : > { %v4260_v39 = vpop.f32.mrf.mxu1 }
0x126a   : > { %v4551_v42 = vpack.i.bf16 %v3193_v1, %v3192_v59  ;;  %v3195_v3 = vmax.f32 %v4260_v39, 0.0 }
0x126b   : > { %v3171_v63 = vpop.f32.mrf.mxu1 }
0x126c   : > { %v3194_v5 = vmax.f32 %v3171_v63, 0.0  ;;  %4552 = vrot.lane.b32.xlu1 %v4551_v42, %s4770_s1 }
0x126e   : > { %v4556_v7 = vpack.i.bf16 %v3195_v3, %v3194_v5 }
0x1270   : > { %4557 = vrot.lane.b32.xlu0 %v4556_v7, %s4770_s1  ;;  %s3589_s1 = sshll.u32 %s6297_s28, 3 }
0x1271   : > { %s624_s21 = scalar_lea.vmem %s6271_s18, %s3589_s1 }
0x12c6   : > { %v4523_v29 = vpop.permute.xlu1 %4522 }
0x12c7   : > { %v4525_v60 = vunpack.i.h.bf16 %v4523_v29  ;;  %v4524_v2 = vunpack.i.l.bf16 %v4523_v29 }
0x12c9   : > { %v3245_v21 = vmax.f32 %v3181_v15, %v4525_v60  ;;  %v3244_v9 = vmax.f32 %v3180_v34, %v4524_v2 }
0x12ca   : > { %v4528_v0 = vpop.permute.xlu0 %4527 }
0x12cb   : > { %v4530_v10 = vunpack.i.h.bf16 %v4528_v0  ;;  %v4529_v23 = vunpack.i.l.bf16 %v4528_v0  ;;  %4293 = vmatprep.mubr.f32.mxu0 %v3244_v9 }
0x12cc   : > { %4294 = vmatmul.mubr.f32.vlgmr.msra.gmra.mxu0 %v3245_v21 }
0x12cd   : > { %v3247_v50 = vmax.f32 %v3183_v47, %v4530_v10  ;;  %v3246_v52 = vmax.f32 %v3182_v8, %v4529_v23 }
0x12ce   : > { %v4533_v56 = vpop.permute.xlu1 %4532 }
0x12cf   : > { %v4535_v36 = vunpack.i.h.bf16 %v4533_v56  ;;  %v4534_v19 = vunpack.i.l.bf16 %v4533_v56  ;;  %4296 = vmatprep.mubr.f32.mxu0 %v3246_v52 }
0x12d0   : > { %4297 = vmatmul.mubr.f32.gmra.mxu0 %v3247_v50 }
0x12d1   : > { %v3249_v37 = vmax.f32 %v3185_v48, %v4535_v36  ;;  %v3248_v17 = vmax.f32 %v3184_v31, %v4534_v19 }
0x12d2   : > { %v4538_v18 = vpop.permute.xlu0 %4537 }
0x12d3   : > { %v4540_v24 = vunpack.i.h.bf16 %v4538_v18  ;;  %v4539_v25 = vunpack.i.l.bf16 %v4538_v18  ;;  %4299 = vmatprep.mubr.f32.mxu0 %v3248_v17 }
0x12d4   : > { %4300 = vmatmul.mubr.f32.gmra.mxu0 %v3249_v37 }
0x12d5   : > { %v3251_v11 = vmax.f32 %v3187_v51, %v4540_v24  ;;  %v3250_v40 = vmax.f32 %v3186_v54, %v4539_v25 }
0x12d6   : > { %v4543_v20 = vpop.permute.xlu1 %4542 }
0x12d7   : > { %v4545_v33 = vunpack.i.h.bf16 %v4543_v20  ;;  %v4544_v26 = vunpack.i.l.bf16 %v4543_v20  ;;  %4302 = vmatprep.mubr.f32.mxu0 %v3250_v40 }
0x12d8   : > { %4303 = vmatmul.mubr.f32.gmra.mxu0 %v3251_v11 }
0x12d9   : > { %v3253_v13 = vmax.f32 %v3189_v58, %v4545_v33  ;;  %v3252_v45 = vmax.f32 %v3188_v4, %v4544_v26 }
0x12da   : > { %v4548_v15 = vpop.permute.xlu0 %4547 }
0x12db   : > { %v4550_v34 = vunpack.i.h.bf16 %v4548_v15  ;;  %v4549_v35 = vunpack.i.l.bf16 %v4548_v15  ;;  %4305 = vmatprep.mubr.f32.mxu0 %v3252_v45 }
0x12dc   : > { %4306 = vmatmul.mubr.f32.gmra.mxu0 %v3253_v13 }
0x12dd   : > { %v3255_v61 = vmax.f32 %v3191_v32, %v4550_v34  ;;  %v3254_v62 = vmax.f32 %v3190_v6, %v4549_v35 }
0x12de   : > { %v4553_v47 = vpop.permute.xlu1 %4552 }
0x12df   : > { %v4555_v8 = vunpack.i.h.bf16 %v4553_v47  ;;  %v4554_v28 = vunpack.i.l.bf16 %v4553_v47  ;;  %4308 = vmatprep.mubr.f32.mxu0 %v3254_v62 }
0x12e0   : > { %4309 = vmatmul.mubr.f32.gmra.mxu0 %v3255_v61 }
0x12e1   : > { %v3257_v12 = vmax.f32 %v3193_v1, %v4555_v8  ;;  %v3256_v44 = vmax.f32 %v3192_v59, %v4554_v28  ;;  %v3405_v59 = vld [vmem:[#allocation7] sm:$0x1f] }
0x12e2   : > { %v4558_v48 = vpop.permute.xlu0 %4557 }
0x12e3   : > { %v4560_v31 = vunpack.i.h.bf16 %v4558_v48  ;;  %v4559_v49 = vunpack.i.l.bf16 %v4558_v48  ;;  %4311 = vmatprep.mubr.f32.mxu0 %v3256_v44 }
0x12e4   : > { %4312 = vmatmul.mubr.f32.gmra.mxu0 %v3257_v12 }
0x12e5   : > { %v3259_v43 = vmax.f32 %v3195_v3, %v4560_v31  ;;  %v3258_v55 = vmax.f32 %v3194_v5, %v4559_v49  ;;  %v3481_v3 = vld [vmem:[%s6270_s17] sm:$0x1f] }
0x12e7   : > { %4314 = vmatprep.mubr.f32.mxu0 %v3258_v55 }
0x12e8   : > { %4315 = vmatmul.mubr.f32.gmra.mxu0 %v3259_v43 }
0x138c   : > { %v4295_v51 = vpop.f32.mrf.mxu0 }
0x138e   : > { %v3326_v54 = vpop.f32.mrf.mxu0 }
0x1390   : > { %v4298_v53 = vpop.f32.mrf.mxu0 }
0x1392   : > { %v3336_v57 = vpop.f32.mrf.mxu0 }
0x1394   : > { %v4301_v14 = vpop.f32.mrf.mxu0 }
0x1396   : > { %v3346_v58 = vpop.f32.mrf.mxu0 }
0x1398   : > { %v4304_v4 = vpop.f32.mrf.mxu0 }
0x139a   : > { %v3356_v16 = vpop.f32.mrf.mxu0 }
0x139c   : > { %v4307_v27 = vpop.f32.mrf.mxu0 }
0x139e   : > { %v3366_v41 = vpop.f32.mrf.mxu0 }
0x13a0   : > { %v4310_v32 = vpop.f32.mrf.mxu0 }
0x13a2   : > { %v3376_v6 = vpop.f32.mrf.mxu0 }
0x13a4   : > { %v4313_v46 = vpop.f32.mrf.mxu0 }
0x13a6   : > { %v3386_v22 = vpop.f32.mrf.mxu0 }
0x13a8   : > { %v4316_v38 = vpop.f32.mrf.mxu0 }
0x13a9   : > { %4318 = vmatpush3.msra.mxu1 %v4316_v38 }
0x13aa   : > { %v3396_v1 = vpop.f32.mrf.mxu0  ;;  %4319 = vmatprep.subr.mxu1 %v4776_v30 }
0x13ab   : > { %4320 = vmatpush3.msra.mxu1 %v3396_v1 }
0x13ac   : > { %4321 = vmatprep.subr.mxu1 %v4776_v30 }
0x13ad   : > { %4322 = vmatpush3.msra.mxu1 %v4313_v46 }
0x13ae   : > { %4323 = vmatprep.subr.mxu1 %v4776_v30 }
0x13af   : > { %4324 = vmatpush3.msra.mxu1 %v3386_v22 }
0x13b0   : > { %4325 = vmatprep.subr.mxu1 %v4776_v30 }
0x13b1   : > { %4326 = vmatpush3.msra.mxu1 %v4310_v32 }
0x13b2   : > { %4327 = vmatprep.subr.mxu1 %v4776_v30 }
0x13b3   : > { %4328 = vmatpush3.msra.mxu1 %v3376_v6 }
0x13b4   : > { %4329 = vmatprep.subr.mxu1 %v4776_v30 }
0x13b5   : > { %4330 = vmatpush3.msra.mxu1 %v4307_v27 }
0x13b6   : > { %4331 = vmatprep.subr.mxu1 %v4776_v30 }
0x13b7   : > { %4332 = vmatpush3.msra.mxu1 %v3366_v41 }
0x13b8   : > { %4333 = vmatprep.subr.mxu1 %v4776_v30 }
0x13b9   : > { %4334 = vmatpush3.msra.mxu1 %v4304_v4 }
0x13ba   : > { %4335 = vmatprep.subr.mxu1 %v4776_v30 }
0x13bb   : > { %4336 = vmatpush3.msra.mxu1 %v3356_v16 }
0x13bc   : > { %4337 = vmatprep.subr.mxu1 %v4776_v30 }
0x13bd   : > { %4338 = vmatpush3.msra.mxu1 %v4301_v14 }
0x13be   : > { %4339 = vmatprep.subr.mxu1 %v4776_v30 }
0x13bf   : > { %4340 = vmatpush3.msra.mxu1 %v3346_v58 }
0x13c0   : > { %4341 = vmatprep.subr.mxu1 %v4776_v30 }
0x13c1   : > { %4342 = vmatpush3.msra.mxu1 %v4298_v53 }
0x13c2   : > { %4343 = vmatprep.subr.mxu1 %v4776_v30 }
0x13c3   : > { %4344 = vmatpush3.msra.mxu1 %v3336_v57 }
0x13c4   : > { %4345 = vmatprep.subr.mxu1 %v4776_v30 }
0x13c5   : > { %4346 = vmatpush3.msra.mxu1 %v4295_v51 }
0x13c6   : > { %4347 = vmatprep.subr.mxu1 %v4776_v30 }
0x13c7   : > { %4348 = vmatpush3.msra.mxu1 %v3326_v54 }
0x13c8   : > { %4350 = vmatmul.mubr.f32.vlgmr.msra.gmra.mxu1 %v3405_v59 }
0x1488   : > { %v3472_v39 = vpop.f32.mrf.mxu1 }
0x1489   : > { %v3477_v42 = vsel %vm3476_vm2, %v3472_v39, 0.0 }
0x148a   : > { %v4351_v63 = vpop.f32.mrf.mxu1  ;;  %3478 = vadd.xlane.f32.xlu1 %v3477_v42 }
0x1513   : > { %v3479_v5 = vpop.xlane.xlu1 %3478 }
0x1514   : > { %v3480_v7 = vmul.f32 0.25, %v3479_v5 }
0x1516   : > { %v3482_v30 = vadd.f32 %v3481_v3, %v3480_v7 }
0x1518   : > { %3484 = vst.msk [vmem:[%s624_s21] sm:$0x1f] %vm3483_vm6, %v3482_v30 }
0x1519 PF: > { %s6295_s0 = sld [smem:[#allocation12_spill]] }
0x151f   : > { %s31_s27 = sadd.s32 1, %s6295_s0  }
0x1520   : > { %p28_p2 = scmp.ge.s32.totalorder %s31_s27, 4  }
0x1522   :  { %30 = sbr.rel (!%p28_p2) target bundleno = 7 (0x7), region = 139 }
0x1527   :  { %3504 = vsyncpa [#allocation3], 1 }
0x1528   :  { %3506 = vsyncpa [#allocation3 + $0x1], 1 }
0x1529   :  { %3507 = vsyncpa [#allocation5], 1 }
0x152a   :  { %3508 = vsyncpa [#allocation8], 1 }

</bundles_post_ra>
